<compile_context>
chip_gen: v7x
topology: tpu7x:2x2x1
jax: 0.10.0
libtpu: 0.0.40
codegen_flags: <defaults>
</compile_context>

<pallas_src>
import functools

import jax
import jax.numpy as jnp
from jax.experimental import pallas as pl
from jax.experimental.pallas import tpu as pltpu

D_MODEL = 32
N_HEADS = 4
D_HEAD = D_MODEL // N_HEADS
D_FF = 64
N_LAYERS = 2
EPS = 1e-5


# --------------------------------------------------------------------------
# in-kernel helpers (traced inside the Pallas kernel body)
# --------------------------------------------------------------------------
def _layer_norm(v, g, b):
    mu = jnp.mean(v, axis=-1, keepdims=True)
    var = jnp.mean((v - mu) ** 2, axis=-1, keepdims=True)
    return (v - mu) * jax.lax.rsqrt(var + EPS) * g + b


def _mha(q2, k3, v3, mask, B, Lq):
    """Multi-head attention with ALL heads in two batched einsums.

    q2   : (B*Lq, D) f32 query projections (1/sqrt(d_head) pre-folded into
           the Q weights at pack time).
    k3,v3: (B, Lk, D) f32 key / value projections (heads = lane slices).
    mask : (H*Lq, D) f32 head-block mask, mask[h*Lq+q, d] = [d//D_HEAD == h].

    Head separation is done with the mask (cheap VPU multiplies) instead of
    per-head lane slices + concatenates, so scores and outputs each take a
    single head-batched MXU einsum.
    """
    Lk = k3.shape[1]
    q3 = q2.reshape(B, Lq, D_MODEL)                       # free leading split
    # Replicate queries along sublanes (one row per (head, query)) and keep
    # only head-h lanes in row block h.  Sublane-tile copies only.
    q_exp = jnp.concatenate([q3] * N_HEADS, axis=1) * mask   # (B, H*Lq, D)

    qb = q_exp.astype(jnp.bfloat16)
    kb = k3.astype(jnp.bfloat16)
    vb = v3.astype(jnp.bfloat16)

    # (B, H*Lq, Lk): row (h*Lq + q), lane k  ==  head-h score q·k.
    s = jnp.einsum('bjd,bkd->bjk', qb, kb,
                   preferred_element_type=jnp.float32)

    # stable softmax over keys; the divide goes to the EUP.
    m = jnp.max(s, axis=-1, keepdims=True)
    e = jnp.exp(s - m)
    p = e * pl.reciprocal(jnp.sum(e, axis=-1, keepdims=True), approx=True)

    # (B, H*Lq, D): for each (h, q) row, P_h @ V over the full D lanes ...
    o_full = jnp.einsum('bjk,bkd->bjd', p.astype(jnp.bfloat16), vb,
                        preferred_element_type=jnp.float32)
    # ... keep head-h lanes of row block h and collapse the head-replicated
    # rows: 3 VPU adds of 8-aligned sublane tiles (no XLU, no concat).
    om = o_full * mask
    o = om[:, 0:Lq, :]
    for h in range(1, N_HEADS):
        o = o + om[:, h * Lq:(h + 1) * Lq, :]
    return o.reshape(B * Lq, D_MODEL)                      # free leading merge


# --------------------------------------------------------------------------
# fused Pallas kernel: full decoder stack + optional final LayerNorm
# --------------------------------------------------------------------------
def fused_decoder_kernel(x_ref, cross_ref, mask_ref,
                         w_qkv_s_ref, b_qkv_s_ref, wo_s_ref, bo_s_ref,
                         wq_c_ref, bq_c_ref, w_kv_c_ref, b_kv_c_ref,
                         wo_c_ref, bo_c_ref,
                         w_ff1_ref, b_ff1_ref, w_ff2_ref, b_ff2_ref,
                         gamma_ref, beta_ref, fg_ref, fb_ref,
                         out_ref, *, B, Lq, Lk, apply_final_norm):
    D = D_MODEL
    n_layers = w_qkv_s_ref.shape[0]

    x = x_ref[...]                      # (B*Lq, D) f32 residual stream
    mask = mask_ref[...]                # (H*Lq, D) f32 head-block mask

    # Hoisted (loop-invariant) cross-attention K/V projection for ALL layers:
    # one lane-dense (B*Lk, D) @ (D, n_layers*2D) bf16 matmul.
    cr_b = cross_ref[...].astype(jnp.bfloat16)
    kv_all = jnp.dot(cr_b, w_kv_c_ref[...],
                     preferred_element_type=jnp.float32) + b_kv_c_ref[...]

    for l in range(n_layers):           # static unroll over layers
        g = gamma_ref[l]                # (3, D) f32
        bt = beta_ref[l]                # (3, D) f32

        # ---- self attention: fused QKV projection (one (D, 3D) matmul) ----
        qkv = jnp.dot(x.astype(jnp.bfloat16), w_qkv_s_ref[l],
                      preferred_element_type=jnp.float32) + b_qkv_s_ref[l]
        att = _mha(qkv[:, :D],
                   qkv[:, D:2 * D].reshape(B, Lq, D),
                   qkv[:, 2 * D:].reshape(B, Lq, D),
                   mask, B, Lq)
        att = jnp.dot(att.astype(jnp.bfloat16), wo_s_ref[l],
                      preferred_element_type=jnp.float32) + bo_s_ref[l]
        x = _layer_norm(x + att, g[0:1], bt[0:1])

        # ---- cross attention (K/V sliced from the hoisted projection) ----
        # TODO(synk): only cross_mask=None is supported (no additive mask).
        q = jnp.dot(x.astype(jnp.bfloat16), wq_c_ref[l],
                    preferred_element_type=jnp.float32) + bq_c_ref[l]
        k_c = kv_all[:, 2 * D * l:2 * D * l + D].reshape(B, Lk, D)
        v_c = kv_all[:, 2 * D * l + D:2 * D * (l + 1)].reshape(B, Lk, D)
        att = _mha(q, k_c, v_c, mask, B, Lq)
        att = jnp.dot(att.astype(jnp.bfloat16), wo_c_ref[l],
                      preferred_element_type=jnp.float32) + bo_c_ref[l]
        x = _layer_norm(x + att, g[1:2], bt[1:2])

        # ---- position-wise FFN (Conv1d k=1 == dense), residual + norm ----
        y = jnp.maximum(
            jnp.dot(x.astype(jnp.bfloat16), w_ff1_ref[l],
                    preferred_element_type=jnp.float32) + b_ff1_ref[l], 0.0)
        y = jnp.dot(y.astype(jnp.bfloat16), w_ff2_ref[l],
                    preferred_element_type=jnp.float32) + b_ff2_ref[l]
        x = _layer_norm(x + y, g[2:3], bt[2:3])

    if apply_final_norm:
        x = _layer_norm(x, fg_ref[...], fb_ref[...])

    # TODO(synk): at larger B*Lq*D, repack to a (rows, 128) lane-dense slab
    # before the store for unmasked vst.
    out_ref[...] = x.astype(out_ref.dtype)


# --------------------------------------------------------------------------
# wrapper
# --------------------------------------------------------------------------
def _head_block_mask(Lq):
    """(H*Lq, D) mask: row h*Lq+q keeps only head-h lanes."""
    row_head = jnp.arange(N_HEADS * Lq, dtype=jnp.int32)[:, None] // Lq
    lane_head = jnp.arange(D_MODEL, dtype=jnp.int32)[None, :] // D_HEAD
    return (row_head == lane_head).astype(jnp.float32)


def decoder_forward(x, cross, packed, norm_params, cross_mask=None):
    """Matches Decoder.forward: apply all layers, then optional norm."""
    # TODO(synk): additive cross_mask is not wired into the fused kernel.
    assert cross_mask is None
    B, Lq, D = x.shape
    _, Lk, _ = cross.shape

    apply_final_norm = norm_params is not None
    if apply_final_norm:
        fg, fb = norm_params['gamma'], norm_params['beta']
    else:
        fg = jnp.ones((1, D), jnp.float32)
        fb = jnp.zeros((1, D), jnp.float32)

    # wrapper-side layout plumbing: flat (rows, D) activation slabs + mask.
    x2 = x.reshape(B * Lq, D)
    cr2 = cross.reshape(B * Lk, D)
    mask = _head_block_mask(Lq)

    args = (x2, cr2, mask,
            packed['w_qkv_s'], packed['b_qkv_s'], packed['wo_s'], packed['bo_s'],
            packed['wq_c'], packed['bq_c'], packed['w_kv_c'], packed['b_kv_c'],
            packed['wo_c'], packed['bo_c'],
            packed['w_ff1'], packed['b_ff1'], packed['w_ff2'], packed['b_ff2'],
            packed['gamma'], packed['beta'], fg, fb)

    vmem = pltpu.MemorySpace.VMEM
    out2 = pl.pallas_call(
        functools.partial(fused_decoder_kernel, B=B, Lq=Lq, Lk=Lk,
                          apply_final_norm=apply_final_norm),
        out_shape=jax.ShapeDtypeStruct((B * Lq, D), x.dtype),
        in_specs=[pl.BlockSpec(memory_space=vmem)] * len(args),
        out_specs=pl.BlockSpec(memory_space=vmem),
    )(*args)
    return out2.reshape(B, Lq, D)


# --------------------------------------------------------------------------
# parameter init (PyTorch-style per-layer weights) + packing for the kernel
# --------------------------------------------------------------------------
def init_params(key):
    layer_params = []
    for _ in range(N_LAYERS):
        key, *subkeys = jax.random.split(key, 21)
        ks = iter(subkeys)

        def w(shape, scale=0.05, ks=ks):
            return jax.random.normal(next(ks), shape, jnp.float32) * scale

        layer_params.append({
            'wq_s': w((D_MODEL, D_MODEL)), 'bq_s': w((D_MODEL,), 0.01),
            'wk_s': w((D_MODEL, D_MODEL)), 'bk_s': w((D_MODEL,), 0.01),
            'wv_s': w((D_MODEL, D_MODEL)), 'bv_s': w((D_MODEL,), 0.01),
            'wo_s': w((D_MODEL, D_MODEL)), 'bo_s': w((D_MODEL,), 0.01),
            'wq_c': w((D_MODEL, D_MODEL)), 'bq_c': w((D_MODEL,), 0.01),
            'wk_c': w((D_MODEL, D_MODEL)), 'bk_c': w((D_MODEL,), 0.01),
            'wv_c': w((D_MODEL, D_MODEL)), 'bv_c': w((D_MODEL,), 0.01),
            'wo_c': w((D_MODEL, D_MODEL)), 'bo_c': w((D_MODEL,), 0.01),
            'w_ff1': w((D_MODEL, D_FF)),   'b_ff1': w((D_FF,), 0.01),
            'w_ff2': w((D_FF, D_MODEL)),   'b_ff2': w((D_MODEL,), 0.01),
            'g1': jnp.ones((D_MODEL,), jnp.float32),
            'b1': jnp.zeros((D_MODEL,), jnp.float32),
            'g2': jnp.ones((D_MODEL,), jnp.float32),
            'b2': jnp.zeros((D_MODEL,), jnp.float32),
            'g3': jnp.ones((D_MODEL,), jnp.float32),
            'b3': jnp.zeros((D_MODEL,), jnp.float32),
        })
    norm_params = {'gamma': jnp.ones((1, D_MODEL), jnp.float32),
                   'beta': jnp.zeros((1, D_MODEL), jnp.float32)}
    return layer_params, norm_params


def pack_layer_params(layer_params):
    """One-time weight transforms: fuse QKV, hoist cross-KV across layers,
    fold 1/sqrt(d_head) into Q, cast matmul weights to bf16."""
    scale = 1.0 / (D_HEAD ** 0.5)
    wdt = jnp.bfloat16

    def stack(fn):
        return jnp.stack([fn(p) for p in layer_params])

    # hoisted cross-attention K/V for ALL layers: columns [K_0 V_0 K_1 V_1 ...]
    w_kv_c = jnp.concatenate(
        [jnp.concatenate([p['wk_c'], p['wv_c']], axis=1) for p in layer_params],
        axis=1)                                                   # (D, L*2D)
    b_kv_c = jnp.concatenate(
        [jnp.concatenate([p['bk_c'], p['bv_c']]) for p in layer_params])[None, :]

    return {
        'w_qkv_s': stack(lambda p: jnp.concatenate(
            [p['wq_s'] * scale, p['wk_s'], p['wv_s']], axis=1)).astype(wdt),
        'b_qkv_s': stack(lambda p: jnp.concatenate(
            [p['bq_s'] * scale, p['bk_s'], p['bv_s']])[None, :]),
        'wo_s':    stack(lambda p: p['wo_s']).astype(wdt),
        'bo_s':    stack(lambda p: p['bo_s'][None, :]),
        'wq_c':    stack(lambda p: p['wq_c'] * scale).astype(wdt),
        'bq_c':    stack(lambda p: p['bq_c'][None, :] * scale),
        'w_kv_c':  w_kv_c.astype(wdt),                            # (D, L*2D)
        'b_kv_c':  b_kv_c,                                        # (1, L*2D)
        'wo_c':    stack(lambda p: p['wo_c']).astype(wdt),
        'bo_c':    stack(lambda p: p['bo_c'][None, :]),
        'w_ff1':   stack(lambda p: p['w_ff1']).astype(wdt),
        'b_ff1':   stack(lambda p: p['b_ff1'][None, :]),
        'w_ff2':   stack(lambda p: p['w_ff2']).astype(wdt),
        'b_ff2':   stack(lambda p: p['b_ff2'][None, :]),
        'gamma':   stack(lambda p: jnp.stack([p['g1'], p['g2'], p['g3']])),
        'beta':    stack(lambda p: jnp.stack([p['b1'], p['b2'], p['b3']])),
    }


# --------------------------------------------------------------------------
# pure-JAX reference (un-fused, f32, per-layer weights) for verification
# --------------------------------------------------------------------------
def _ref_layer(x, cross, p):
    def mha(q_in, kv_in, wq, bq, wk, bk, wv, bv, wo, bo):
        q = q_in @ wq + bq
        k = kv_in @ wk + bk
        v = kv_in @ wv + bv
        B, Lq, _ = q.shape
        Lk = k.shape[1]
        qh = q.reshape(B, Lq, N_HEADS, D_HEAD)
        kh = k.reshape(B, Lk, N_HEADS, D_HEAD)
        vh = v.reshape(B, Lk, N_HEADS, D_HEAD)
        s = jnp.einsum('bqhd,bkhd->bhqk', qh, kh) / (D_HEAD ** 0.5)
        a = jax.nn.softmax(s, axis=-1)
        o = jnp.einsum('bhqk,bkhd->bqhd', a, vh).reshape(B, Lq, D_MODEL)
        return o @ wo + bo

    def ln(v, g, b):
        mu = v.mean(-1, keepdims=True)
        var = ((v - mu) ** 2).mean(-1, keepdims=True)
        return (v - mu) * jax.lax.rsqrt(var + EPS) * g + b

    x = ln(x + mha(x, x, p['wq_s'], p['bq_s'], p['wk_s'], p['bk_s'],
                   p['wv_s'], p['bv_s'], p['wo_s'], p['bo_s']),
           p['g1'], p['b1'])
    x = ln(x + mha(x, cross, p['wq_c'], p['bq_c'], p['wk_c'], p['bk_c'],
                   p['wv_c'], p['bv_c'], p['wo_c'], p['bo_c']),
           p['g2'], p['b2'])
    y = jnp.maximum(x @ p['w_ff1'] + p['b_ff1'], 0.0)
    y = y @ p['w_ff2'] + p['b_ff2']
    return ln(x + y, p['g3'], p['b3'])


def _ref_decoder(x, cross, layer_params, norm_params):
    for p in layer_params:
        x = _ref_layer(x, cross, p)
    if norm_params is not None:
        g, b = norm_params['gamma'][0], norm_params['beta'][0]
        mu = x.mean(-1, keepdims=True)
        var = ((x - mu) ** 2).mean(-1, keepdims=True)
        x = (x - mu) * jax.lax.rsqrt(var + EPS) * g + b
    return x


# --------------------------------------------------------------------------
if __name__ == "__main__":
    key = jax.random.PRNGKey(0)
    kx, kc, kp = jax.random.split(key, 3)

    B, LQ, LK = 2, 8, 16
    x = jax.random.normal(kx, (B, LQ, D_MODEL), jnp.float32)
    cross = jax.random.normal(kc, (B, LK, D_MODEL), jnp.float32)

    layer_params, norm_params = init_params(kp)
    packed = pack_layer_params(layer_params)

    out = decoder_forward(x, cross, packed, norm_params, cross_mask=None)
    out = jax.block_until_ready(out)

    ref = _ref_decoder(x, cross, layer_params, norm_params)
    assert out.shape == (B, LQ, D_MODEL)
    # kernel uses bf16 MXU operands (f32 accumulation) + approx reciprocal
    # in softmax, so compare against the f32 reference at a relaxed tolerance.
    assert jnp.allclose(out, ref, atol=2e-2, rtol=2e-2), \
        "mismatch vs JAX reference"

    print("KERNEL_OK")
</pallas_src>

<mosaic_0001>
module attributes {stable_mosaic.version = 11 : i64} {
  func.func @fused_decoder_kernel(%arg0: memref<16x32xf32, #tpu.memory_space<vmem>>, %arg1: memref<32x32xf32, #tpu.memory_space<vmem>>, %arg2: memref<32x32xf32, #tpu.memory_space<vmem>>, %arg3: memref<2x32x96xbf16, #tpu.memory_space<vmem>>, %arg4: memref<2x1x96xf32, #tpu.memory_space<vmem>>, %arg5: memref<2x32x32xbf16, #tpu.memory_space<vmem>>, %arg6: memref<2x1x32xf32, #tpu.memory_space<vmem>>, %arg7: memref<2x32x32xbf16, #tpu.memory_space<vmem>>, %arg8: memref<2x1x32xf32, #tpu.memory_space<vmem>>, %arg9: memref<32x128xbf16, #tpu.memory_space<vmem>>, %arg10: memref<1x128xf32, #tpu.memory_space<vmem>>, %arg11: memref<2x32x32xbf16, #tpu.memory_space<vmem>>, %arg12: memref<2x1x32xf32, #tpu.memory_space<vmem>>, %arg13: memref<2x32x64xbf16, #tpu.memory_space<vmem>>, %arg14: memref<2x1x64xf32, #tpu.memory_space<vmem>>, %arg15: memref<2x64x32xbf16, #tpu.memory_space<vmem>>, %arg16: memref<2x1x32xf32, #tpu.memory_space<vmem>>, %arg17: memref<2x3x32xf32, #tpu.memory_space<vmem>>, %arg18: memref<2x3x32xf32, #tpu.memory_space<vmem>>, %arg19: memref<1x32xf32, #tpu.memory_space<vmem>>, %arg20: memref<1x32xf32, #tpu.memory_space<vmem>>, %arg21: memref<16x32xf32, #tpu.memory_space<vmem>>) attributes {dimension_semantics = [], scalar_prefetch = 0 : i64, scratch_operands = 0 : i64, tpu.core_type = #tpu.core_type<tc>} {
    %c0 = arith.constant 0 : index
    %c0_0 = arith.constant 0 : index
    %0 = vector.load %arg0[%c0, %c0_0] : memref<16x32xf32, #tpu.memory_space<vmem>>, vector<16x32xf32>
    %c0_1 = arith.constant 0 : index
    %c0_2 = arith.constant 0 : index
    %1 = vector.load %arg2[%c0_1, %c0_2] : memref<32x32xf32, #tpu.memory_space<vmem>>, vector<32x32xf32>
    %c0_3 = arith.constant 0 : index
    %c0_4 = arith.constant 0 : index
    %2 = vector.load %arg1[%c0_3, %c0_4] : memref<32x32xf32, #tpu.memory_space<vmem>>, vector<32x32xf32>
    %3 = arith.truncf %2 : vector<32x32xf32> to vector<32x32xbf16>
    %c0_5 = arith.constant 0 : index
    %c0_6 = arith.constant 0 : index
    %4 = vector.load %arg9[%c0_5, %c0_6] : memref<32x128xbf16, #tpu.memory_space<vmem>>, vector<32x128xbf16>
    %cst = arith.constant dense<0.000000e+00> : vector<32x128xf32>
    %5 = tpu.matmul %3, %4, %cst {dimension_numbers = #tpu.dot_dimension_numbers<[1], [0], [0], [1], [0, 0, 1, 1], [], []>} : vector<32x32xbf16>, vector<32x128xbf16>, vector<32x128xf32> -> vector<32x128xf32>
    %c0_7 = arith.constant 0 : index
    %c0_8 = arith.constant 0 : index
    %6 = vector.load %arg10[%c0_7, %c0_8] : memref<1x128xf32, #tpu.memory_space<vmem>>, vector<1x128xf32>
    %7 = vector.broadcast %6 : vector<1x128xf32> to vector<32x128xf32>
    %8 = arith.addf %5, %7 : vector<32x128xf32>
    %c0_9 = arith.constant 0 : index
    %c0_10 = arith.constant 0 : index
    %c0_11 = arith.constant 0 : index
    %9 = vector.load %arg17[%c0_9, %c0_10, %c0_11] : memref<2x3x32xf32, #tpu.memory_space<vmem>>, vector<1x3x32xf32>
    %10 = vector.shape_cast %9 : vector<1x3x32xf32> to vector<3x32xf32>
    %c0_12 = arith.constant 0 : index
    %c0_13 = arith.constant 0 : index
    %c0_14 = arith.constant 0 : index
    %11 = vector.load %arg18[%c0_12, %c0_13, %c0_14] : memref<2x3x32xf32, #tpu.memory_space<vmem>>, vector<1x3x32xf32>
    %12 = vector.shape_cast %11 : vector<1x3x32xf32> to vector<3x32xf32>
    %13 = arith.truncf %0 : vector<16x32xf32> to vector<16x32xbf16>
    %c0_15 = arith.constant 0 : index
    %c0_16 = arith.constant 0 : index
    %c0_17 = arith.constant 0 : index
    %14 = vector.load %arg3[%c0_15, %c0_16, %c0_17] : memref<2x32x96xbf16, #tpu.memory_space<vmem>>, vector<1x32x96xbf16>
    %15 = vector.shape_cast %14 : vector<1x32x96xbf16> to vector<32x96xbf16>
    %cst_18 = arith.constant dense<0.000000e+00> : vector<16x96xf32>
    %16 = tpu.matmul %13, %15, %cst_18 {dimension_numbers = #tpu.dot_dimension_numbers<[1], [0], [0], [1], [0, 0, 1, 1], [], []>} : vector<16x32xbf16>, vector<32x96xbf16>, vector<16x96xf32> -> vector<16x96xf32>
    %c0_19 = arith.constant 0 : index
    %c0_20 = arith.constant 0 : index
    %c0_21 = arith.constant 0 : index
    %17 = vector.load %arg4[%c0_19, %c0_20, %c0_21] : memref<2x1x96xf32, #tpu.memory_space<vmem>>, vector<1x1x96xf32>
    %18 = vector.shape_cast %17 : vector<1x1x96xf32> to vector<1x96xf32>
    %19 = vector.broadcast %18 : vector<1x96xf32> to vector<16x96xf32>
    %20 = arith.addf %16, %19 : vector<16x96xf32>
    %21 = vector.extract_strided_slice %20 {offsets = [0, 0], sizes = [16, 32], strides = [1, 1]} : vector<16x96xf32> to vector<16x32xf32>
    %22 = vector.extract_strided_slice %20 {offsets = [0, 32], sizes = [16, 32], strides = [1, 1]} : vector<16x96xf32> to vector<16x32xf32>
    %23 = vector.shape_cast %22 : vector<16x32xf32> to vector<2x8x32xf32>
    %24 = vector.extract_strided_slice %20 {offsets = [0, 64], sizes = [16, 32], strides = [1, 1]} : vector<16x96xf32> to vector<16x32xf32>
    %25 = vector.shape_cast %24 : vector<16x32xf32> to vector<2x8x32xf32>
    %26 = vector.shape_cast %21 : vector<16x32xf32> to vector<2x8x32xf32>
    %27 = tpu.concatenate %26, %26, %26, %26 in 1 : vector<2x8x32xf32>, vector<2x8x32xf32>, vector<2x8x32xf32>, vector<2x8x32xf32> -> vector<2x32x32xf32>
    %28 = vector.shape_cast %1 : vector<32x32xf32> to vector<1x32x32xf32>
    %29 = vector.broadcast %28 : vector<1x32x32xf32> to vector<2x32x32xf32>
    %30 = arith.mulf %27, %29 : vector<2x32x32xf32>
    %31 = arith.truncf %30 : vector<2x32x32xf32> to vector<2x32x32xbf16>
    %32 = arith.truncf %23 : vector<2x8x32xf32> to vector<2x8x32xbf16>
    %33 = arith.truncf %25 : vector<2x8x32xf32> to vector<2x8x32xbf16>
    "tpu.trace_start"() <{level = 10 : i32, message = "bjd,bkd->bjk"}> : () -> ()
    %cst_22 = arith.constant dense<0.000000e+00> : vector<2x32x8xf32>
    %34 = tpu.matmul %31, %32, %cst_22 {dimension_numbers = #tpu.dot_dimension_numbers<[2], [2], [1], [1], [0, 0, 0, 1, 1, 1], [0], [0]>} : vector<2x32x32xbf16>, vector<2x8x32xbf16>, vector<2x32x8xf32> -> vector<2x32x8xf32>
    "tpu.trace_stop"() : () -> ()
    %cst_23 = arith.constant dense<0xFF800000> : vector<2x32xf32>
    %35 = vector.multi_reduction <maximumf>, %34, %cst_23 [2] : vector<2x32x8xf32> to vector<2x32xf32>
    %36 = vector.shape_cast %35 : vector<2x32xf32> to vector<2x32x1xf32>
    %37 = vector.broadcast %36 : vector<2x32x1xf32> to vector<2x32x8xf32>
    %38 = arith.subf %34, %37 : vector<2x32x8xf32>
    %39 = math.exp %38 : vector<2x32x8xf32>
    %cst_24 = arith.constant dense<0.000000e+00> : vector<2x32xf32>
    %40 = vector.multi_reduction <add>, %39, %cst_24 [2] : vector<2x32x8xf32> to vector<2x32xf32>
    %41 = vector.shape_cast %40 : vector<2x32xf32> to vector<2x32x1xf32>
    %42 = tpu.reciprocal %41 {approx = true} : vector<2x32x1xf32> -> vector<2x32x1xf32>
    %43 = vector.broadcast %42 : vector<2x32x1xf32> to vector<2x32x8xf32>
    %44 = arith.mulf %39, %43 : vector<2x32x8xf32>
    %45 = arith.truncf %44 : vector<2x32x8xf32> to vector<2x32x8xbf16>
    "tpu.trace_start"() <{level = 10 : i32, message = "bjk,bkd->bjd"}> : () -> ()
    %cst_25 = arith.constant dense<0.000000e+00> : vector<2x32x32xf32>
    %46 = tpu.matmul %45, %33, %cst_25 {dimension_numbers = #tpu.dot_dimension_numbers<[2], [1], [1], [2], [0, 0, 0, 1, 1, 2], [0], [0]>} : vector<2x32x8xbf16>, vector<2x8x32xbf16>, vector<2x32x32xf32> -> vector<2x32x32xf32>
    "tpu.trace_stop"() : () -> ()
    %47 = vector.shape_cast %1 : vector<32x32xf32> to vector<1x32x32xf32>
    %48 = vector.broadcast %47 : vector<1x32x32xf32> to vector<2x32x32xf32>
    %49 = arith.mulf %46, %48 : vector<2x32x32xf32>
    %50 = vector.extract_strided_slice %49 {offsets = [0, 0, 0], sizes = [2, 8, 32], strides = [1, 1, 1]} : vector<2x32x32xf32> to vector<2x8x32xf32>
    %51 = vector.extract_strided_slice %49 {offsets = [0, 8, 0], sizes = [2, 8, 32], strides = [1, 1, 1]} : vector<2x32x32xf32> to vector<2x8x32xf32>
    %52 = arith.addf %50, %51 : vector<2x8x32xf32>
    %53 = vector.extract_strided_slice %49 {offsets = [0, 16, 0], sizes = [2, 8, 32], strides = [1, 1, 1]} : vector<2x32x32xf32> to vector<2x8x32xf32>
    %54 = arith.addf %52, %53 : vector<2x8x32xf32>
    %55 = vector.extract_strided_slice %49 {offsets = [0, 24, 0], sizes = [2, 8, 32], strides = [1, 1, 1]} : vector<2x32x32xf32> to vector<2x8x32xf32>
    %56 = arith.addf %54, %55 : vector<2x8x32xf32>
    %57 = vector.shape_cast %56 : vector<2x8x32xf32> to vector<16x32xf32>
    %58 = arith.truncf %57 : vector<16x32xf32> to vector<16x32xbf16>
    %c0_26 = arith.constant 0 : index
    %c0_27 = arith.constant 0 : index
    %c0_28 = arith.constant 0 : index
    %59 = vector.load %arg5[%c0_26, %c0_27, %c0_28] : memref<2x32x32xbf16, #tpu.memory_space<vmem>>, vector<1x32x32xbf16>
    %60 = vector.shape_cast %59 : vector<1x32x32xbf16> to vector<32x32xbf16>
    %cst_29 = arith.constant dense<0.000000e+00> : vector<16x32xf32>
    %61 = tpu.matmul %58, %60, %cst_29 {dimension_numbers = #tpu.dot_dimension_numbers<[1], [0], [0], [1], [0, 0, 1, 1], [], []>} : vector<16x32xbf16>, vector<32x32xbf16>, vector<16x32xf32> -> vector<16x32xf32>
    %c0_30 = arith.constant 0 : index
    %c0_31 = arith.constant 0 : index
    %c0_32 = arith.constant 0 : index
    %62 = vector.load %arg6[%c0_30, %c0_31, %c0_32] : memref<2x1x32xf32, #tpu.memory_space<vmem>>, vector<1x1x32xf32>
    %63 = vector.shape_cast %62 : vector<1x1x32xf32> to vector<1x32xf32>
    %64 = vector.broadcast %63 : vector<1x32xf32> to vector<16x32xf32>
    %65 = arith.addf %61, %64 : vector<16x32xf32>
    %66 = arith.addf %0, %65 : vector<16x32xf32>
    %67 = vector.extract_strided_slice %10 {offsets = [0, 0], sizes = [1, 32], strides = [1, 1]} : vector<3x32xf32> to vector<1x32xf32>
    %68 = vector.extract_strided_slice %12 {offsets = [0, 0], sizes = [1, 32], strides = [1, 1]} : vector<3x32xf32> to vector<1x32xf32>
    %cst_33 = arith.constant dense<0.000000e+00> : vector<16xf32>
    %69 = vector.multi_reduction <add>, %66, %cst_33 [1] : vector<16x32xf32> to vector<16xf32>
    %70 = vector.shape_cast %69 : vector<16xf32> to vector<16x1xf32>
    %cst_34 = arith.constant 3.200000e+01 : f32
    %71 = vector.broadcast %cst_34 : f32 to vector<16x1xf32>
    %72 = arith.divf %70, %71 : vector<16x1xf32>
    %73 = vector.broadcast %72 : vector<16x1xf32> to vector<16x32xf32>
    %74 = arith.subf %66, %73 : vector<16x32xf32>
    %75 = arith.mulf %74, %74 : vector<16x32xf32>
    %cst_35 = arith.constant dense<0.000000e+00> : vector<16xf32>
    %76 = vector.multi_reduction <add>, %75, %cst_35 [1] : vector<16x32xf32> to vector<16xf32>
    %77 = vector.shape_cast %76 : vector<16xf32> to vector<16x1xf32>
    %cst_36 = arith.constant 3.200000e+01 : f32
    %78 = vector.broadcast %cst_36 : f32 to vector<16x1xf32>
    %79 = arith.divf %77, %78 : vector<16x1xf32>
    %80 = vector.broadcast %72 : vector<16x1xf32> to vector<16x32xf32>
    %81 = arith.subf %66, %80 : vector<16x32xf32>
    %cst_37 = arith.constant 9.99999974E-6 : f32
    %82 = vector.broadcast %cst_37 : f32 to vector<16x1xf32>
    %83 = arith.addf %79, %82 : vector<16x1xf32>
    %84 = math.rsqrt %83 : vector<16x1xf32>
    %85 = vector.broadcast %84 : vector<16x1xf32> to vector<16x32xf32>
    %86 = arith.mulf %81, %85 : vector<16x32xf32>
    %87 = vector.broadcast %67 : vector<1x32xf32> to vector<16x32xf32>
    %88 = arith.mulf %86, %87 : vector<16x32xf32>
    %89 = vector.broadcast %68 : vector<1x32xf32> to vector<16x32xf32>
    %90 = arith.addf %88, %89 : vector<16x32xf32>
    %91 = arith.truncf %90 : vector<16x32xf32> to vector<16x32xbf16>
    %c0_38 = arith.constant 0 : index
    %c0_39 = arith.constant 0 : index
    %c0_40 = arith.constant 0 : index
    %92 = vector.load %arg7[%c0_38, %c0_39, %c0_40] : memref<2x32x32xbf16, #tpu.memory_space<vmem>>, vector<1x32x32xbf16>
    %93 = vector.shape_cast %92 : vector<1x32x32xbf16> to vector<32x32xbf16>
    %cst_41 = arith.constant dense<0.000000e+00> : vector<16x32xf32>
    %94 = tpu.matmul %91, %93, %cst_41 {dimension_numbers = #tpu.dot_dimension_numbers<[1], [0], [0], [1], [0, 0, 1, 1], [], []>} : vector<16x32xbf16>, vector<32x32xbf16>, vector<16x32xf32> -> vector<16x32xf32>
    %c0_42 = arith.constant 0 : index
    %c0_43 = arith.constant 0 : index
    %c0_44 = arith.constant 0 : index
    %95 = vector.load %arg8[%c0_42, %c0_43, %c0_44] : memref<2x1x32xf32, #tpu.memory_space<vmem>>, vector<1x1x32xf32>
    %96 = vector.shape_cast %95 : vector<1x1x32xf32> to vector<1x32xf32>
    %97 = vector.broadcast %96 : vector<1x32xf32> to vector<16x32xf32>
    %98 = arith.addf %94, %97 : vector<16x32xf32>
    %99 = vector.extract_strided_slice %8 {offsets = [0, 0], sizes = [32, 32], strides = [1, 1]} : vector<32x128xf32> to vector<32x32xf32>
    %100 = vector.shape_cast %99 : vector<32x32xf32> to vector<2x16x32xf32>
    %101 = vector.extract_strided_slice %8 {offsets = [0, 32], sizes = [32, 32], strides = [1, 1]} : vector<32x128xf32> to vector<32x32xf32>
    %102 = vector.shape_cast %101 : vector<32x32xf32> to vector<2x16x32xf32>
    %103 = vector.shape_cast %98 : vector<16x32xf32> to vector<2x8x32xf32>
    %104 = tpu.concatenate %103, %103, %103, %103 in 1 : vector<2x8x32xf32>, vector<2x8x32xf32>, vector<2x8x32xf32>, vector<2x8x32xf32> -> vector<2x32x32xf32>
    %105 = vector.shape_cast %1 : vector<32x32xf32> to vector<1x32x32xf32>
    %106 = vector.broadcast %105 : vector<1x32x32xf32> to vector<2x32x32xf32>
    %107 = arith.mulf %104, %106 : vector<2x32x32xf32>
    %108 = arith.truncf %107 : vector<2x32x32xf32> to vector<2x32x32xbf16>
    %109 = arith.truncf %100 : vector<2x16x32xf32> to vector<2x16x32xbf16>
    %110 = arith.truncf %102 : vector<2x16x32xf32> to vector<2x16x32xbf16>
    "tpu.trace_start"() <{level = 10 : i32, message = "bjd,bkd->bjk"}> : () -> ()
    %cst_45 = arith.constant dense<0.000000e+00> : vector<2x32x16xf32>
    %111 = tpu.matmul %108, %109, %cst_45 {dimension_numbers = #tpu.dot_dimension_numbers<[2], [2], [1], [1], [0, 0, 0, 1, 1, 1], [0], [0]>} : vector<2x32x32xbf16>, vector<2x16x32xbf16>, vector<2x32x16xf32> -> vector<2x32x16xf32>
    "tpu.trace_stop"() : () -> ()
    %cst_46 = arith.constant dense<0xFF800000> : vector<2x32xf32>
    %112 = vector.multi_reduction <maximumf>, %111, %cst_46 [2] : vector<2x32x16xf32> to vector<2x32xf32>
    %113 = vector.shape_cast %112 : vector<2x32xf32> to vector<2x32x1xf32>
    %114 = vector.broadcast %113 : vector<2x32x1xf32> to vector<2x32x16xf32>
    %115 = arith.subf %111, %114 : vector<2x32x16xf32>
    %116 = math.exp %115 : vector<2x32x16xf32>
    %cst_47 = arith.constant dense<0.000000e+00> : vector<2x32xf32>
    %117 = vector.multi_reduction <add>, %116, %cst_47 [2] : vector<2x32x16xf32> to vector<2x32xf32>
    %118 = vector.shape_cast %117 : vector<2x32xf32> to vector<2x32x1xf32>
    %119 = tpu.reciprocal %118 {approx = true} : vector<2x32x1xf32> -> vector<2x32x1xf32>
    %120 = vector.broadcast %119 : vector<2x32x1xf32> to vector<2x32x16xf32>
    %121 = arith.mulf %116, %120 : vector<2x32x16xf32>
    %122 = arith.truncf %121 : vector<2x32x16xf32> to vector<2x32x16xbf16>
    "tpu.trace_start"() <{level = 10 : i32, message = "bjk,bkd->bjd"}> : () -> ()
    %cst_48 = arith.constant dense<0.000000e+00> : vector<2x32x32xf32>
    %123 = tpu.matmul %122, %110, %cst_48 {dimension_numbers = #tpu.dot_dimension_numbers<[2], [1], [1], [2], [0, 0, 0, 1, 1, 2], [0], [0]>} : vector<2x32x16xbf16>, vector<2x16x32xbf16>, vector<2x32x32xf32> -> vector<2x32x32xf32>
    "tpu.trace_stop"() : () -> ()
    %124 = vector.shape_cast %1 : vector<32x32xf32> to vector<1x32x32xf32>
    %125 = vector.broadcast %124 : vector<1x32x32xf32> to vector<2x32x32xf32>
    %126 = arith.mulf %123, %125 : vector<2x32x32xf32>
    %127 = vector.extract_strided_slice %126 {offsets = [0, 0, 0], sizes = [2, 8, 32], strides = [1, 1, 1]} : vector<2x32x32xf32> to vector<2x8x32xf32>
    %128 = vector.extract_strided_slice %126 {offsets = [0, 8, 0], sizes = [2, 8, 32], strides = [1, 1, 1]} : vector<2x32x32xf32> to vector<2x8x32xf32>
    %129 = arith.addf %127, %128 : vector<2x8x32xf32>
    %130 = vector.extract_strided_slice %126 {offsets = [0, 16, 0], sizes = [2, 8, 32], strides = [1, 1, 1]} : vector<2x32x32xf32> to vector<2x8x32xf32>
    %131 = arith.addf %129, %130 : vector<2x8x32xf32>
    %132 = vector.extract_strided_slice %126 {offsets = [0, 24, 0], sizes = [2, 8, 32], strides = [1, 1, 1]} : vector<2x32x32xf32> to vector<2x8x32xf32>
    %133 = arith.addf %131, %132 : vector<2x8x32xf32>
    %134 = vector.shape_cast %133 : vector<2x8x32xf32> to vector<16x32xf32>
    %135 = arith.truncf %134 : vector<16x32xf32> to vector<16x32xbf16>
    %c0_49 = arith.constant 0 : index
    %c0_50 = arith.constant 0 : index
    %c0_51 = arith.constant 0 : index
    %136 = vector.load %arg11[%c0_49, %c0_50, %c0_51] : memref<2x32x32xbf16, #tpu.memory_space<vmem>>, vector<1x32x32xbf16>
    %137 = vector.shape_cast %136 : vector<1x32x32xbf16> to vector<32x32xbf16>
    %cst_52 = arith.constant dense<0.000000e+00> : vector<16x32xf32>
    %138 = tpu.matmul %135, %137, %cst_52 {dimension_numbers = #tpu.dot_dimension_numbers<[1], [0], [0], [1], [0, 0, 1, 1], [], []>} : vector<16x32xbf16>, vector<32x32xbf16>, vector<16x32xf32> -> vector<16x32xf32>
    %c0_53 = arith.constant 0 : index
    %c0_54 = arith.constant 0 : index
    %c0_55 = arith.constant 0 : index
    %139 = vector.load %arg12[%c0_53, %c0_54, %c0_55] : memref<2x1x32xf32, #tpu.memory_space<vmem>>, vector<1x1x32xf32>
    %140 = vector.shape_cast %139 : vector<1x1x32xf32> to vector<1x32xf32>
    %141 = vector.broadcast %140 : vector<1x32xf32> to vector<16x32xf32>
    %142 = arith.addf %138, %141 : vector<16x32xf32>
    %143 = arith.addf %90, %142 : vector<16x32xf32>
    %144 = vector.extract_strided_slice %10 {offsets = [1, 0], sizes = [1, 32], strides = [1, 1]} : vector<3x32xf32> to vector<1x32xf32>
    %145 = vector.extract_strided_slice %12 {offsets = [1, 0], sizes = [1, 32], strides = [1, 1]} : vector<3x32xf32> to vector<1x32xf32>
    %cst_56 = arith.constant dense<0.000000e+00> : vector<16xf32>
    %146 = vector.multi_reduction <add>, %143, %cst_56 [1] : vector<16x32xf32> to vector<16xf32>
    %147 = vector.shape_cast %146 : vector<16xf32> to vector<16x1xf32>
    %cst_57 = arith.constant 3.200000e+01 : f32
    %148 = vector.broadcast %cst_57 : f32 to vector<16x1xf32>
    %149 = arith.divf %147, %148 : vector<16x1xf32>
    %150 = vector.broadcast %149 : vector<16x1xf32> to vector<16x32xf32>
    %151 = arith.subf %143, %150 : vector<16x32xf32>
    %152 = arith.mulf %151, %151 : vector<16x32xf32>
    %cst_58 = arith.constant dense<0.000000e+00> : vector<16xf32>
    %153 = vector.multi_reduction <add>, %152, %cst_58 [1] : vector<16x32xf32> to vector<16xf32>
    %154 = vector.shape_cast %153 : vector<16xf32> to vector<16x1xf32>
    %cst_59 = arith.constant 3.200000e+01 : f32
    %155 = vector.broadcast %cst_59 : f32 to vector<16x1xf32>
    %156 = arith.divf %154, %155 : vector<16x1xf32>
    %157 = vector.broadcast %149 : vector<16x1xf32> to vector<16x32xf32>
    %158 = arith.subf %143, %157 : vector<16x32xf32>
    %cst_60 = arith.constant 9.99999974E-6 : f32
    %159 = vector.broadcast %cst_60 : f32 to vector<16x1xf32>
    %160 = arith.addf %156, %159 : vector<16x1xf32>
    %161 = math.rsqrt %160 : vector<16x1xf32>
    %162 = vector.broadcast %161 : vector<16x1xf32> to vector<16x32xf32>
    %163 = arith.mulf %158, %162 : vector<16x32xf32>
    %164 = vector.broadcast %144 : vector<1x32xf32> to vector<16x32xf32>
    %165 = arith.mulf %163, %164 : vector<16x32xf32>
    %166 = vector.broadcast %145 : vector<1x32xf32> to vector<16x32xf32>
    %167 = arith.addf %165, %166 : vector<16x32xf32>
    %168 = arith.truncf %167 : vector<16x32xf32> to vector<16x32xbf16>
    %c0_61 = arith.constant 0 : index
    %c0_62 = arith.constant 0 : index
    %c0_63 = arith.constant 0 : index
    %169 = vector.load %arg13[%c0_61, %c0_62, %c0_63] : memref<2x32x64xbf16, #tpu.memory_space<vmem>>, vector<1x32x64xbf16>
    %170 = vector.shape_cast %169 : vector<1x32x64xbf16> to vector<32x64xbf16>
    %cst_64 = arith.constant dense<0.000000e+00> : vector<16x64xf32>
    %171 = tpu.matmul %168, %170, %cst_64 {dimension_numbers = #tpu.dot_dimension_numbers<[1], [0], [0], [1], [0, 0, 1, 1], [], []>} : vector<16x32xbf16>, vector<32x64xbf16>, vector<16x64xf32> -> vector<16x64xf32>
    %c0_65 = arith.constant 0 : index
    %c0_66 = arith.constant 0 : index
    %c0_67 = arith.constant 0 : index
    %172 = vector.load %arg14[%c0_65, %c0_66, %c0_67] : memref<2x1x64xf32, #tpu.memory_space<vmem>>, vector<1x1x64xf32>
    %173 = vector.shape_cast %172 : vector<1x1x64xf32> to vector<1x64xf32>
    %174 = vector.broadcast %173 : vector<1x64xf32> to vector<16x64xf32>
    %175 = arith.addf %171, %174 : vector<16x64xf32>
    %cst_68 = arith.constant 0.000000e+00 : f32
    %176 = vector.broadcast %cst_68 : f32 to vector<16x64xf32>
    %177 = arith.maximumf %175, %176 : vector<16x64xf32>
    %178 = arith.truncf %177 : vector<16x64xf32> to vector<16x64xbf16>
    %c0_69 = arith.constant 0 : index
    %c0_70 = arith.constant 0 : index
    %c0_71 = arith.constant 0 : index
    %179 = vector.load %arg15[%c0_69, %c0_70, %c0_71] : memref<2x64x32xbf16, #tpu.memory_space<vmem>>, vector<1x64x32xbf16>
    %180 = vector.shape_cast %179 : vector<1x64x32xbf16> to vector<64x32xbf16>
    %cst_72 = arith.constant dense<0.000000e+00> : vector<16x32xf32>
    %181 = tpu.matmul %178, %180, %cst_72 {dimension_numbers = #tpu.dot_dimension_numbers<[1], [0], [0], [1], [0, 0, 1, 1], [], []>} : vector<16x64xbf16>, vector<64x32xbf16>, vector<16x32xf32> -> vector<16x32xf32>
    %c0_73 = arith.constant 0 : index
    %c0_74 = arith.constant 0 : index
    %c0_75 = arith.constant 0 : index
    %182 = vector.load %arg16[%c0_73, %c0_74, %c0_75] : memref<2x1x32xf32, #tpu.memory_space<vmem>>, vector<1x1x32xf32>
    %183 = vector.shape_cast %182 : vector<1x1x32xf32> to vector<1x32xf32>
    %184 = vector.broadcast %183 : vector<1x32xf32> to vector<16x32xf32>
    %185 = arith.addf %181, %184 : vector<16x32xf32>
    %186 = arith.addf %167, %185 : vector<16x32xf32>
    %187 = vector.extract_strided_slice %10 {offsets = [2, 0], sizes = [1, 32], strides = [1, 1]} : vector<3x32xf32> to vector<1x32xf32>
    %188 = vector.extract_strided_slice %12 {offsets = [2, 0], sizes = [1, 32], strides = [1, 1]} : vector<3x32xf32> to vector<1x32xf32>
    %cst_76 = arith.constant dense<0.000000e+00> : vector<16xf32>
    %189 = vector.multi_reduction <add>, %186, %cst_76 [1] : vector<16x32xf32> to vector<16xf32>
    %190 = vector.shape_cast %189 : vector<16xf32> to vector<16x1xf32>
    %cst_77 = arith.constant 3.200000e+01 : f32
    %191 = vector.broadcast %cst_77 : f32 to vector<16x1xf32>
    %192 = arith.divf %190, %191 : vector<16x1xf32>
    %193 = vector.broadcast %192 : vector<16x1xf32> to vector<16x32xf32>
    %194 = arith.subf %186, %193 : vector<16x32xf32>
    %195 = arith.mulf %194, %194 : vector<16x32xf32>
    %cst_78 = arith.constant dense<0.000000e+00> : vector<16xf32>
    %196 = vector.multi_reduction <add>, %195, %cst_78 [1] : vector<16x32xf32> to vector<16xf32>
    %197 = vector.shape_cast %196 : vector<16xf32> to vector<16x1xf32>
    %cst_79 = arith.constant 3.200000e+01 : f32
    %198 = vector.broadcast %cst_79 : f32 to vector<16x1xf32>
    %199 = arith.divf %197, %198 : vector<16x1xf32>
    %200 = vector.broadcast %192 : vector<16x1xf32> to vector<16x32xf32>
    %201 = arith.subf %186, %200 : vector<16x32xf32>
    %cst_80 = arith.constant 9.99999974E-6 : f32
    %202 = vector.broadcast %cst_80 : f32 to vector<16x1xf32>
    %203 = arith.addf %199, %202 : vector<16x1xf32>
    %204 = math.rsqrt %203 : vector<16x1xf32>
    %205 = vector.broadcast %204 : vector<16x1xf32> to vector<16x32xf32>
    %206 = arith.mulf %201, %205 : vector<16x32xf32>
    %207 = vector.broadcast %187 : vector<1x32xf32> to vector<16x32xf32>
    %208 = arith.mulf %206, %207 : vector<16x32xf32>
    %209 = vector.broadcast %188 : vector<1x32xf32> to vector<16x32xf32>
    %210 = arith.addf %208, %209 : vector<16x32xf32>
    %c1 = arith.constant 1 : index
    %c0_81 = arith.constant 0 : index
    %c0_82 = arith.constant 0 : index
    %211 = vector.load %arg17[%c1, %c0_81, %c0_82] : memref<2x3x32xf32, #tpu.memory_space<vmem>>, vector<1x3x32xf32>
    %212 = vector.shape_cast %211 : vector<1x3x32xf32> to vector<3x32xf32>
    %c1_83 = arith.constant 1 : index
    %c0_84 = arith.constant 0 : index
    %c0_85 = arith.constant 0 : index
    %213 = vector.load %arg18[%c1_83, %c0_84, %c0_85] : memref<2x3x32xf32, #tpu.memory_space<vmem>>, vector<1x3x32xf32>
    %214 = vector.shape_cast %213 : vector<1x3x32xf32> to vector<3x32xf32>
    %215 = arith.truncf %210 : vector<16x32xf32> to vector<16x32xbf16>
    %c1_86 = arith.constant 1 : index
    %c0_87 = arith.constant 0 : index
    %c0_88 = arith.constant 0 : index
    %216 = vector.load %arg3[%c1_86, %c0_87, %c0_88] : memref<2x32x96xbf16, #tpu.memory_space<vmem>>, vector<1x32x96xbf16>
    %217 = vector.shape_cast %216 : vector<1x32x96xbf16> to vector<32x96xbf16>
    %cst_89 = arith.constant dense<0.000000e+00> : vector<16x96xf32>
    %218 = tpu.matmul %215, %217, %cst_89 {dimension_numbers = #tpu.dot_dimension_numbers<[1], [0], [0], [1], [0, 0, 1, 1], [], []>} : vector<16x32xbf16>, vector<32x96xbf16>, vector<16x96xf32> -> vector<16x96xf32>
    %c1_90 = arith.constant 1 : index
    %c0_91 = arith.constant 0 : index
    %c0_92 = arith.constant 0 : index
    %219 = vector.load %arg4[%c1_90, %c0_91, %c0_92] : memref<2x1x96xf32, #tpu.memory_space<vmem>>, vector<1x1x96xf32>
    %220 = vector.shape_cast %219 : vector<1x1x96xf32> to vector<1x96xf32>
    %221 = vector.broadcast %220 : vector<1x96xf32> to vector<16x96xf32>
    %222 = arith.addf %218, %221 : vector<16x96xf32>
    %223 = vector.extract_strided_slice %222 {offsets = [0, 0], sizes = [16, 32], strides = [1, 1]} : vector<16x96xf32> to vector<16x32xf32>
    %224 = vector.extract_strided_slice %222 {offsets = [0, 32], sizes = [16, 32], strides = [1, 1]} : vector<16x96xf32> to vector<16x32xf32>
    %225 = vector.shape_cast %224 : vector<16x32xf32> to vector<2x8x32xf32>
    %226 = vector.extract_strided_slice %222 {offsets = [0, 64], sizes = [16, 32], strides = [1, 1]} : vector<16x96xf32> to vector<16x32xf32>
    %227 = vector.shape_cast %226 : vector<16x32xf32> to vector<2x8x32xf32>
    %228 = vector.shape_cast %223 : vector<16x32xf32> to vector<2x8x32xf32>
    %229 = tpu.concatenate %228, %228, %228, %228 in 1 : vector<2x8x32xf32>, vector<2x8x32xf32>, vector<2x8x32xf32>, vector<2x8x32xf32> -> vector<2x32x32xf32>
    %230 = vector.shape_cast %1 : vector<32x32xf32> to vector<1x32x32xf32>
    %231 = vector.broadcast %230 : vector<1x32x32xf32> to vector<2x32x32xf32>
    %232 = arith.mulf %229, %231 : vector<2x32x32xf32>
    %233 = arith.truncf %232 : vector<2x32x32xf32> to vector<2x32x32xbf16>
    %234 = arith.truncf %225 : vector<2x8x32xf32> to vector<2x8x32xbf16>
    %235 = arith.truncf %227 : vector<2x8x32xf32> to vector<2x8x32xbf16>
    "tpu.trace_start"() <{level = 10 : i32, message = "bjd,bkd->bjk"}> : () -> ()
    %cst_93 = arith.constant dense<0.000000e+00> : vector<2x32x8xf32>
    %236 = tpu.matmul %233, %234, %cst_93 {dimension_numbers = #tpu.dot_dimension_numbers<[2], [2], [1], [1], [0, 0, 0, 1, 1, 1], [0], [0]>} : vector<2x32x32xbf16>, vector<2x8x32xbf16>, vector<2x32x8xf32> -> vector<2x32x8xf32>
    "tpu.trace_stop"() : () -> ()
    %cst_94 = arith.constant dense<0xFF800000> : vector<2x32xf32>
    %237 = vector.multi_reduction <maximumf>, %236, %cst_94 [2] : vector<2x32x8xf32> to vector<2x32xf32>
    %238 = vector.shape_cast %237 : vector<2x32xf32> to vector<2x32x1xf32>
    %239 = vector.broadcast %238 : vector<2x32x1xf32> to vector<2x32x8xf32>
    %240 = arith.subf %236, %239 : vector<2x32x8xf32>
    %241 = math.exp %240 : vector<2x32x8xf32>
    %cst_95 = arith.constant dense<0.000000e+00> : vector<2x32xf32>
    %242 = vector.multi_reduction <add>, %241, %cst_95 [2] : vector<2x32x8xf32> to vector<2x32xf32>
    %243 = vector.shape_cast %242 : vector<2x32xf32> to vector<2x32x1xf32>
    %244 = tpu.reciprocal %243 {approx = true} : vector<2x32x1xf32> -> vector<2x32x1xf32>
    %245 = vector.broadcast %244 : vector<2x32x1xf32> to vector<2x32x8xf32>
    %246 = arith.mulf %241, %245 : vector<2x32x8xf32>
    %247 = arith.truncf %246 : vector<2x32x8xf32> to vector<2x32x8xbf16>
    "tpu.trace_start"() <{level = 10 : i32, message = "bjk,bkd->bjd"}> : () -> ()
    %cst_96 = arith.constant dense<0.000000e+00> : vector<2x32x32xf32>
    %248 = tpu.matmul %247, %235, %cst_96 {dimension_numbers = #tpu.dot_dimension_numbers<[2], [1], [1], [2], [0, 0, 0, 1, 1, 2], [0], [0]>} : vector<2x32x8xbf16>, vector<2x8x32xbf16>, vector<2x32x32xf32> -> vector<2x32x32xf32>
    "tpu.trace_stop"() : () -> ()
    %249 = vector.shape_cast %1 : vector<32x32xf32> to vector<1x32x32xf32>
    %250 = vector.broadcast %249 : vector<1x32x32xf32> to vector<2x32x32xf32>
    %251 = arith.mulf %248, %250 : vector<2x32x32xf32>
    %252 = vector.extract_strided_slice %251 {offsets = [0, 0, 0], sizes = [2, 8, 32], strides = [1, 1, 1]} : vector<2x32x32xf32> to vector<2x8x32xf32>
    %253 = vector.extract_strided_slice %251 {offsets = [0, 8, 0], sizes = [2, 8, 32], strides = [1, 1, 1]} : vector<2x32x32xf32> to vector<2x8x32xf32>
    %254 = arith.addf %252, %253 : vector<2x8x32xf32>
    %255 = vector.extract_strided_slice %251 {offsets = [0, 16, 0], sizes = [2, 8, 32], strides = [1, 1, 1]} : vector<2x32x32xf32> to vector<2x8x32xf32>
    %256 = arith.addf %254, %255 : vector<2x8x32xf32>
    %257 = vector.extract_strided_slice %251 {offsets = [0, 24, 0], sizes = [2, 8, 32], strides = [1, 1, 1]} : vector<2x32x32xf32> to vector<2x8x32xf32>
    %258 = arith.addf %256, %257 : vector<2x8x32xf32>
    %259 = vector.shape_cast %258 : vector<2x8x32xf32> to vector<16x32xf32>
    %260 = arith.truncf %259 : vector<16x32xf32> to vector<16x32xbf16>
    %c1_97 = arith.constant 1 : index
    %c0_98 = arith.constant 0 : index
    %c0_99 = arith.constant 0 : index
    %261 = vector.load %arg5[%c1_97, %c0_98, %c0_99] : memref<2x32x32xbf16, #tpu.memory_space<vmem>>, vector<1x32x32xbf16>
    %262 = vector.shape_cast %261 : vector<1x32x32xbf16> to vector<32x32xbf16>
    %cst_100 = arith.constant dense<0.000000e+00> : vector<16x32xf32>
    %263 = tpu.matmul %260, %262, %cst_100 {dimension_numbers = #tpu.dot_dimension_numbers<[1], [0], [0], [1], [0, 0, 1, 1], [], []>} : vector<16x32xbf16>, vector<32x32xbf16>, vector<16x32xf32> -> vector<16x32xf32>
    %c1_101 = arith.constant 1 : index
    %c0_102 = arith.constant 0 : index
    %c0_103 = arith.constant 0 : index
    %264 = vector.load %arg6[%c1_101, %c0_102, %c0_103] : memref<2x1x32xf32, #tpu.memory_space<vmem>>, vector<1x1x32xf32>
    %265 = vector.shape_cast %264 : vector<1x1x32xf32> to vector<1x32xf32>
    %266 = vector.broadcast %265 : vector<1x32xf32> to vector<16x32xf32>
    %267 = arith.addf %263, %266 : vector<16x32xf32>
    %268 = arith.addf %210, %267 : vector<16x32xf32>
    %269 = vector.extract_strided_slice %212 {offsets = [0, 0], sizes = [1, 32], strides = [1, 1]} : vector<3x32xf32> to vector<1x32xf32>
    %270 = vector.extract_strided_slice %214 {offsets = [0, 0], sizes = [1, 32], strides = [1, 1]} : vector<3x32xf32> to vector<1x32xf32>
    %cst_104 = arith.constant dense<0.000000e+00> : vector<16xf32>
    %271 = vector.multi_reduction <add>, %268, %cst_104 [1] : vector<16x32xf32> to vector<16xf32>
    %272 = vector.shape_cast %271 : vector<16xf32> to vector<16x1xf32>
    %cst_105 = arith.constant 3.200000e+01 : f32
    %273 = vector.broadcast %cst_105 : f32 to vector<16x1xf32>
    %274 = arith.divf %272, %273 : vector<16x1xf32>
    %275 = vector.broadcast %274 : vector<16x1xf32> to vector<16x32xf32>
    %276 = arith.subf %268, %275 : vector<16x32xf32>
    %277 = arith.mulf %276, %276 : vector<16x32xf32>
    %cst_106 = arith.constant dense<0.000000e+00> : vector<16xf32>
    %278 = vector.multi_reduction <add>, %277, %cst_106 [1] : vector<16x32xf32> to vector<16xf32>
    %279 = vector.shape_cast %278 : vector<16xf32> to vector<16x1xf32>
    %cst_107 = arith.constant 3.200000e+01 : f32
    %280 = vector.broadcast %cst_107 : f32 to vector<16x1xf32>
    %281 = arith.divf %279, %280 : vector<16x1xf32>
    %282 = vector.broadcast %274 : vector<16x1xf32> to vector<16x32xf32>
    %283 = arith.subf %268, %282 : vector<16x32xf32>
    %cst_108 = arith.constant 9.99999974E-6 : f32
    %284 = vector.broadcast %cst_108 : f32 to vector<16x1xf32>
    %285 = arith.addf %281, %284 : vector<16x1xf32>
    %286 = math.rsqrt %285 : vector<16x1xf32>
    %287 = vector.broadcast %286 : vector<16x1xf32> to vector<16x32xf32>
    %288 = arith.mulf %283, %287 : vector<16x32xf32>
    %289 = vector.broadcast %269 : vector<1x32xf32> to vector<16x32xf32>
    %290 = arith.mulf %288, %289 : vector<16x32xf32>
    %291 = vector.broadcast %270 : vector<1x32xf32> to vector<16x32xf32>
    %292 = arith.addf %290, %291 : vector<16x32xf32>
    %293 = arith.truncf %292 : vector<16x32xf32> to vector<16x32xbf16>
    %c1_109 = arith.constant 1 : index
    %c0_110 = arith.constant 0 : index
    %c0_111 = arith.constant 0 : index
    %294 = vector.load %arg7[%c1_109, %c0_110, %c0_111] : memref<2x32x32xbf16, #tpu.memory_space<vmem>>, vector<1x32x32xbf16>
    %295 = vector.shape_cast %294 : vector<1x32x32xbf16> to vector<32x32xbf16>
    %cst_112 = arith.constant dense<0.000000e+00> : vector<16x32xf32>
    %296 = tpu.matmul %293, %295, %cst_112 {dimension_numbers = #tpu.dot_dimension_numbers<[1], [0], [0], [1], [0, 0, 1, 1], [], []>} : vector<16x32xbf16>, vector<32x32xbf16>, vector<16x32xf32> -> vector<16x32xf32>
    %c1_113 = arith.constant 1 : index
    %c0_114 = arith.constant 0 : index
    %c0_115 = arith.constant 0 : index
    %297 = vector.load %arg8[%c1_113, %c0_114, %c0_115] : memref<2x1x32xf32, #tpu.memory_space<vmem>>, vector<1x1x32xf32>
    %298 = vector.shape_cast %297 : vector<1x1x32xf32> to vector<1x32xf32>
    %299 = vector.broadcast %298 : vector<1x32xf32> to vector<16x32xf32>
    %300 = arith.addf %296, %299 : vector<16x32xf32>
    %301 = vector.extract_strided_slice %8 {offsets = [0, 64], sizes = [32, 32], strides = [1, 1]} : vector<32x128xf32> to vector<32x32xf32>
    %302 = vector.shape_cast %301 : vector<32x32xf32> to vector<2x16x32xf32>
    %303 = vector.extract_strided_slice %8 {offsets = [0, 96], sizes = [32, 32], strides = [1, 1]} : vector<32x128xf32> to vector<32x32xf32>
    %304 = vector.shape_cast %303 : vector<32x32xf32> to vector<2x16x32xf32>
    %305 = vector.shape_cast %300 : vector<16x32xf32> to vector<2x8x32xf32>
    %306 = tpu.concatenate %305, %305, %305, %305 in 1 : vector<2x8x32xf32>, vector<2x8x32xf32>, vector<2x8x32xf32>, vector<2x8x32xf32> -> vector<2x32x32xf32>
    %307 = vector.shape_cast %1 : vector<32x32xf32> to vector<1x32x32xf32>
    %308 = vector.broadcast %307 : vector<1x32x32xf32> to vector<2x32x32xf32>
    %309 = arith.mulf %306, %308 : vector<2x32x32xf32>
    %310 = arith.truncf %309 : vector<2x32x32xf32> to vector<2x32x32xbf16>
    %311 = arith.truncf %302 : vector<2x16x32xf32> to vector<2x16x32xbf16>
    %312 = arith.truncf %304 : vector<2x16x32xf32> to vector<2x16x32xbf16>
    "tpu.trace_start"() <{level = 10 : i32, message = "bjd,bkd->bjk"}> : () -> ()
    %cst_116 = arith.constant dense<0.000000e+00> : vector<2x32x16xf32>
    %313 = tpu.matmul %310, %311, %cst_116 {dimension_numbers = #tpu.dot_dimension_numbers<[2], [2], [1], [1], [0, 0, 0, 1, 1, 1], [0], [0]>} : vector<2x32x32xbf16>, vector<2x16x32xbf16>, vector<2x32x16xf32> -> vector<2x32x16xf32>
    "tpu.trace_stop"() : () -> ()
    %cst_117 = arith.constant dense<0xFF800000> : vector<2x32xf32>
    %314 = vector.multi_reduction <maximumf>, %313, %cst_117 [2] : vector<2x32x16xf32> to vector<2x32xf32>
    %315 = vector.shape_cast %314 : vector<2x32xf32> to vector<2x32x1xf32>
    %316 = vector.broadcast %315 : vector<2x32x1xf32> to vector<2x32x16xf32>
    %317 = arith.subf %313, %316 : vector<2x32x16xf32>
    %318 = math.exp %317 : vector<2x32x16xf32>
    %cst_118 = arith.constant dense<0.000000e+00> : vector<2x32xf32>
    %319 = vector.multi_reduction <add>, %318, %cst_118 [2] : vector<2x32x16xf32> to vector<2x32xf32>
    %320 = vector.shape_cast %319 : vector<2x32xf32> to vector<2x32x1xf32>
    %321 = tpu.reciprocal %320 {approx = true} : vector<2x32x1xf32> -> vector<2x32x1xf32>
    %322 = vector.broadcast %321 : vector<2x32x1xf32> to vector<2x32x16xf32>
    %323 = arith.mulf %318, %322 : vector<2x32x16xf32>
    %324 = arith.truncf %323 : vector<2x32x16xf32> to vector<2x32x16xbf16>
    "tpu.trace_start"() <{level = 10 : i32, message = "bjk,bkd->bjd"}> : () -> ()
    %cst_119 = arith.constant dense<0.000000e+00> : vector<2x32x32xf32>
    %325 = tpu.matmul %324, %312, %cst_119 {dimension_numbers = #tpu.dot_dimension_numbers<[2], [1], [1], [2], [0, 0, 0, 1, 1, 2], [0], [0]>} : vector<2x32x16xbf16>, vector<2x16x32xbf16>, vector<2x32x32xf32> -> vector<2x32x32xf32>
    "tpu.trace_stop"() : () -> ()
    %326 = vector.shape_cast %1 : vector<32x32xf32> to vector<1x32x32xf32>
    %327 = vector.broadcast %326 : vector<1x32x32xf32> to vector<2x32x32xf32>
    %328 = arith.mulf %325, %327 : vector<2x32x32xf32>
    %329 = vector.extract_strided_slice %328 {offsets = [0, 0, 0], sizes = [2, 8, 32], strides = [1, 1, 1]} : vector<2x32x32xf32> to vector<2x8x32xf32>
    %330 = vector.extract_strided_slice %328 {offsets = [0, 8, 0], sizes = [2, 8, 32], strides = [1, 1, 1]} : vector<2x32x32xf32> to vector<2x8x32xf32>
    %331 = arith.addf %329, %330 : vector<2x8x32xf32>
    %332 = vector.extract_strided_slice %328 {offsets = [0, 16, 0], sizes = [2, 8, 32], strides = [1, 1, 1]} : vector<2x32x32xf32> to vector<2x8x32xf32>
    %333 = arith.addf %331, %332 : vector<2x8x32xf32>
    %334 = vector.extract_strided_slice %328 {offsets = [0, 24, 0], sizes = [2, 8, 32], strides = [1, 1, 1]} : vector<2x32x32xf32> to vector<2x8x32xf32>
    %335 = arith.addf %333, %334 : vector<2x8x32xf32>
    %336 = vector.shape_cast %335 : vector<2x8x32xf32> to vector<16x32xf32>
    %337 = arith.truncf %336 : vector<16x32xf32> to vector<16x32xbf16>
    %c1_120 = arith.constant 1 : index
    %c0_121 = arith.constant 0 : index
    %c0_122 = arith.constant 0 : index
    %338 = vector.load %arg11[%c1_120, %c0_121, %c0_122] : memref<2x32x32xbf16, #tpu.memory_space<vmem>>, vector<1x32x32xbf16>
    %339 = vector.shape_cast %338 : vector<1x32x32xbf16> to vector<32x32xbf16>
    %cst_123 = arith.constant dense<0.000000e+00> : vector<16x32xf32>
    %340 = tpu.matmul %337, %339, %cst_123 {dimension_numbers = #tpu.dot_dimension_numbers<[1], [0], [0], [1], [0, 0, 1, 1], [], []>} : vector<16x32xbf16>, vector<32x32xbf16>, vector<16x32xf32> -> vector<16x32xf32>
    %c1_124 = arith.constant 1 : index
    %c0_125 = arith.constant 0 : index
    %c0_126 = arith.constant 0 : index
    %341 = vector.load %arg12[%c1_124, %c0_125, %c0_126] : memref<2x1x32xf32, #tpu.memory_space<vmem>>, vector<1x1x32xf32>
    %342 = vector.shape_cast %341 : vector<1x1x32xf32> to vector<1x32xf32>
    %343 = vector.broadcast %342 : vector<1x32xf32> to vector<16x32xf32>
    %344 = arith.addf %340, %343 : vector<16x32xf32>
    %345 = arith.addf %292, %344 : vector<16x32xf32>
    %346 = vector.extract_strided_slice %212 {offsets = [1, 0], sizes = [1, 32], strides = [1, 1]} : vector<3x32xf32> to vector<1x32xf32>
    %347 = vector.extract_strided_slice %214 {offsets = [1, 0], sizes = [1, 32], strides = [1, 1]} : vector<3x32xf32> to vector<1x32xf32>
    %cst_127 = arith.constant dense<0.000000e+00> : vector<16xf32>
    %348 = vector.multi_reduction <add>, %345, %cst_127 [1] : vector<16x32xf32> to vector<16xf32>
    %349 = vector.shape_cast %348 : vector<16xf32> to vector<16x1xf32>
    %cst_128 = arith.constant 3.200000e+01 : f32
    %350 = vector.broadcast %cst_128 : f32 to vector<16x1xf32>
    %351 = arith.divf %349, %350 : vector<16x1xf32>
    %352 = vector.broadcast %351 : vector<16x1xf32> to vector<16x32xf32>
    %353 = arith.subf %345, %352 : vector<16x32xf32>
    %354 = arith.mulf %353, %353 : vector<16x32xf32>
    %cst_129 = arith.constant dense<0.000000e+00> : vector<16xf32>
    %355 = vector.multi_reduction <add>, %354, %cst_129 [1] : vector<16x32xf32> to vector<16xf32>
    %356 = vector.shape_cast %355 : vector<16xf32> to vector<16x1xf32>
    %cst_130 = arith.constant 3.200000e+01 : f32
    %357 = vector.broadcast %cst_130 : f32 to vector<16x1xf32>
    %358 = arith.divf %356, %357 : vector<16x1xf32>
    %359 = vector.broadcast %351 : vector<16x1xf32> to vector<16x32xf32>
    %360 = arith.subf %345, %359 : vector<16x32xf32>
    %cst_131 = arith.constant 9.99999974E-6 : f32
    %361 = vector.broadcast %cst_131 : f32 to vector<16x1xf32>
    %362 = arith.addf %358, %361 : vector<16x1xf32>
    %363 = math.rsqrt %362 : vector<16x1xf32>
    %364 = vector.broadcast %363 : vector<16x1xf32> to vector<16x32xf32>
    %365 = arith.mulf %360, %364 : vector<16x32xf32>
    %366 = vector.broadcast %346 : vector<1x32xf32> to vector<16x32xf32>
    %367 = arith.mulf %365, %366 : vector<16x32xf32>
    %368 = vector.broadcast %347 : vector<1x32xf32> to vector<16x32xf32>
    %369 = arith.addf %367, %368 : vector<16x32xf32>
    %370 = arith.truncf %369 : vector<16x32xf32> to vector<16x32xbf16>
    %c1_132 = arith.constant 1 : index
    %c0_133 = arith.constant 0 : index
    %c0_134 = arith.constant 0 : index
    %371 = vector.load %arg13[%c1_132, %c0_133, %c0_134] : memref<2x32x64xbf16, #tpu.memory_space<vmem>>, vector<1x32x64xbf16>
    %372 = vector.shape_cast %371 : vector<1x32x64xbf16> to vector<32x64xbf16>
    %cst_135 = arith.constant dense<0.000000e+00> : vector<16x64xf32>
    %373 = tpu.matmul %370, %372, %cst_135 {dimension_numbers = #tpu.dot_dimension_numbers<[1], [0], [0], [1], [0, 0, 1, 1], [], []>} : vector<16x32xbf16>, vector<32x64xbf16>, vector<16x64xf32> -> vector<16x64xf32>
    %c1_136 = arith.constant 1 : index
    %c0_137 = arith.constant 0 : index
    %c0_138 = arith.constant 0 : index
    %374 = vector.load %arg14[%c1_136, %c0_137, %c0_138] : memref<2x1x64xf32, #tpu.memory_space<vmem>>, vector<1x1x64xf32>
    %375 = vector.shape_cast %374 : vector<1x1x64xf32> to vector<1x64xf32>
    %376 = vector.broadcast %375 : vector<1x64xf32> to vector<16x64xf32>
    %377 = arith.addf %373, %376 : vector<16x64xf32>
    %cst_139 = arith.constant 0.000000e+00 : f32
    %378 = vector.broadcast %cst_139 : f32 to vector<16x64xf32>
    %379 = arith.maximumf %377, %378 : vector<16x64xf32>
    %380 = arith.truncf %379 : vector<16x64xf32> to vector<16x64xbf16>
    %c1_140 = arith.constant 1 : index
    %c0_141 = arith.constant 0 : index
    %c0_142 = arith.constant 0 : index
    %381 = vector.load %arg15[%c1_140, %c0_141, %c0_142] : memref<2x64x32xbf16, #tpu.memory_space<vmem>>, vector<1x64x32xbf16>
    %382 = vector.shape_cast %381 : vector<1x64x32xbf16> to vector<64x32xbf16>
    %cst_143 = arith.constant dense<0.000000e+00> : vector<16x32xf32>
    %383 = tpu.matmul %380, %382, %cst_143 {dimension_numbers = #tpu.dot_dimension_numbers<[1], [0], [0], [1], [0, 0, 1, 1], [], []>} : vector<16x64xbf16>, vector<64x32xbf16>, vector<16x32xf32> -> vector<16x32xf32>
    %c1_144 = arith.constant 1 : index
    %c0_145 = arith.constant 0 : index
    %c0_146 = arith.constant 0 : index
    %384 = vector.load %arg16[%c1_144, %c0_145, %c0_146] : memref<2x1x32xf32, #tpu.memory_space<vmem>>, vector<1x1x32xf32>
    %385 = vector.shape_cast %384 : vector<1x1x32xf32> to vector<1x32xf32>
    %386 = vector.broadcast %385 : vector<1x32xf32> to vector<16x32xf32>
    %387 = arith.addf %383, %386 : vector<16x32xf32>
    %388 = arith.addf %369, %387 : vector<16x32xf32>
    %389 = vector.extract_strided_slice %212 {offsets = [2, 0], sizes = [1, 32], strides = [1, 1]} : vector<3x32xf32> to vector<1x32xf32>
    %390 = vector.extract_strided_slice %214 {offsets = [2, 0], sizes = [1, 32], strides = [1, 1]} : vector<3x32xf32> to vector<1x32xf32>
    %cst_147 = arith.constant dense<0.000000e+00> : vector<16xf32>
    %391 = vector.multi_reduction <add>, %388, %cst_147 [1] : vector<16x32xf32> to vector<16xf32>
    %392 = vector.shape_cast %391 : vector<16xf32> to vector<16x1xf32>
    %cst_148 = arith.constant 3.200000e+01 : f32
    %393 = vector.broadcast %cst_148 : f32 to vector<16x1xf32>
    %394 = arith.divf %392, %393 : vector<16x1xf32>
    %395 = vector.broadcast %394 : vector<16x1xf32> to vector<16x32xf32>
    %396 = arith.subf %388, %395 : vector<16x32xf32>
    %397 = arith.mulf %396, %396 : vector<16x32xf32>
    %cst_149 = arith.constant dense<0.000000e+00> : vector<16xf32>
    %398 = vector.multi_reduction <add>, %397, %cst_149 [1] : vector<16x32xf32> to vector<16xf32>
    %399 = vector.shape_cast %398 : vector<16xf32> to vector<16x1xf32>
    %cst_150 = arith.constant 3.200000e+01 : f32
    %400 = vector.broadcast %cst_150 : f32 to vector<16x1xf32>
    %401 = arith.divf %399, %400 : vector<16x1xf32>
    %402 = vector.broadcast %394 : vector<16x1xf32> to vector<16x32xf32>
    %403 = arith.subf %388, %402 : vector<16x32xf32>
    %cst_151 = arith.constant 9.99999974E-6 : f32
    %404 = vector.broadcast %cst_151 : f32 to vector<16x1xf32>
    %405 = arith.addf %401, %404 : vector<16x1xf32>
    %406 = math.rsqrt %405 : vector<16x1xf32>
    %407 = vector.broadcast %406 : vector<16x1xf32> to vector<16x32xf32>
    %408 = arith.mulf %403, %407 : vector<16x32xf32>
    %409 = vector.broadcast %389 : vector<1x32xf32> to vector<16x32xf32>
    %410 = arith.mulf %408, %409 : vector<16x32xf32>
    %411 = vector.broadcast %390 : vector<1x32xf32> to vector<16x32xf32>
    %412 = arith.addf %410, %411 : vector<16x32xf32>
    %c0_152 = arith.constant 0 : index
    %c0_153 = arith.constant 0 : index
    %413 = vector.load %arg19[%c0_152, %c0_153] : memref<1x32xf32, #tpu.memory_space<vmem>>, vector<1x32xf32>
    %c0_154 = arith.constant 0 : index
    %c0_155 = arith.constant 0 : index
    %414 = vector.load %arg20[%c0_154, %c0_155] : memref<1x32xf32, #tpu.memory_space<vmem>>, vector<1x32xf32>
    %cst_156 = arith.constant dense<0.000000e+00> : vector<16xf32>
    %415 = vector.multi_reduction <add>, %412, %cst_156 [1] : vector<16x32xf32> to vector<16xf32>
    %416 = vector.shape_cast %415 : vector<16xf32> to vector<16x1xf32>
    %cst_157 = arith.constant 3.200000e+01 : f32
    %417 = vector.broadcast %cst_157 : f32 to vector<16x1xf32>
    %418 = arith.divf %416, %417 : vector<16x1xf32>
    %419 = vector.broadcast %418 : vector<16x1xf32> to vector<16x32xf32>
    %420 = arith.subf %412, %419 : vector<16x32xf32>
    %421 = arith.mulf %420, %420 : vector<16x32xf32>
    %cst_158 = arith.constant dense<0.000000e+00> : vector<16xf32>
    %422 = vector.multi_reduction <add>, %421, %cst_158 [1] : vector<16x32xf32> to vector<16xf32>
    %423 = vector.shape_cast %422 : vector<16xf32> to vector<16x1xf32>
    %cst_159 = arith.constant 3.200000e+01 : f32
    %424 = vector.broadcast %cst_159 : f32 to vector<16x1xf32>
    %425 = arith.divf %423, %424 : vector<16x1xf32>
    %426 = vector.broadcast %418 : vector<16x1xf32> to vector<16x32xf32>
    %427 = arith.subf %412, %426 : vector<16x32xf32>
    %cst_160 = arith.constant 9.99999974E-6 : f32
    %428 = vector.broadcast %cst_160 : f32 to vector<16x1xf32>
    %429 = arith.addf %425, %428 : vector<16x1xf32>
    %430 = math.rsqrt %429 : vector<16x1xf32>
    %431 = vector.broadcast %430 : vector<16x1xf32> to vector<16x32xf32>
    %432 = arith.mulf %427, %431 : vector<16x32xf32>
    %433 = vector.broadcast %413 : vector<1x32xf32> to vector<16x32xf32>
    %434 = arith.mulf %432, %433 : vector<16x32xf32>
    %435 = vector.broadcast %414 : vector<1x32xf32> to vector<16x32xf32>
    %436 = arith.addf %434, %435 : vector<16x32xf32>
    %c0_161 = arith.constant 0 : index
    %c0_162 = arith.constant 0 : index
    %437 = vector.load %arg21[%c0_161, %c0_162] : memref<16x32xf32, #tpu.memory_space<vmem>>, vector<16x32xf32>
    tpu.vector_store %arg21[%c0_161, %c0_162], %436 {strides = array<i32>} : memref<16x32xf32, #tpu.memory_space<vmem>>, vector<16x32xf32>,
    return
  }
}

</mosaic_0001>

<bundles_post_ra>
// kernel: tpu_custom_call.1
= control target key start
LH: loop header
LB: loop body
LE: loop exit
PB: predicated region body
PF: predicated region fallthrough
CT: control target
= control target key end

     0   :  { %s4587_s0 = inlined_call_operand.hbm [shape: f32[16,32], index: 0, kind: input, shape index: {}]   ;;  %s4588_s1 = inlined_call_operand.vmem [shape: f32[32,32], index: 1, kind: input, shape index: {}]   ;;  %s4589_s2 = inlined_call_operand.vmem [shape: f32[32,32], index: 2, kind: input, shape index: {}]   ;;  %s4590_s3 = inlined_call_operand.vmem [shape: bf16[2,32,96], index: 3, kind: input, shape index: {}]   ;;  %s4591_s4 = inlined_call_operand.hbm [shape: f32[2,1,96], index: 4, kind: input, shape index: {}]   ;;  %s4592_s5 = inlined_call_operand.vmem [shape: bf16[2,32,32], index: 5, kind: input, shape index: {}]   ;;  %s4593_s6 = inlined_call_operand.hbm [shape: f32[2,1,32], index: 6, kind: input, shape index: {}]   ;;  %s4594_s7 = inlined_call_operand.hbm [shape: bf16[2,32,32], index: 7, kind: input, shape index: {}]   ;;  %s4595_s8 = inlined_call_operand.hbm [shape: f32[2,1,32], index: 8, kind: input, shape index: {}]   ;;  %s4596_s9 = inlined_call_operand.hbm [shape: bf16[32,128], index: 9, kind: input, shape index: {}]   ;;  %s4597_s10 = inlined_call_operand.vmem [shape: f32[1,128], index: 10, kind: input, shape index: {}]   ;;  %s4598_s11 = inlined_call_operand.hbm [shape: bf16[2,32,32], index: 11, kind: input, shape index: {}]   ;;  %s4599_s12 = inlined_call_operand.hbm [shape: f32[2,1,32], index: 12, kind: input, shape index: {}]   ;;  %s4600_s13 = inlined_call_operand.hbm [shape: bf16[2,32,64], index: 13, kind: input, shape index: {}]   ;;  %s4601_s14 = inlined_call_operand.vmem [shape: f32[2,1,64], index: 14, kind: input, shape index: {}]   ;;  %s4602_s15 = inlined_call_operand.vmem [shape: bf16[2,64,32], index: 15, kind: input, shape index: {}]   ;;  %s4603_s16 = inlined_call_operand.vmem [shape: f32[2,1,32], index: 16, kind: input, shape index: {}]   ;;  %s4604_s17 = inlined_call_operand.vmem [shape: f32[2,3,32], index: 17, kind: input, shape index: {}]   ;;  %s4605_s18 = inlined_call_operand.vmem [shape: f32[2,3,32], index: 18, kind: input, shape index: {}]   ;;  %s4606_s19 = inlined_call_operand.vmem [shape: f32[1,32], index: 19, kind: input, shape index: {}]   ;;  %s4607_s20 = inlined_call_operand.vmem [shape: f32[1,32], index: 20, kind: input, shape index: {}]   ;;  %s4608_s21 = inlined_call_operand.hbm [shape: f32[16,32], index: 21, kind: output, shape index: {}]  }
   0x1   :  { %4624 = sst [smem:[#allocation24_spill]] %s4587_s0 }
   0x2   :  { %4625 = sst [smem:[#allocation25_spill]] %s4588_s1 }
   0x3   :  { %4626 = sst [smem:[#allocation26_spill]] %s4589_s2 }
   0x4   :  { %4627 = sst [smem:[#allocation27_spill]] %s4590_s3 }
   0x5   :  { %4628 = sst [smem:[#allocation28_spill]] %s4591_s4 }
   0x6   :  { %4629 = sst [smem:[#allocation29_spill]] %s4592_s5 }
   0x7   :  { %4630 = sst [smem:[#allocation30_spill]] %s4608_s21 }
   0x8   :  { %26 = vsyncpa [#allocation3], 0 }
   0x9   :  { %27 = vsyncpa [#allocation6], 0 }
   0xa   :  { %28 = vsyncpa [#allocation9], 0 }
   0xb   :  { %29 = vsyncpa [#allocation12], 0 }
   0xc   :  { %30 = vsyncpa [#allocation15], 0 }
   0xd   :  { %31 = vsyncpa [#allocation4], 0  ;;  %s3762_s2 = smov [#allocation5]   ;;  %s4631_s3 = sld [smem:[#allocation28_spill]] }
   0xe   :  { %s55_s25 = sshll.u32 %s3762_s2, 4  ;;  %s56_s25 = int_to_ptr.vmem [resolvable:$true] %s55_s25 }
  0x13   :  { %s3530_s28 = scalar_lea.hbm %s4631_s3, 32 }
  0x14   :  { %p3531_p0 = scmp.ne.s32.totalorder %s4631_s3, %s3530_s28  ;;  %p3534_p1 = scmp.lt.u32.totalorder %s3530_s28, %s4631_s3 }
  0x16   :  { %p3536_p2 = pnand %p3534_p1, %p3531_p0 }
  0x18   :  { %3539 = shalt.err (!%p3536_p2)
}
  0x19   :  { %s3540_s5 = scalar_lea.vmem %s56_s25, 32  ;;  %p3545_p4 = scmp.lt.s32.totalorder %s56_s25, %s56_s25 }
  0x1a   :  { %p3541_p3 = scmp.ne.s32.totalorder %s56_s25, %s3540_s5  ;;  %p3546_p5 = scmp.lt.s32.totalorder %s3540_s5, %s3540_s5 }
  0x1c   :  { %p3547_p6 = por %p3546_p5, %p3545_p4 }
  0x1e   :  { %p3548_p7 = pnand %p3547_p6, %p3541_p3 }
  0x20   :  { %3551 = shalt.err (!%p3548_p7)
}
  0x21   :  { %s4616_s22 = smov 16   ;;  %s4618_s23 = smov 1  }
  0x22   :  { %61 = dma.hbm_to_vmem [thread:$0]  %s4631_s3, 32, %s56_s25, [#allocation6], %s4616_s22, %s4616_s22, %s4618_s23  }
  0x23   :  { %s3765_s2 = smov [#allocation8]   ;;  %s3552_s29 = scalar_lea.hbm %s4594_s7, 512 }
  0x24   :  { %s81_s26 = sshll.u32 %s3765_s2, 4  ;;  %p3553_p8 = scmp.ne.s32.totalorder %s4594_s7, %s3552_s29  ;;  %s82_s26 = int_to_ptr.vmem [resolvable:$true] %s81_s26 }
  0x25   :  { %p3556_p9 = scmp.lt.u32.totalorder %s3552_s29, %s4594_s7 }
  0x27   :  { %p3558_p10 = pnand %p3556_p9, %p3553_p8 }
  0x29   :  { %3561 = shalt.err (!%p3558_p10)
}
  0x2a   :  { %s3562_s21 = scalar_lea.vmem %s82_s26, 512  ;;  %p3567_p12 = scmp.lt.s32.totalorder %s82_s26, %s82_s26 }
  0x2b   :  { %p3563_p11 = scmp.ne.s32.totalorder %s82_s26, %s3562_s21  ;;  %p3568_p13 = scmp.lt.s32.totalorder %s3562_s21, %s3562_s21 }
  0x2d   :  { %p3569_p0 = por %p3568_p13, %p3567_p12 }
  0x2f   :  { %p3570_p1 = pnand %p3569_p0, %p3563_p11 }
  0x31   :  { %3573 = shalt.err (!%p3570_p1)
}
  0x32   :  { %s4620_s25 = smov 64   ;;  %s4622_s3 = smov 4  }
  0x33   :  { %87 = dma.hbm_to_vmem [thread:$0]  %s4594_s7, 512, %s82_s26, [#allocation9], %s4620_s25, %s4620_s25, %s4622_s3  }
  0x34   :  { %s3768_s2 = smov [#allocation11]   ;;  %s3769_s28 = smov [#allocation14]  }
  0x35   :  { %s105_s27 = sshll.u32 %s3768_s2, 4  ;;  %s131_s29 = sshll.u32 %s3769_s28, 4  ;;  %s106_s27 = int_to_ptr.vmem [resolvable:$true] %s105_s27  ;;  %s3922_s29 = int_to_ptr.vmem [resolvable:$true] %s131_s29 }
  0x36   :  { %s3574_s4 = scalar_lea.hbm %s4596_s9, 256 }
  0x37   :  { %p3575_p2 = scmp.ne.s32.totalorder %s4596_s9, %s3574_s4  ;;  %p3578_p3 = scmp.lt.u32.totalorder %s3574_s4, %s4596_s9 }
  0x39   :  { %p3580_p4 = pnand %p3578_p3, %p3575_p2 }
  0x3b   :  { %3583 = shalt.err (!%p3580_p4)
}
  0x3c   :  { %s3584_s7 = scalar_lea.vmem %s106_s27, 256  ;;  %p3589_p6 = scmp.lt.s32.totalorder %s106_s27, %s106_s27 }
  0x3d   :  { %p3585_p5 = scmp.ne.s32.totalorder %s106_s27, %s3584_s7  ;;  %p3590_p7 = scmp.lt.s32.totalorder %s3584_s7, %s3584_s7 }
  0x3f   :  { %p3591_p8 = por %p3590_p7, %p3589_p6 }
  0x41   :  { %p3592_p9 = pnand %p3591_p8, %p3585_p5 }
  0x43   :  { %3595 = shalt.err (!%p3592_p9)
}
  0x44   :  { %111 = dma.hbm_to_vmem [thread:$0]  %s4596_s9, 256, %s106_s27, [#allocation12], %s4620_s25, %s4620_s25, %s4622_s3  }
  0x45   :  { %s3596_s22 = scalar_lea.hbm %s4599_s12, 32 }
  0x46   :  { %p3597_p10 = scmp.ne.s32.totalorder %s4599_s12, %s3596_s22  ;;  %p3600_p11 = scmp.lt.u32.totalorder %s3596_s22, %s4599_s12 }
  0x48   :  { %p3602_p12 = pnand %p3600_p11, %p3597_p10 }
  0x4a   :  { %3605 = shalt.err (!%p3602_p12)
}
  0x4b   :  { %s3606_s4 = scalar_lea.vmem %s3922_s29, 32  ;;  %p3611_p0 = scmp.lt.s32.totalorder %s3922_s29, %s3922_s29 }
  0x4c   :  { %p3607_p13 = scmp.ne.s32.totalorder %s3922_s29, %s3606_s4  ;;  %p3612_p1 = scmp.lt.s32.totalorder %s3606_s4, %s3606_s4 }
  0x4e   :  { %p3613_p2 = por %p3612_p1, %p3611_p0 }
  0x50   :  { %p3614_p3 = pnand %p3613_p2, %p3607_p13 }
  0x52   :  { %3617 = shalt.err (!%p3614_p3)
}
  0x53   :  { %s4632_s9 = smov 1   ;;  %s4633_s27 = smov 16  }
  0x54   :  { %137 = dma.hbm_to_vmem [thread:$0]  %s4599_s12, 32, %s3922_s29, [#allocation15], %s4633_s27, %s4633_s27, %s4632_s9  }
  0x55   :  { %s3770_s7 = smov [#allocation2]   ;;  %s4634_s2 = sld [smem:[#allocation24_spill]] }
  0x56   :  { %s37_s26 = sshll.u32 %s3770_s7, 4  ;;  %s38_s26 = int_to_ptr.vmem [resolvable:$true] %s37_s26 }
  0x5b   :  { %s3618_s22 = scalar_lea.hbm %s4634_s2, 256 }
  0x5c   :  { %p3619_p4 = scmp.ne.s32.totalorder %s4634_s2, %s3618_s22  ;;  %p3622_p5 = scmp.lt.u32.totalorder %s3618_s22, %s4634_s2 }
  0x5e   :  { %p3624_p6 = pnand %p3622_p5, %p3619_p4 }
  0x60   :  { %3627 = shalt.err (!%p3624_p6)
}
  0x61   :  { %s3628_s4 = scalar_lea.vmem %s38_s26, 256  ;;  %p3633_p8 = scmp.lt.s32.totalorder %s38_s26, %s38_s26 }
  0x62   :  { %p3629_p7 = scmp.ne.s32.totalorder %s38_s26, %s3628_s4  ;;  %p3634_p9 = scmp.lt.s32.totalorder %s3628_s4, %s3628_s4 }
  0x64   :  { %p3635_p10 = por %p3634_p9, %p3633_p8 }
  0x66   :  { %p3636_p11 = pnand %p3635_p10, %p3629_p7 }
  0x68   :  { %3639 = shalt.err (!%p3636_p11)
}
  0x69   :  { %s3771_s12 = smov 128   ;;  %s3772_s29 = smov 8  }
  0x6a   :  { %43 = dma.hbm_to_vmem [thread:$0]  %s4634_s2, 256, %s38_s26, [#allocation3], %s3771_s12, %s3771_s12, %s3772_s29  }
  0x6b   :  { %s3773_s7 = smov [#allocation7]   ;;  %s3774_s24 = smov [#allocation10]  }
  0x6c   :  { %s69_s1 = sshll.u32 %s3773_s7, 4  ;;  %s93_s22 = sshll.u32 %s3774_s24, 4  ;;  %s70_s1 = int_to_ptr.vmem [resolvable:$true] %s69_s1  ;;  %s94_s22 = int_to_ptr.vmem [resolvable:$true] %s93_s22 }
  0x6d   :  { %s3640_s21 = scalar_lea.hbm %s4593_s6, 32 }
  0x6e   :  { %p3641_p12 = scmp.ne.s32.totalorder %s4593_s6, %s3640_s21  ;;  %p3644_p13 = scmp.lt.u32.totalorder %s3640_s21, %s4593_s6 }
  0x70   :  { %p3646_p0 = pnand %p3644_p13, %p3641_p12 }
  0x72   :  { %3649 = shalt.err (!%p3646_p0)
}
  0x73   :  { %s3650_s26 = scalar_lea.vmem %s70_s1, 32  ;;  %p3655_p2 = scmp.lt.s32.totalorder %s70_s1, %s70_s1 }
  0x74   :  { %p3651_p1 = scmp.ne.s32.totalorder %s70_s1, %s3650_s26  ;;  %p3656_p3 = scmp.lt.s32.totalorder %s3650_s26, %s3650_s26 }
  0x76   :  { %p3657_p4 = por %p3656_p3, %p3655_p2 }
  0x78   :  { %p3658_p5 = pnand %p3657_p4, %p3651_p1 }
  0x7a   :  { %3661 = shalt.err (!%p3658_p5)
}
  0x7b   :  { %75 = dma.hbm_to_vmem [thread:$0]  %s4593_s6, 32, %s70_s1, [#allocation6], %s4633_s27, %s4633_s27, %s4632_s9  }
  0x7c   :  { %s3662_s3 = scalar_lea.hbm %s4595_s8, 32 }
  0x7d   :  { %p3663_p6 = scmp.ne.s32.totalorder %s4595_s8, %s3662_s3  ;;  %p3666_p7 = scmp.lt.u32.totalorder %s3662_s3, %s4595_s8 }
  0x7f   :  { %p3668_p8 = pnand %p3666_p7, %p3663_p6 }
  0x81   :  { %3671 = shalt.err (!%p3668_p8)
}
  0x82   :  { %s3672_s21 = scalar_lea.vmem %s94_s22, 32  ;;  %p3677_p10 = scmp.lt.s32.totalorder %s94_s22, %s94_s22 }
  0x83   :  { %p3673_p9 = scmp.ne.s32.totalorder %s94_s22, %s3672_s21  ;;  %p3678_p11 = scmp.lt.s32.totalorder %s3672_s21, %s3672_s21 }
  0x85   :  { %p3679_p12 = por %p3678_p11, %p3677_p10 }
  0x87   :  { %p3680_p13 = pnand %p3679_p12, %p3673_p9 }
  0x89   :  { %3683 = shalt.err (!%p3680_p13)
}
  0x8a   :  { %99 = dma.hbm_to_vmem [thread:$0]  %s4595_s8, 32, %s94_s22, [#allocation9], %s4633_s27, %s4633_s27, %s4632_s9  }
  0x8b   :  { %s3775_s0 = smov [#allocation13]   ;;  %s3776_s26 = smov [#allocation16]  }
  0x8c   :  { %s119_s4 = sshll.u32 %s3775_s0, 4  ;;  %s143_s2 = sshll.u32 %s3776_s26, 4  ;;  %s120_s4 = int_to_ptr.vmem [resolvable:$true] %s119_s4  ;;  %s144_s2 = int_to_ptr.vmem [resolvable:$true] %s143_s2 }
  0x8d   :  { %s3684_s25 = scalar_lea.hbm %s4598_s11, 512 }
  0x8e   :  { %p3685_p0 = scmp.ne.s32.totalorder %s4598_s11, %s3684_s25  ;;  %p3688_p1 = scmp.lt.u32.totalorder %s3684_s25, %s4598_s11 }
  0x90   :  { %p3690_p2 = pnand %p3688_p1, %p3685_p0 }
  0x92   :  { %3693 = shalt.err (!%p3690_p2)
}
  0x93   :  { %s3694_s8 = scalar_lea.vmem %s120_s4, 512  ;;  %p3699_p4 = scmp.lt.s32.totalorder %s120_s4, %s120_s4 }
  0x94   :  { %p3695_p3 = scmp.ne.s32.totalorder %s120_s4, %s3694_s8  ;;  %p3700_p5 = scmp.lt.s32.totalorder %s3694_s8, %s3694_s8 }
  0x96   :  { %p3701_p6 = por %p3700_p5, %p3699_p4 }
  0x98   :  { %p3702_p7 = pnand %p3701_p6, %p3695_p3 }
  0x9a   :  { %3705 = shalt.err (!%p3702_p7)
}
  0x9b   :  { %s4635_s9 = smov 4   ;;  %s4636_s27 = smov 64  }
  0x9c   :  { %125 = dma.hbm_to_vmem [thread:$0]  %s4598_s11, 512, %s120_s4, [#allocation12], %s4636_s27, %s4636_s27, %s4635_s9  }
  0x9d   :  { %s3706_s1 = scalar_lea.hbm %s4600_s13, 512 }
  0x9e   :  { %p3707_p8 = scmp.ne.s32.totalorder %s4600_s13, %s3706_s1  ;;  %p3710_p9 = scmp.lt.u32.totalorder %s3706_s1, %s4600_s13 }
  0xa0   :  { %p3712_p10 = pnand %p3710_p9, %p3707_p8 }
  0xa2   :  { %3715 = shalt.err (!%p3712_p10)
}
  0xa3   :  { %s3716_s25 = scalar_lea.vmem %s144_s2, 512  ;;  %p3721_p12 = scmp.lt.s32.totalorder %s144_s2, %s144_s2 }
  0xa4   :  { %p3717_p11 = scmp.ne.s32.totalorder %s144_s2, %s3716_s25  ;;  %p3722_p13 = scmp.lt.s32.totalorder %s3716_s25, %s3716_s25 }
  0xa6   :  { %p3723_p0 = por %p3722_p13, %p3721_p12 }
  0xa8   :  { %p3724_p1 = pnand %p3723_p0, %p3717_p11 }
  0xaa   :  { %3727 = shalt.err (!%p3724_p1)
}
  0xab   :  { %149 = dma.hbm_to_vmem [thread:$0]  %s4600_s13, 512, %s144_s2, [#allocation15], %s4636_s27, %s4636_s27, %s4635_s9  }
  0xac   :  { %3750 = dma.done.wait [#allocation3], 256  }
  0xad   :  { %3751 = vsyncadd [#allocation3], 4294967040 }
  0xae   :  { %3752 = dma.done.wait [#allocation6], 64  }
  0xaf   :  { %3753 = vsyncadd [#allocation6], 4294967232 }
  0xb0   :  { %3754 = dma.done.wait [#allocation9], 544  }
  0xb1   :  { %3755 = vsyncadd [#allocation9], 4294966752 }
  0xb2   :  { %3756 = dma.done.wait [#allocation12], 768  }
  0xb3   :  { %3757 = vsyncadd [#allocation12], 4294966528 }
  0xb4   :  { %3758 = dma.done.wait [#allocation15], 544  }
  0xb5   :  { %3759 = vsyncadd [#allocation15], 4294966752  ;;  %v3777_v0 = vmov 0.0   ;;  %vm3778_vm0 = vmmov 0   ;;  %s4637_s13 = sld [smem:[#allocation27_spill]]  ;;  %v4043_v3 = vld [vmem:[#allocation2] sm:$0xff] }
  0xb6   :  { %3108 = vmatprep.subr.bf16.mxu1 %v3777_v0  ;;  %3112 = vmatprep.mubr.msk.bf16.mxu1 %vm3778_vm0, %v3777_v0  ;;  %v4045_v4 = vld [vmem:[#allocation2 + $0x8] sm:$0xff]  ;;  %v3342_v5 = vld [vmem:[#allocation11] sm:$0xff]   ;;  %vm227_vm1 = vcmask 261120   ;;  %v3343_v7 = vld [vmem:[#allocation11 + $0x8] sm:$0xff]   ;;  %s4638_s9 = sld [smem:[#allocation25_spill]]  ;;  %s4639_s5 = sld [smem:[#allocation26_spill]] }
  0xb7   :  { %v285_v6 = vpack.c.bf16 %v4045_v4, %v4043_v3  ;;  %3100 = vmatprep.subr.bf16.mxu0 %v3342_v5  ;;  %v2902_v14 = vld [vmem:[#allocation5] ss:$0 sm:$0xff]  ;;  %s3779_s4 = smov 96   ;;  %v2897_v31 = vld [vmem:[%s4597_s10] ss:$0 sm:$0xff]  ;;  %vm489_vm2 = vcmask 64512  }
  0xb8   :  { %3101 = vmatpush3.bf16.msra.mxu0 %v3342_v5  ;;  %vm590_vm3 = vcmask 1043456   ;;  %s4640_s22 = sld [smem:[#allocation29_spill]]  ;;  %vm1024_vm4 = vcmask 130048   ;;  %vm1467_vm5 = vcmask 523264  }
  0xb9   :  { %3102 = vmatprep.subr.bf16.mxu0 %v3343_v7 }
  0xbb   :  { %v3340_v1 = vld [vmem:[%s4637_s13] sm:$0xff]   ;;  %v3341_v2 = vld [vmem:[%s4637_s13 + $0x8] sm:$0xff]  }
  0xbc   :  { %3109 = vmatpush3.bf16.msra.mxu1 %v3340_v1  ;;  %v198_v8 = vld [vmem:[%s4638_s9] sm:$0xff]  ;;  %v199_v9 = vld [vmem:[%s4638_s9 + $0x8] sm:$0xff]  ;;  %3103 = vmatpush3.bf16.msra.mxu0 %v3343_v7  ;;  %v200_v11 = vld [vmem:[%s4638_s9 + $0x10] sm:$0xff] }
  0xbd   :  { %3110 = vmatprep.subr.bf16.mxu1 %v3777_v0  ;;  %v202_v10 = vpack.c.bf16 %v199_v9, %v198_v8  ;;  %v201_v12 = vld [vmem:[%s4638_s9 + $0x18] sm:$0xff]  ;;  %v4068_v18 = vld [vmem:[%s4639_s5] sm:$0xff]  ;;  %v4073_v19 = vld [vmem:[%s4639_s5 + $0x8] sm:$0xff] }
  0xbe   :  { %v203_v13 = vpack.c.bf16 %v201_v12, %v200_v11  ;;  %v4099_v42 = vld [vmem:[%s4639_s5 + $0x10] sm:$0xff]  ;;  %v4104_v43 = vld [vmem:[%s4639_s5 + $0x18] sm:$0xff] }
  0xbf   :  { %3104 = vmatprep.mubr.msk.bf16.mxu0 %vm227_vm1, %v202_v10 }
  0xc0   :  { %3111 = vmatpush3.bf16.msra.mxu1 %v3341_v2  ;;  %3105 = vmatmul.mubr.msk.bf16.vlgmr.msra.gmra.mrb[0].mxu0 %vm227_vm1, %v203_v13 }
  0xc3   :  { %3113 = vmatmul.mubr.msk.bf16.vlgmr.msra.gmra.mrb[0].mxu1 %vm227_vm1, %v285_v6 }
 0x193   :  { %v3106_v32 = vpop.f32.mrb[0].mxu0 }
 0x194   :  { %v277_v33 = vadd.f32 %v3106_v32, %v2897_v31  ;;  %v268_v34 = vpop.f32.mrb[1].mxu0 }
 0x195   :  { %v269_v35 = vadd.f32 %v2897_v31, %v268_v34  ;;  %v3107_v36 = vpop.f32.mrb[2].mxu0 }
 0x196   :  { %v346_v15 = vpop.f32.mrb[0].mxu1  ;;  %v280_v37 = vadd.f32 %v3107_v36, %v2897_v31  ;;  %v271_v38 = vpop.f32.mrb[3].mxu0 }
 0x197   :  { %v347_v16 = vadd.f32 %v2902_v14, %v346_v15  ;;  %v3114_v17 = vpop.f32.mrb[1].mxu1  ;;  %v272_v39 = vadd.f32 %v2897_v31, %v271_v38 }
 0x198   :  { %v349_v20 = vpop.f32.mrb[2].mxu1  ;;  %v4092_v40 = vpack.c.bf16 %v280_v37, %v277_v33 }
 0x199   :  { %v350_v21 = vadd.f32 %v2902_v14, %v349_v20  ;;  %v3115_v22 = vpop.f32.mrb[3].mxu1  ;;  %v4075_v23 = vpack.c.bf16 %v347_v16, %v347_v16  ;;  %v353_v24 = vmul.f32 %v347_v16, %v4068_v18  ;;  %v354_v25 = vmul.f32 %v347_v16, %v4073_v19 }
 0x19a   :  { %v4094_v41 = vpack.c.bf16 %v272_v39, %v269_v35  ;;  %v355_v46 = vmul.f32 %v347_v16, %v4099_v42  ;;  %v356_v47 = vmul.f32 %v347_v16, %v4104_v43 }
 0x19b   :  { %368 = vrot.lane.b32.xlu0 %v4075_v23, %s3779_s4  ;;  %v357_v26 = vmul.f32 %v350_v21, %v4068_v18  ;;  %v361_v27 = vpack.c.bf16 %v354_v25, %v353_v24  ;;  %v358_v28 = vmul.f32 %v350_v21, %v4073_v19  ;;  %v4083_v29 = vpack.c.bf16 %v350_v21, %v350_v21 }
 0x19c   :  { %v359_v50 = vmul.f32 %v350_v21, %v4099_v42  ;;  %v360_v51 = vmul.f32 %v350_v21, %v4104_v43  ;;  %v362_v52 = vpack.c.bf16 %v356_v47, %v355_v46 }
 0x19d   :  { %3118 = vmatprep.mubr.msk.bf16.mxu0 %vm227_vm1, %v361_v27  ;;  %v363_v30 = vpack.c.bf16 %v358_v28, %v357_v26 }
 0x19e   :  { %v364_v53 = vpack.c.bf16 %v360_v51, %v359_v50 }
 0x19f   :  { %429 = vrot.lane.b32.xlu0 %v4083_v29, %s3779_s4  ;;  %3124 = vmatprep.mubr.msk.bf16.mxu1 %vm227_vm1, %v363_v30 }
 0x20d   :  { %v369_v44 = vpop.permute.xlu0 %368 }
 0x20e   :  { %3308 = vmatprep.subr.msk.bf16.mxu0 %vm227_vm1, %v369_v44  ;;  %v377_v45 = vsel %vm227_vm1, %v369_v44, 0 }
 0x20f   :  { %3117 = vmatpush3.bf16.xpose.msra.mxu0 %v377_v45 }
 0x211   :  { %v430_v48 = vpop.permute.xlu0 %429 }
 0x212   :  { %v438_v49 = vsel %vm227_vm1, %v430_v48, 0  ;;  %3309 = vmatprep.subr.msk.bf16.mxu1 %vm227_vm1, %v430_v48 }
 0x213   :  { %3123 = vmatpush3.bf16.xpose.msra.mxu1 %v438_v49 }
 0x216   :  { %3119 = vmatmul.mubr.msk.bf16.vlgmr.msra.gmra.mrb[4].mxu0 %vm227_vm1, %v362_v52 }
 0x21a   :  { %3125 = vmatmul.mubr.msk.bf16.vlgmr.msra.gmra.mrb[4].mxu1 %vm227_vm1, %v364_v53 }
 0x2e9   :  { %v3120_v54 = vpop.f32.mrb[4].mxu0 }
 0x2ea   :  { %v413_v55 = vpop.f32.mrb[5].mxu0  ;;  %v496_v2 = vsel %vm489_vm2, %v3120_v54, -inf }
 0x2eb   :  { %v3121_v56 = vpop.f32.mrb[6].mxu0  ;;  %v490_v57 = vsel %vm489_vm2, %v413_v55, -inf }
 0x2ec   :  { %491 = vmax.xlane.f32.xlu1 %v490_v57  ;;  %v416_v58 = vpop.f32.mrb[7].mxu0  ;;  %v499_v5 = vsel %vm489_vm2, %v3121_v56, -inf }
 0x2ed   :  { %v3126_v59 = vpop.f32.mrb[4].mxu1  ;;  %v493_v62 = vsel %vm489_vm2, %v416_v58, -inf }
 0x2ee   :  { %v474_v60 = vpop.f32.mrb[5].mxu1  ;;  %v508_v6 = vsel %vm489_vm2, %v3126_v59, -inf }
 0x2ef   :  { %v3127_v61 = vpop.f32.mrb[6].mxu1  ;;  %v502_v63 = vsel %vm489_vm2, %v474_v60, -inf }
 0x2f0   :  { %494 = vmax.xlane.f32.xlu1 %v493_v62  ;;  %503 = vmax.xlane.f32.xlu0 %v502_v63  ;;  %v477_v1 = vpop.f32.mrb[7].mxu1  ;;  %v511_v8 = vsel %vm489_vm2, %v3127_v61, -inf }
 0x2f1   :  { %v505_v7 = vsel %vm489_vm2, %v477_v1, -inf }
 0x2f4   :  { %497 = vmax.xlane.f32.xlu1 %v496_v2 }
 0x2f8   :  { %500 = vmax.xlane.f32.xlu1 %v499_v5 }
 0x2fc   :  { %509 = vmax.xlane.f32.xlu1 %v508_v6 }
 0x300   :  { %506 = vmax.xlane.f32.xlu1 %v505_v7 }
 0x304   :  { %512 = vmax.xlane.f32.xlu1 %v511_v8 }
 0x379   :  { %v492_v9 = vpop.xlane.xlu1 %491 }
 0x37a   :  { %v514_v11 = vsub.f32 %v413_v55, %v492_v9 }
 0x37c   :  { %v522_v14 = vmul.f32 1.442695, %v514_v11 }
 0x37d   :  { %v495_v10 = vpop.xlane.xlu1 %494  ;;  %v504_v22 = vpop.xlane.xlu0 %503 }
 0x37e   :  { %v515_v20 = vsub.f32 %v416_v58, %v495_v10  ;;  %v518_v27 = vsub.f32 %v474_v60, %v504_v22  ;;  %v3345_v22 = vld [vmem:[%s4640_s22 + $0x8] sm:$0xff]  }
 0x380   :  { %v524_v26 = vmul.f32 1.442695, %v515_v20  ;;  %v530_v32 = vmul.f32 1.442695, %v518_v27 }
 0x381   :  { %v498_v12 = vpop.xlane.xlu1 %497 }
 0x382   :  { %v516_v13 = vsub.f32 %v3120_v54, %v498_v12 }
 0x384   :  { %v526_v15 = vmul.f32 1.442695, %v516_v13 }
 0x385   :  { %v501_v16 = vpop.xlane.xlu1 %500 }
 0x386   :  { %3370 = vpow2.f32 %v526_v15  ;;  %v517_v17 = vsub.f32 %v3121_v56, %v501_v16  ;;  %v3344_v15 = vld [vmem:[%s4640_s22] sm:$0xff]  }
 0x387   :  { %3372 = vpow2.f32 %v522_v14 }
 0x388   :  { %v528_v21 = vmul.f32 1.442695, %v517_v17 }
 0x389   :  { %v510_v24 = vpop.xlane.xlu1 %509 }
 0x38a   :  { %3374 = vpow2.f32 %v528_v21  ;;  %v520_v25 = vsub.f32 %v3126_v59, %v510_v24 }
 0x38c   :  { %v534_v28 = vmul.f32 1.442695, %v520_v25 }
 0x38d   :  { %v507_v30 = vpop.xlane.xlu1 %506 }
 0x38e   :  { %3376 = vpow2.f32 %v534_v28  ;;  %v519_v33 = vsub.f32 %v477_v1, %v507_v30 }
 0x38f   :  { %3378 = vpow2.f32 %v524_v26 }
 0x390   :  { %v4124_v31 = vpop.eup %3370  ;;  %3380 = vpow2.f32 %v530_v32  ;;  %v532_v39 = vmul.f32 1.442695, %v519_v33  ;;  %v3347_v33 = vld [vmem:[#allocation8 + $0x8] sm:$0xff]  }
 0x391   :  { %v513_v34 = vpop.xlane.xlu1 %512  ;;  %v544_v35 = vsel %vm489_vm2, %v4124_v31, 0.0  ;;  %v3373_v36 = vpop.eup %3372 }
 0x392   :  { %v521_v37 = vsub.f32 %v3127_v61, %v513_v34  ;;  %545 = vadd.xlane.f32.xlu1 %v544_v35  ;;  %v538_v46 = vsel %vm489_vm2, %v3373_v36, 0.0 }
 0x394   :  { %v3375_v38 = vpop.eup %3374  ;;  %v536_v44 = vmul.f32 1.442695, %v521_v37 }
 0x395   :  { %v547_v45 = vsel %vm489_vm2, %v3375_v38, 0.0 }
 0x396   :  { %3382 = vpow2.f32 %v536_v44  ;;  %548 = vadd.xlane.f32.xlu0 %v547_v45  ;;  %539 = vadd.xlane.f32.xlu1 %v538_v46 }
 0x397   :  { %3384 = vpow2.f32 %v532_v39 }
 0x398   :  { %v4130_v47 = vpop.eup %3376 }
 0x399   :  { %v556_v48 = vsel %vm489_vm2, %v4130_v47, 0.0  ;;  %v3379_v49 = vpop.eup %3378 }
 0x39a   :  { %557 = vadd.xlane.f32.xlu1 %v556_v48  ;;  %v541_v50 = vsel %vm489_vm2, %v3379_v49, 0.0  ;;  %v3381_v51 = vpop.eup %3380 }
 0x39b   :  { %v550_v53 = vsel %vm489_vm2, %v3381_v51, 0.0 }
 0x39e   :  { %542 = vadd.xlane.f32.xlu1 %v541_v50 }
 0x3a0   :  { %v3383_v52 = vpop.eup %3382 }
 0x3a1   :  { %v559_v54 = vsel %vm489_vm2, %v3383_v52, 0.0  ;;  %v3385_v55 = vpop.eup %3384 }
 0x3a2   :  { %551 = vadd.xlane.f32.xlu1 %v550_v53  ;;  %560 = vadd.xlane.f32.xlu0 %v559_v54  ;;  %v553_v56 = vsel %vm489_vm2, %v3385_v55, 0.0 }
 0x3a6   :  { %554 = vadd.xlane.f32.xlu0 %v553_v56 }
 0x3b3   :  { %582 = vrot.lane.b32.xlu1 %v4075_v23, %s4636_s27 }
 0x3bc   :  { %643 = vrot.lane.b32.xlu0 %v4083_v29, %s4636_s27 }
 0x41f   :  { %v546_v57 = vpop.xlane.xlu1 %545 }
 0x423   :  { %v540_v58 = vpop.xlane.xlu1 %539  ;;  %v549_v59 = vpop.xlane.xlu0 %548 }
 0x424   :  { %3386 = vrcp.f32 %v549_v59 }
 0x425   :  { %3388 = vrcp.f32 %v540_v58 }
 0x426   :  { %3390 = vrcp.f32 %v546_v57 }
 0x427   :  { %v558_v60 = vpop.xlane.xlu1 %557 }
 0x42b   :  { %v543_v61 = vpop.xlane.xlu1 %542 }
 0x42c   :  { %3392 = vrcp.f32 %v543_v61  ;;  %v915_v61 = vsel %vm227_vm1, %v4094_v41, 0 }
 0x42e   :  { %v3387_v1 = vpop.eup %3386 }
 0x42f   :  { %v561_v62 = vpop.xlane.xlu0 %560  ;;  %v552_v63 = vpop.xlane.xlu1 %551  ;;  %v573_v8 = vmul.f32 %v3387_v1, %v3375_v38 }
 0x430   :  { %3394 = vrcp.f32 %v561_v62  ;;  %v3389_v5 = vpop.eup %3388  ;;  %v2914_v62 = vld [vmem:[#allocation7] ss:$0 sm:$0xff] }
 0x431   :  { %3396 = vrcp.f32 %v552_v63  ;;  %v3391_v6 = vpop.eup %3390  ;;  %v570_v10 = vmul.f32 %v3389_v5, %v3373_v36 }
 0x432   :  { %3398 = vrcp.f32 %v558_v60  ;;  %v572_v12 = vmul.f32 %v3391_v6, %v4124_v31  ;;  %v3346_v31 = vld [vmem:[#allocation8] sm:$0xff]  }
 0x433   :  { %v555_v23 = vpop.xlane.xlu0 %554  ;;  %v583_v2 = vpop.permute.xlu1 %582 }
 0x434   :  { %3400 = vrcp.f32 %v555_v23  ;;  %v592_v29 = vsel %vm590_vm3, %v583_v2, 0  ;;  %3310 = vmatprep.subr.msk.bf16.mxu0 %vm590_vm3, %v583_v2  ;;  %v579_v16 = vpack.c.bf16 %v573_v8, %v572_v12 }
 0x435   :  { %3129 = vmatpush3.bf16.msra.mxu0 %v592_v29 }
 0x436   :  { %v3393_v7 = vpop.eup %3392  ;;  %3140 = vmatprep.subr.bf16.mxu0 %v3777_v0 }
 0x437   :  { %v644_v9 = vpop.permute.xlu0 %643  ;;  %v571_v11 = vmul.f32 %v3393_v7, %v3379_v49 }
 0x438   :  { %v652_v13 = vsel %vm590_vm3, %v644_v9, 0  ;;  %3311 = vmatprep.subr.msk.bf16.mxu1 %vm590_vm3, %v644_v9 }
 0x439   :  { %3135 = vmatpush3.bf16.msra.mxu1 %v652_v13  ;;  %v578_v14 = vpack.c.bf16 %v571_v11, %v570_v10 }
 0x43a   :  { %3148 = vmatprep.subr.bf16.mxu1 %v3777_v0  ;;  %v3395_v17 = vpop.eup %3394 }
 0x43b   :  { %3130 = vmatprep.mubr.msk.bf16.mxu0 %vm489_vm2, %v578_v14  ;;  %v3397_v20 = vpop.eup %3396  ;;  %v577_v25 = vmul.f32 %v3395_v17, %v3383_v52 }
 0x43c   :  { %3131 = vmatmul.mubr.msk.bf16.vlgmr.msra.gmra.mrb[8].mxu0 %vm489_vm2, %v579_v16  ;;  %v3399_v21 = vpop.eup %3398  ;;  %v574_v26 = vmul.f32 %v3397_v20, %v3381_v51 }
 0x43d   :  { %3141 = vmatpush3.bf16.msra.mxu0 %v3344_v15  ;;  %3144 = vmatprep.mubr.msk.bf16.mxu0 %vm3778_vm0, %v3777_v0  ;;  %v576_v28 = vmul.f32 %v3399_v21, %v4130_v47 }
 0x43e   :  { %v3401_v24 = vpop.eup %3400  ;;  %3142 = vmatprep.subr.bf16.mxu0 %v3777_v0 }
 0x43f   :  { %v575_v27 = vmul.f32 %v3401_v24, %v3385_v55  ;;  %v581_v32 = vpack.c.bf16 %v577_v25, %v576_v28 }
 0x441   :  { %3143 = vmatpush3.bf16.msra.mxu0 %v3345_v22  ;;  %v580_v30 = vpack.c.bf16 %v575_v27, %v574_v26  ;;  %v814_v22 = vlaneseq }
 0x442   :  { %3312 = vmatprep.subr.msk.bf16.mxu0 %vm227_vm1, %v4094_v41 }
 0x443   :  { %3136 = vmatprep.mubr.msk.bf16.mxu1 %vm489_vm2, %v580_v30  ;;  %v4187_v28 = vshrl.u32 %v814_v22, 7 }
 0x444   :  { %3137 = vmatmul.mubr.msk.bf16.vlgmr.msra.gmra.mrb[8].mxu1 %vm489_vm2, %v581_v32 }
 0x445   :  { %3149 = vmatpush3.bf16.msra.mxu1 %v3346_v31  ;;  %3152 = vmatprep.mubr.msk.bf16.mxu1 %vm3778_vm0, %v3777_v0  ;;  %v4190_v30 = vsub.s32 0, %v4187_v28  ;;  %v4195_v31 = vld [vmem:[%s4604_s17] sm:$0x7] }
 0x446   :  { %3150 = vmatprep.subr.bf16.mxu1 %v3777_v0 }
 0x447   :  { %v817_v32 = vrot.slane %v4195_v31, %v4190_v30 }
 0x449   :  { %3151 = vmatpush3.bf16.msra.mxu1 %v3347_v33 }
 0x44a   :  { %3313 = vmatprep.subr.msk.bf16.mxu1 %vm227_vm1, %v4092_v40 }
 0x50f   :  { %v3132_v34 = vpop.f32.mrb[8].mxu0 }
 0x510   :  { %v628_v35 = vpop.f32.mrb[9].mxu0  ;;  %v705_v44 = vmul.f32 %v3132_v34, %v4099_v42  ;;  %v4202_v34 = vld [vmem:[%s4605_s18] sm:$0x7] }
 0x511   :  { %v3133_v36 = vpop.f32.mrb[10].mxu0  ;;  %v703_v38 = vmul.f32 %v628_v35, %v4068_v18 }
 0x512   :  { %v631_v37 = vpop.f32.mrb[11].mxu0  ;;  %v706_v46 = vmul.f32 %v3133_v36, %v4104_v43 }
 0x513   :  { %v704_v39 = vmul.f32 %v631_v37, %v4073_v19 }
 0x515   :  { %v711_v45 = vadd.f32 %v704_v39, %v703_v38  ;;  %v823_v39 = vrot.slane %v4202_v34, %v4190_v30 }
 0x517   :  { %v713_v47 = vadd.f32 %v711_v45, %v705_v44  ;;  %v3138_v48 = vpop.f32.mrb[8].mxu1 }
 0x518   :  { %v688_v49 = vpop.f32.mrb[9].mxu1  ;;  %v709_v55 = vmul.f32 %v3138_v48, %v4099_v42  ;;  %v973_v48 = vsel %vm227_vm1, %v4092_v40, 0 }
 0x519   :  { %v715_v50 = vadd.f32 %v713_v47, %v706_v46  ;;  %v3139_v51 = vpop.f32.mrb[10].mxu1  ;;  %v707_v53 = vmul.f32 %v688_v49, %v4068_v18  ;;  %v2918_v49 = vld [vmem:[#allocation10] ss:$0 sm:$0xff] }
 0x51a   :  { %v691_v52 = vpop.f32.mrb[11].mxu1  ;;  %v710_v57 = vmul.f32 %v3139_v51, %v4104_v43 }
 0x51b   :  { %v708_v54 = vmul.f32 %v691_v52, %v4073_v19 }
 0x51d   :  { %v712_v56 = vadd.f32 %v708_v54, %v707_v53 }
 0x51f   :  { %v714_v58 = vadd.f32 %v712_v56, %v709_v55 }
 0x521   :  { %v716_v59 = vadd.f32 %v714_v58, %v710_v57 }
 0x523   :  { %v717_v60 = vpack.c.bf16 %v716_v59, %v715_v50 }
 0x525   :  { %3145 = vmatmul.mubr.msk.bf16.vlgmr.msra.gmra.mrb[12].mxu0 %vm227_vm1, %v717_v60 }
 0x526   :  { %3157 = vmatpush3.bf16.xpose.msra.mxu0 %v915_v61 }
 0x5f8   :  { %v778_v63 = vpop.f32.mrb[12].mxu0 }
 0x5f9   :  { %v779_v1 = vadd.f32 %v2914_v62, %v778_v63  ;;  %v3146_v23 = vpop.f32.mrb[13].mxu0 }
 0x5fa   :  { %v781_v2 = vpop.f32.mrb[14].mxu0 }
 0x5fb   :  { %v782_v5 = vadd.f32 %v2914_v62, %v781_v2  ;;  %v3147_v29 = vpop.f32.mrb[15].mxu0  ;;  %v785_v6 = vadd.f32 %v779_v1, %v4043_v3 }
 0x5fd   :  { %v787_v7 = vsel %vm227_vm1, %v785_v6, 0.0  ;;  %v786_v8 = vadd.f32 %v782_v5, %v4045_v4 }
 0x5fe   :  { %788 = vadd.xlane.f32.xlu1 %v787_v7 }
 0x5ff   :  { %v790_v9 = vsel %vm227_vm1, %v786_v8, 0.0 }
 0x600   :  { %791 = vadd.xlane.f32.xlu0 %v790_v9 }
 0x68b   :  { %v789_v10 = vpop.xlane.xlu1 %788 }
 0x68c   :  { %v794_v11 = vmul.f32 0.03125, %v789_v10 }
 0x68d   :  { %v792_v12 = vpop.xlane.xlu0 %791 }
 0x68e   :  { %v796_v13 = vsub.f32 %v785_v6, %v794_v11  ;;  %v795_v14 = vmul.f32 0.03125, %v792_v12 }
 0x690   :  { %v797_v15 = vsub.f32 %v786_v8, %v795_v14  ;;  %v798_v16 = vmul.f32 %v796_v13, %v796_v13 }
 0x692   :  { %v800_v17 = vsel %vm227_vm1, %v798_v16, 0.0  ;;  %v799_v20 = vmul.f32 %v797_v15, %v797_v15 }
 0x693   :  { %801 = vadd.xlane.f32.xlu1 %v800_v17 }
 0x694   :  { %v803_v3 = vsel %vm227_vm1, %v799_v20, 0.0 }
 0x695   :  { %804 = vadd.xlane.f32.xlu0 %v803_v3 }
 0x720   :  { %v802_v21 = vpop.xlane.xlu1 %801 }
 0x721   :  { %v806_v4 = vmul.f32 0.03125, %v802_v21 }
 0x722   :  { %v805_v24 = vpop.xlane.xlu0 %804 }
 0x723   :  { %v808_v25 = vadd.f32 1e-05, %v806_v4  ;;  %v807_v26 = vmul.f32 0.03125, %v805_v24 }
 0x725   :  { %3402 = vrsqrt.f32 %v808_v25  ;;  %v809_v27 = vadd.f32 1e-05, %v807_v26 }
 0x727   :  { %3404 = vrsqrt.f32 %v809_v27 }
 0x72f   :  { %v3403_v33 = vpop.eup %3402 }
 0x730   :  { %v812_v35 = vmul.f32 %v3403_v33, %v796_v13 }
 0x731   :  { %v3405_v36 = vpop.eup %3404 }
 0x732   :  { %v818_v37 = vmul.f32 %v817_v32, %v812_v35  ;;  %v813_v38 = vmul.f32 %v3405_v36, %v797_v15 }
 0x734   :  { %v819_v44 = vmul.f32 %v817_v32, %v813_v38  ;;  %v4206_v45 = vadd.f32 %v823_v39, %v818_v37 }
 0x736   :  { %v4208_v46 = vadd.f32 %v823_v39, %v819_v44 }
 0x738   :  { %v826_v47 = vpack.c.bf16 %v4208_v46, %v4206_v45 }
 0x73a   :  { %3153 = vmatmul.mubr.msk.bf16.vlgmr.msra.gmra.mrb[12].mxu1 %vm227_vm1, %v826_v47 }
 0x73b   :  { %3163 = vmatpush3.bf16.xpose.msra.mxu1 %v973_v48 }
 0x80d   :  { %v887_v50 = vpop.f32.mrb[12].mxu1 }
 0x80e   :  { %v888_v51 = vadd.f32 %v2918_v49, %v887_v50  ;;  %v3154_v52 = vpop.f32.mrb[13].mxu1 }
 0x80f   :  { %v890_v53 = vpop.f32.mrb[14].mxu1 }
 0x810   :  { %v894_v54 = vmul.f32 %v888_v51, %v4068_v18  ;;  %v895_v55 = vmul.f32 %v888_v51, %v4073_v19  ;;  %v896_v56 = vmul.f32 %v888_v51, %v4099_v42  ;;  %v897_v57 = vmul.f32 %v888_v51, %v4104_v43  ;;  %v3155_v58 = vpop.f32.mrb[15].mxu1 }
 0x811   :  { %v891_v59 = vadd.f32 %v2918_v49, %v890_v53 }
 0x812   :  { %v903_v60 = vpack.c.bf16 %v897_v57, %v896_v56  ;;  %v902_v61 = vpack.c.bf16 %v895_v55, %v894_v54 }
 0x813   :  { %v898_v62 = vmul.f32 %v891_v59, %v4068_v18  ;;  %v899_v63 = vmul.f32 %v891_v59, %v4073_v19  ;;  %v900_v1 = vmul.f32 %v891_v59, %v4099_v42  ;;  %v901_v23 = vmul.f32 %v891_v59, %v4104_v43 }
 0x814   :  { %3158 = vmatprep.mubr.msk.bf16.mxu0 %vm227_vm1, %v902_v61 }
 0x815   :  { %v905_v2 = vpack.c.bf16 %v901_v23, %v900_v1  ;;  %3159 = vmatmul.mubr.msk.bf16.vlgmr.msra.gmra.mrb[16].mxu0 %vm227_vm1, %v903_v60  ;;  %v904_v5 = vpack.c.bf16 %v899_v63, %v898_v62 }
 0x817   :  { %3164 = vmatprep.mubr.msk.bf16.mxu1 %vm227_vm1, %v904_v5 }
 0x818   :  { %3165 = vmatmul.mubr.msk.bf16.vlgmr.msra.gmra.mrb[16].mxu1 %vm227_vm1, %v905_v2 }
 0x8e8   :  { %v3160_v29 = vpop.f32.mrb[16].mxu0 }
 0x8e9   :  { %v951_v6 = vpop.f32.mrb[17].mxu0  ;;  %v1031_v7 = vsel %vm1024_vm4, %v3160_v29, -inf }
 0x8ea   :  { %1032 = vmax.xlane.f32.xlu1 %v1031_v7  ;;  %v3161_v8 = vpop.f32.mrb[18].mxu0  ;;  %v1025_v14 = vsel %vm1024_vm4, %v951_v6, -inf }
 0x8eb   :  { %v3166_v9 = vpop.f32.mrb[16].mxu1  ;;  %v954_v10 = vpop.f32.mrb[19].mxu0  ;;  %v1034_v11 = vsel %vm1024_vm4, %v3161_v8, -inf }
 0x8ec   :  { %v1009_v12 = vpop.f32.mrb[17].mxu1  ;;  %1035 = vmax.xlane.f32.xlu0 %v1034_v11  ;;  %v1028_v16 = vsel %vm1024_vm4, %v954_v10, -inf  ;;  %v1043_v3 = vsel %vm1024_vm4, %v3166_v9, -inf }
 0x8ed   :  { %v3167_v13 = vpop.f32.mrb[18].mxu1  ;;  %v1037_v17 = vsel %vm1024_vm4, %v1009_v12, -inf }
 0x8ee   :  { %v1012_v15 = vpop.f32.mrb[19].mxu1  ;;  %1026 = vmax.xlane.f32.xlu1 %v1025_v14  ;;  %v1046_v21 = vsel %vm1024_vm4, %v3167_v13, -inf }
 0x8ef   :  { %v1040_v20 = vsel %vm1024_vm4, %v1012_v15, -inf }
 0x8f0   :  { %1029 = vmax.xlane.f32.xlu0 %v1028_v16 }
 0x8f2   :  { %1038 = vmax.xlane.f32.xlu1 %v1037_v17 }
 0x8f4   :  { %1041 = vmax.xlane.f32.xlu0 %v1040_v20 }
 0x8f6   :  { %1044 = vmax.xlane.f32.xlu1 %v1043_v3 }
 0x8f8   :  { %1047 = vmax.xlane.f32.xlu0 %v1046_v21 }
 0x977   :  { %v1033_v4 = vpop.xlane.xlu1 %1032 }
 0x978   :  { %v1051_v22 = vsub.f32 %v3160_v29, %v1033_v4 }
 0x979   :  { %v1036_v24 = vpop.xlane.xlu0 %1035 }
 0x97a   :  { %v1061_v25 = vmul.f32 1.442695, %v1051_v22  ;;  %v1052_v26 = vsub.f32 %v3161_v8, %v1036_v24 }
 0x97b   :  { %v1027_v27 = vpop.xlane.xlu1 %1026 }
 0x97c   :  { %3406 = vpow2.f32 %v1061_v25  ;;  %v1063_v32 = vmul.f32 1.442695, %v1052_v26  ;;  %v1049_v33 = vsub.f32 %v951_v6, %v1027_v27 }
 0x97d   :  { %v1030_v35 = vpop.xlane.xlu0 %1029 }
 0x97e   :  { %3408 = vpow2.f32 %v1063_v32  ;;  %v1057_v36 = vmul.f32 1.442695, %v1049_v33  ;;  %v1050_v37 = vsub.f32 %v954_v10, %v1030_v35 }
 0x97f   :  { %v1039_v38 = vpop.xlane.xlu1 %1038 }
 0x980   :  { %3410 = vpow2.f32 %v1057_v36  ;;  %v1059_v39 = vmul.f32 1.442695, %v1050_v37  ;;  %v1053_v44 = vsub.f32 %v1009_v12, %v1039_v38 }
 0x981   :  { %v1042_v47 = vpop.xlane.xlu0 %1041 }
 0x982   :  { %3412 = vpow2.f32 %v1059_v39  ;;  %v1054_v49 = vsub.f32 %v1012_v15, %v1042_v47  ;;  %v1065_v51 = vmul.f32 1.442695, %v1053_v44 }
 0x983   :  { %v1045_v48 = vpop.xlane.xlu1 %1044 }
 0x984   :  { %v1055_v50 = vsub.f32 %v3166_v9, %v1045_v48  ;;  %v1067_v58 = vmul.f32 1.442695, %v1054_v49 }
 0x985   :  { %v1048_v52 = vpop.xlane.xlu0 %1047 }
 0x986   :  { %v3407_v53 = vpop.eup %3406  ;;  %v1069_v54 = vmul.f32 1.442695, %v1055_v50  ;;  %v1056_v55 = vsub.f32 %v3167_v13, %v1048_v52  ;;  %v3348_v52 = vld [vmem:[#allocation13] sm:$0xff]  }
 0x987   :  { %v1079_v56 = vsel %vm1024_vm4, %v3407_v53, 0.0 }
 0x988   :  { %v3409_v57 = vpop.eup %3408  ;;  %3414 = vpow2.f32 %v1069_v54  ;;  %v1071_v59 = vmul.f32 1.442695, %v1056_v55  ;;  %1080 = vadd.xlane.f32.xlu1 %v1079_v56 }
 0x989   :  { %3416 = vpow2.f32 %v1065_v51  ;;  %v1082_v60 = vsel %vm1024_vm4, %v3409_v57, 0.0 }
 0x98a   :  { %v3411_v61 = vpop.eup %3410  ;;  %3418 = vpow2.f32 %v1071_v59  ;;  %1083 = vadd.xlane.f32.xlu0 %v1082_v60 }
 0x98b   :  { %v1073_v62 = vsel %vm1024_vm4, %v3411_v61, 0.0  ;;  %3420 = vpow2.f32 %v1067_v58 }
 0x98c   :  { %v3413_v63 = vpop.eup %3412  ;;  %1074 = vadd.xlane.f32.xlu1 %v1073_v62 }
 0x98d   :  { %v1076_v1 = vsel %vm1024_vm4, %v3413_v63, 0.0 }
 0x98e   :  { %1077 = vadd.xlane.f32.xlu0 %v1076_v1 }
 0x992   :  { %v3415_v23 = vpop.eup %3414 }
 0x993   :  { %v3417_v2 = vpop.eup %3416  ;;  %v1091_v5 = vsel %vm1024_vm4, %v3415_v23, 0.0 }
 0x994   :  { %v3419_v29 = vpop.eup %3418  ;;  %1092 = vadd.xlane.f32.xlu1 %v1091_v5  ;;  %v1085_v8 = vsel %vm1024_vm4, %v3417_v2, 0.0 }
 0x995   :  { %v1094_v6 = vsel %vm1024_vm4, %v3419_v29, 0.0  ;;  %v3421_v7 = vpop.eup %3420 }
 0x996   :  { %1095 = vadd.xlane.f32.xlu0 %v1094_v6  ;;  %v1088_v9 = vsel %vm1024_vm4, %v3421_v7, 0.0 }
 0x998   :  { %1086 = vadd.xlane.f32.xlu1 %v1085_v8 }
 0x99a   :  { %1089 = vadd.xlane.f32.xlu0 %v1088_v9 }
 0x9a9   :  { %1118 = vrot.lane.b32.xlu1 %v4094_v41, %s3779_s4 }
 0x9b0   :  { %1177 = vrot.lane.b32.xlu0 %v4092_v40, %s3779_s4 }
 0xa15   :  { %v1081_v10 = vpop.xlane.xlu1 %1080 }
 0xa17   :  { %v1084_v11 = vpop.xlane.xlu0 %1083 }
 0xa19   :  { %v1075_v12 = vpop.xlane.xlu1 %1074 }
 0xa1a   :  { %3422 = vrcp.f32 %v1075_v12 }
 0xa1b   :  { %3424 = vrcp.f32 %v1084_v11  ;;  %v1078_v13 = vpop.xlane.xlu0 %1077 }
 0xa1c   :  { %3426 = vrcp.f32 %v1078_v13 }
 0xa1d   :  { %3428 = vrcp.f32 %v1081_v10 }
 0xa21   :  { %v1093_v14 = vpop.xlane.xlu1 %1092 }
 0xa23   :  { %v1096_v15 = vpop.xlane.xlu0 %1095 }
 0xa24   :  { %v3423_v16 = vpop.eup %3422  ;;  %3430 = vrcp.f32 %v1096_v15 }
 0xa25   :  { %v3425_v17 = vpop.eup %3424  ;;  %v1087_v20 = vpop.xlane.xlu1 %1086  ;;  %v1105_v22 = vmul.f32 %v3423_v16, %v3411_v61 }
 0xa26   :  { %v3427_v3 = vpop.eup %3426  ;;  %3432 = vrcp.f32 %v1087_v20  ;;  %v1108_v25 = vmul.f32 %v3425_v17, %v3409_v57 }
 0xa27   :  { %v3429_v21 = vpop.eup %3428  ;;  %3434 = vrcp.f32 %v1093_v14  ;;  %v1090_v4 = vpop.xlane.xlu0 %1089  ;;  %v1106_v24 = vmul.f32 %v3427_v3, %v3413_v63  ;;  %v2930_v14 = vld [vmem:[#allocation14] ss:$0 sm:$0xff] }
 0xa28   :  { %3436 = vrcp.f32 %v1090_v4  ;;  %v1107_v32 = vmul.f32 %v3429_v21, %v3407_v53  ;;  %v3349_v53 = vld [vmem:[#allocation13 + $0x8] sm:$0xff]  }
 0xa29   :  { %v1119_v26 = vpop.permute.xlu1 %1118  ;;  %v1113_v27 = vpack.c.bf16 %v1106_v24, %v1105_v22 }
 0xa2a   :  { %3168 = vmatprep.subr.bf16.mxu0 %v1119_v26  ;;  %v1114_v35 = vpack.c.bf16 %v1108_v25, %v1107_v32 }
 0xa2b   :  { %3169 = vmatpush3.bf16.msra.mxu0 %v1119_v26  ;;  %3170 = vmatprep.mubr.msk.bf16.mxu0 %vm1024_vm4, %v1113_v27  ;;  %v1178_v33 = vpop.permute.xlu0 %1177 }
 0xa2c   :  { %3174 = vmatprep.subr.bf16.mxu1 %v1178_v33  ;;  %3180 = vmatprep.subr.bf16.mxu0 %v3777_v0 }
 0xa2d   :  { %3175 = vmatpush3.bf16.msra.mxu1 %v1178_v33 }
 0xa2e   :  { %3171 = vmatmul.mubr.msk.bf16.vlgmr.msra.gmra.mrb[20].mxu0 %vm1024_vm4, %v1114_v35  ;;  %3188 = vmatprep.subr.bf16.mxu1 %v3777_v0  ;;  %v3431_v36 = vpop.eup %3430 }
 0xa2f   :  { %3184 = vmatprep.mubr.msk.bf16.mxu0 %vm3778_vm0, %v3777_v0  ;;  %v1112_v44 = vmul.f32 %v3431_v36, %v3419_v29  ;;  %3181 = vmatpush3.bf16.msra.mxu0 %v3348_v52  ;;  %v3350_v36 = vld [vmem:[#allocation16] sm:$0xff]  }
 0xa30   :  { %v3433_v37 = vpop.eup %3432  ;;  %3182 = vmatprep.subr.bf16.mxu0 %v3777_v0 }
 0xa31   :  { %v3435_v38 = vpop.eup %3434  ;;  %v1109_v47 = vmul.f32 %v3433_v37, %v3417_v2  ;;  %v3352_v37 = vld [vmem:[%s4602_s15] sm:$0xff]  }
 0xa32   :  { %v3437_v39 = vpop.eup %3436  ;;  %v1111_v49 = vmul.f32 %v3435_v38, %v3415_v23  ;;  %v3353_v38 = vld [vmem:[%s4602_s15 + $0x8] sm:$0xff]  }
 0xa33   :  { %v1110_v48 = vmul.f32 %v3437_v39, %v3421_v7  ;;  %3183 = vmatpush3.bf16.msra.mxu0 %v3349_v53 }
 0xa34   :  { %v1116_v51 = vpack.c.bf16 %v1112_v44, %v1111_v49  ;;  %3196 = vmatprep.subr.bf16.mxu0 %v3777_v0 }
 0xa35   :  { %v1115_v50 = vpack.c.bf16 %v1110_v48, %v1109_v47 }
 0xa37   :  { %3176 = vmatprep.mubr.msk.bf16.mxu1 %vm1024_vm4, %v1115_v50 }
 0xa38   :  { %3177 = vmatmul.mubr.msk.bf16.vlgmr.msra.gmra.mrb[20].mxu1 %vm1024_vm4, %v1116_v51  ;;  %v4287_v51 = vsub.s32 1, %v4187_v28 }
 0xa39   :  { %3192 = vmatprep.mubr.msk.bf16.mxu1 %vm3778_vm0, %v3777_v0  ;;  %3189 = vmatpush3.bf16.msra.mxu1 %v3350_v36 }
 0xa3a   :  { %3190 = vmatprep.subr.bf16.mxu1 %v3777_v0  ;;  %v1348_v52 = vrot.slane %v4195_v31, %v4287_v51 }
 0xb01   :  { %v3172_v54 = vpop.f32.mrb[20].mxu0 }
 0xb02   :  { %v1161_v55 = vpop.f32.mrb[21].mxu0  ;;  %v1237_v60 = vmul.f32 %v3172_v54, %v4099_v42 }
 0xb03   :  { %v3173_v56 = vpop.f32.mrb[22].mxu0  ;;  %v1235_v58 = vmul.f32 %v1161_v55, %v4068_v18 }
 0xb04   :  { %v1164_v57 = vpop.f32.mrb[23].mxu0  ;;  %v1238_v62 = vmul.f32 %v3173_v56, %v4104_v43 }
 0xb05   :  { %v1236_v59 = vmul.f32 %v1164_v57, %v4073_v19 }
 0xb07   :  { %v1243_v61 = vadd.f32 %v1236_v59, %v1235_v58  ;;  %v1354_v58 = vrot.slane %v4202_v34, %v4287_v51 }
 0xb09   :  { %v1245_v63 = vadd.f32 %v1243_v61, %v1237_v60 }
 0xb0b   :  { %v1247_v1 = vadd.f32 %v1245_v63, %v1238_v62  ;;  %v3178_v23 = vpop.f32.mrb[20].mxu1  ;;  %v3354_v63 = vld [vmem:[%s4602_s15 + $0x10] sm:$0xff]  }
 0xb0c   :  { %v1220_v2 = vpop.f32.mrb[21].mxu1  ;;  %v1241_v8 = vmul.f32 %v3178_v23, %v4099_v42  ;;  %v2934_v23 = vld [vmem:[%s4601_s14] ss:$0 sm:$0xff] }
 0xb0d   :  { %v3179_v5 = vpop.f32.mrb[22].mxu1  ;;  %v1239_v6 = vmul.f32 %v1220_v2, %v4068_v18 }
 0xb0e   :  { %v1223_v29 = vpop.f32.mrb[23].mxu1  ;;  %v1242_v10 = vmul.f32 %v3179_v5, %v4104_v43 }
 0xb0f   :  { %v1240_v7 = vmul.f32 %v1223_v29, %v4073_v19 }
 0xb11   :  { %v1244_v9 = vadd.f32 %v1240_v7, %v1239_v6 }
 0xb13   :  { %v1246_v11 = vadd.f32 %v1244_v9, %v1241_v8 }
 0xb15   :  { %v1248_v12 = vadd.f32 %v1246_v11, %v1242_v10 }
 0xb17   :  { %v1249_v13 = vpack.c.bf16 %v1248_v12, %v1247_v1  ;;  %v3355_v1 = vld [vmem:[%s4602_s15 + $0x18] sm:$0xff]   ;;  %v2938_v12 = vld [vmem:[%s4603_s16] ss:$0 sm:$0xff] }
 0xb19   :  { %3185 = vmatmul.mubr.msk.bf16.vlgmr.msra.gmra.mrb[24].mxu0 %vm227_vm1, %v1249_v13 }
 0xb1a   :  { %3204 = vmatprep.mubr.msk.bf16.mxu0 %vm3778_vm0, %v3777_v0  ;;  %3197 = vmatpush3.bf16.msra.mxu0 %v3352_v37 }
 0xb1b   :  { %3198 = vmatprep.subr.bf16.mxu0 %v3777_v0 }
 0xb1e   :  { %3199 = vmatpush3.bf16.msra.mxu0 %v3353_v38 }
 0xb1f   :  { %3200 = vmatprep.subr.bf16.mxu0 %v3777_v0 }
 0xb22   :  { %3201 = vmatpush3.bf16.msra.mxu0 %v3354_v63 }
 0xb23   :  { %3202 = vmatprep.subr.bf16.mxu0 %v3777_v0 }
 0xb26   :  { %3203 = vmatpush3.bf16.msra.mxu0 %v3355_v1 }
 0xbec   :  { %v1310_v15 = vpop.f32.mrb[24].mxu0 }
 0xbed   :  { %v1311_v16 = vadd.f32 %v2930_v14, %v1310_v15  ;;  %v3186_v17 = vpop.f32.mrb[25].mxu0 }
 0xbee   :  { %v1313_v18 = vpop.f32.mrb[26].mxu0 }
 0xbef   :  { %v1314_v20 = vadd.f32 %v2930_v14, %v1313_v18  ;;  %v3187_v19 = vpop.f32.mrb[27].mxu0  ;;  %v1317_v42 = vadd.f32 %v1311_v16, %v4206_v45 }
 0xbf1   :  { %v1319_v3 = vsel %vm227_vm1, %v1317_v42, 0.0  ;;  %v1318_v43 = vadd.f32 %v1314_v20, %v4208_v46  ;;  %v3351_v46 = vld [vmem:[#allocation16 + $0x8] sm:$0xff]  }
 0xbf2   :  { %1320 = vadd.xlane.f32.xlu1 %v1319_v3  ;;  %3191 = vmatpush3.bf16.msra.mxu1 %v3351_v46 }
 0xbf3   :  { %v1322_v21 = vsel %vm227_vm1, %v1318_v43, 0.0  ;;  %3208 = vmatprep.subr.bf16.mxu1 %v3777_v0 }
 0xbf4   :  { %1323 = vadd.xlane.f32.xlu0 %v1322_v21 }
 0xc7f   :  { %v1321_v4 = vpop.xlane.xlu1 %1320 }
 0xc80   :  { %v1325_v22 = vmul.f32 0.03125, %v1321_v4 }
 0xc81   :  { %v1324_v24 = vpop.xlane.xlu0 %1323 }
 0xc82   :  { %v1327_v25 = vsub.f32 %v1317_v42, %v1325_v22  ;;  %v1326_v26 = vmul.f32 0.03125, %v1324_v24 }
 0xc84   :  { %v1328_v27 = vsub.f32 %v1318_v43, %v1326_v26  ;;  %v1329_v32 = vmul.f32 %v1327_v25, %v1327_v25 }
 0xc86   :  { %v1331_v33 = vsel %vm227_vm1, %v1329_v32, 0.0  ;;  %v1330_v35 = vmul.f32 %v1328_v27, %v1328_v27 }
 0xc87   :  { %1332 = vadd.xlane.f32.xlu1 %v1331_v33 }
 0xc88   :  { %v1334_v45 = vsel %vm227_vm1, %v1330_v35, 0.0  ;;  %v3356_v35 = vld [vmem:[%s4637_s13 + $0x10] sm:$0xff]  }
 0xc89   :  { %1335 = vadd.xlane.f32.xlu0 %v1334_v45  ;;  %v3357_v45 = vld [vmem:[%s4637_s13 + $0x18] sm:$0xff]  }
 0xd14   :  { %v1333_v39 = vpop.xlane.xlu1 %1332 }
 0xd15   :  { %v1337_v44 = vmul.f32 0.03125, %v1333_v39 }
 0xd16   :  { %v1336_v47 = vpop.xlane.xlu0 %1335 }
 0xd17   :  { %v1339_v48 = vadd.f32 1e-05, %v1337_v44  ;;  %v1338_v49 = vmul.f32 0.03125, %v1336_v47  ;;  %v4322_v47 = vsub.s32 2, %v4187_v28 }
 0xd19   :  { %3438 = vrsqrt.f32 %v1339_v48  ;;  %v1340_v50 = vadd.f32 1e-05, %v1338_v49  ;;  %v1543_v48 = vrot.slane %v4195_v31, %v4322_v47 }
 0xd1b   :  { %3440 = vrsqrt.f32 %v1340_v50 }
 0xd23   :  { %v3439_v53 = vpop.eup %3438 }
 0xd24   :  { %v1343_v54 = vmul.f32 %v3439_v53, %v1327_v25 }
 0xd25   :  { %v3441_v55 = vpop.eup %3440 }
 0xd26   :  { %v1349_v56 = vmul.f32 %v1348_v52, %v1343_v54  ;;  %v1344_v57 = vmul.f32 %v3441_v55, %v1328_v27  ;;  %v1549_v55 = vrot.slane %v4202_v34, %v4322_v47  ;;  %v4340_v34 = vld [vmem:[%s4639_s5] sm:$0xff] }
 0xd28   :  { %v1350_v59 = vmul.f32 %v1348_v52, %v1344_v57  ;;  %v1355_v60 = vadd.f32 %v1354_v58, %v1349_v56 }
 0xd2a   :  { %v1356_v61 = vadd.f32 %v1354_v58, %v1350_v59  ;;  %v2950_v59 = vld [vmem:[#allocation5 + $0x1] ss:$0 sm:$0xff] }
 0xd2c   :  { %v1357_v62 = vpack.c.bf16 %v1356_v61, %v1355_v60 }
 0xd2e   :  { %3193 = vmatmul.mubr.msk.bf16.vlgmr.msra.gmra.mrb[24].mxu1 %vm227_vm1, %v1357_v62 }
 0xd2f   :  { %3212 = vmatprep.mubr.msk.bf16.mxu1 %vm3778_vm0, %v3777_v0  ;;  %3209 = vmatpush3.bf16.msra.mxu1 %v3356_v35 }
 0xd30   :  { %3210 = vmatprep.subr.bf16.mxu1 %v3777_v0 }
 0xd33   :  { %3211 = vmatpush3.bf16.msra.mxu1 %v3357_v45 }
 0xe01   :  { %v1418_v2 = vpop.f32.mrb[24].mxu1 }
 0xe02   :  { %v1419_v5 = vadd.f32 %v2934_v23, %v1418_v2  ;;  %v3194_v29 = vpop.f32.mrb[25].mxu1 }
 0xe03   :  { %v1421_v6 = vpop.f32.mrb[26].mxu1 }
 0xe04   :  { %v1422_v7 = vadd.f32 %v2934_v23, %v1421_v6  ;;  %v3195_v8 = vpop.f32.mrb[27].mxu1  ;;  %v1425_v9 = vmax.f32 %v1419_v5, 0.0  ;;  %v4346_v5 = vld [vmem:[%s4639_s5 + $0x8] sm:$0xff] }
 0xe06   :  { %v1426_v10 = vmax.f32 %v1422_v7, 0.0 }
 0xe08   :  { %v1427_v11 = vpack.c.bf16 %v1426_v10, %v1425_v9 }
 0xe0a   :  { %3205 = vmatmul.mubr.msk.bf16.vlgmr.msra.gmra.mrb[28].mxu0 %vm1467_vm5, %v1427_v11 }
 0xedd   :  { %v1505_v13 = vpop.f32.mrb[28].mxu0 }
 0xede   :  { %v1506_v14 = vadd.f32 %v2938_v12, %v1505_v13  ;;  %v3206_v15 = vpop.f32.mrb[29].mxu0 }
 0xedf   :  { %v1508_v16 = vpop.f32.mrb[30].mxu0 }
 0xee0   :  { %v1509_v17 = vadd.f32 %v2938_v12, %v1508_v16  ;;  %v3207_v18 = vpop.f32.mrb[31].mxu0  ;;  %v1512_v20 = vadd.f32 %v1506_v14, %v1355_v60  ;;  %v4364_v14 = vld [vmem:[%s4639_s5 + $0x10] sm:$0xff]  ;;  %v4370_v16 = vld [vmem:[%s4639_s5 + $0x18] sm:$0xff] }
 0xee2   :  { %v1514_v19 = vsel %vm227_vm1, %v1512_v20, 0.0  ;;  %v1513_v42 = vadd.f32 %v1509_v17, %v1356_v61 }
 0xee3   :  { %1515 = vadd.xlane.f32.xlu1 %v1514_v19 }
 0xee4   :  { %v1517_v3 = vsel %vm227_vm1, %v1513_v42, 0.0 }
 0xee5   :  { %1518 = vadd.xlane.f32.xlu0 %v1517_v3 }
 0xf70   :  { %v1516_v43 = vpop.xlane.xlu1 %1515 }
 0xf71   :  { %v1520_v21 = vmul.f32 0.03125, %v1516_v43 }
 0xf72   :  { %v1519_v4 = vpop.xlane.xlu0 %1518 }
 0xf73   :  { %v1522_v22 = vsub.f32 %v1512_v20, %v1520_v21  ;;  %v1521_v24 = vmul.f32 0.03125, %v1519_v4 }
 0xf75   :  { %v1523_v25 = vsub.f32 %v1513_v42, %v1521_v24  ;;  %v1524_v26 = vmul.f32 %v1522_v22, %v1522_v22 }
 0xf77   :  { %v1526_v27 = vsel %vm227_vm1, %v1524_v26, 0.0  ;;  %v1525_v32 = vmul.f32 %v1523_v25, %v1523_v25 }
 0xf78   :  { %1527 = vadd.xlane.f32.xlu1 %v1526_v27 }
 0xf79   :  { %v1529_v33 = vsel %vm227_vm1, %v1525_v32, 0.0 }
 0xf7a   :  { %1530 = vadd.xlane.f32.xlu0 %v1529_v33 }
0x1005   :  { %v1528_v36 = vpop.xlane.xlu1 %1527 }
0x1006   :  { %v1532_v46 = vmul.f32 0.03125, %v1528_v36 }
0x1007   :  { %v1531_v37 = vpop.xlane.xlu0 %1530 }
0x1008   :  { %v1534_v38 = vadd.f32 1e-05, %v1532_v46  ;;  %v1533_v39 = vmul.f32 0.03125, %v1531_v37 }
0x100a   :  { %3442 = vrsqrt.f32 %v1534_v38  ;;  %v1535_v44 = vadd.f32 1e-05, %v1533_v39 }
0x100c   :  { %3444 = vrsqrt.f32 %v1535_v44 }
0x1014   :  { %v3443_v49 = vpop.eup %3442 }
0x1015   :  { %v1538_v50 = vmul.f32 %v3443_v49, %v1522_v22 }
0x1016   :  { %v3445_v52 = vpop.eup %3444 }
0x1017   :  { %v1544_v53 = vmul.f32 %v1543_v48, %v1538_v50  ;;  %v1539_v54 = vmul.f32 %v3445_v52, %v1523_v25 }
0x1019   :  { %v1545_v56 = vmul.f32 %v1543_v48, %v1539_v54  ;;  %v4328_v57 = vadd.f32 %v1549_v55, %v1544_v53 }
0x101b   :  { %v4330_v58 = vadd.f32 %v1549_v55, %v1545_v56 }
0x101d   :  { %v1556_v28 = vpack.c.bf16 %v4330_v58, %v4328_v57 }
0x101f   :  { %3213 = vmatmul.mubr.msk.bf16.vlgmr.msra.gmra.mrb[28].mxu1 %vm227_vm1, %v1556_v28 }
0x10f2   :  { %v1619_v31 = vpop.f32.mrb[28].mxu1 }
0x10f3   :  { %v1620_v60 = vadd.f32 %v2950_v59, %v1619_v31  ;;  %v3214_v61 = vpop.f32.mrb[29].mxu1 }
0x10f4   :  { %v1622_v62 = vpop.f32.mrb[30].mxu1 }
0x10f5   :  { %v1623_v63 = vadd.f32 %v2950_v59, %v1622_v62  ;;  %v3215_v1 = vpop.f32.mrb[31].mxu1  ;;  %v4335_v23 = vpack.c.bf16 %v1620_v60, %v1620_v60  ;;  %v1626_v2 = vmul.f32 %v4340_v34, %v1620_v60  ;;  %v1627_v29 = vmul.f32 %v4346_v5, %v1620_v60 }
0x10f6   :  { %v1628_v15 = vmul.f32 %v4364_v14, %v1620_v60  ;;  %v1629_v17 = vmul.f32 %v4370_v16, %v1620_v60 }
0x10f7   :  { %1641 = vrot.lane.b32.xlu1 %v4335_v23, %s3779_s4  ;;  %v4351_v6 = vpack.c.bf16 %v1623_v63, %v1623_v63  ;;  %v1630_v7 = vmul.f32 %v4340_v34, %v1623_v63  ;;  %v1634_v8 = vpack.c.bf16 %v1627_v29, %v1626_v2  ;;  %v1631_v9 = vmul.f32 %v4346_v5, %v1623_v63 }
0x10f8   :  { %v1632_v20 = vmul.f32 %v4364_v14, %v1623_v63  ;;  %v1633_v19 = vmul.f32 %v4370_v16, %v1623_v63  ;;  %v1635_v42 = vpack.c.bf16 %v1629_v17, %v1628_v15 }
0x10f9   :  { %1702 = vrot.lane.b32.xlu0 %v4351_v6, %s3779_s4  ;;  %3218 = vmatprep.mubr.msk.bf16.mxu1 %vm227_vm1, %v1634_v8  ;;  %v1636_v10 = vpack.c.bf16 %v1631_v9, %v1630_v7  ;;  %s3781_s4 = smov [#allocation17]  }
0x10fa   :  { %v1637_v3 = vpack.c.bf16 %v1633_v19, %v1632_v20  ;;  %s2881_s7 = sshll.u32 %s3781_s4, 4  ;;  %s2882_s7 = int_to_ptr.vmem [resolvable:$true] %s2881_s7 }
0x10fb   :  { %3224 = vmatprep.mubr.msk.bf16.mxu0 %vm227_vm1, %v1636_v10  ;;  %s3728_s5 = scalar_lea.vmem %s2882_s7, 256  ;;  %p3733_p3 = scmp.lt.s32.totalorder %s2882_s7, %s2882_s7 }
0x10fc   :  { %p3729_p2 = scmp.ne.s32.totalorder %s2882_s7, %s3728_s5  ;;  %p3734_p4 = scmp.lt.s32.totalorder %s3728_s5, %s3728_s5 }
0x10fe   :  { %p3735_p5 = por %p3734_p4, %p3733_p3 }
0x1100   :  { %p3736_p6 = pnand %p3735_p5, %p3729_p2 }
0x1169   :  { %v1642_v11 = vpop.permute.xlu1 %1641 }
0x116a   :  { %v1650_v12 = vsel %vm227_vm1, %v1642_v11, 0  ;;  %3314 = vmatprep.subr.msk.bf16.mxu1 %vm227_vm1, %v1642_v11 }
0x116b   :  { %3217 = vmatpush3.bf16.xpose.msra.mxu1 %v1650_v12  ;;  %v1703_v13 = vpop.permute.xlu0 %1702 }
0x116c   :  { %v1711_v18 = vsel %vm227_vm1, %v1703_v13, 0  ;;  %3315 = vmatprep.subr.msk.bf16.mxu0 %vm227_vm1, %v1703_v13 }
0x116d   :  { %3223 = vmatpush3.bf16.xpose.msra.mxu0 %v1711_v18 }
0x1172   :  { %3219 = vmatmul.mubr.msk.bf16.vlgmr.msra.gmra.mrb[32].mxu1 %vm227_vm1, %v1635_v42 }
0x1174   :  { %3225 = vmatmul.mubr.msk.bf16.vlgmr.msra.gmra.mrb[32].mxu0 %vm227_vm1, %v1637_v3 }
0x1245   :  { %v3220_v43 = vpop.f32.mrb[32].mxu1 }
0x1246   :  { %v1686_v21 = vpop.f32.mrb[33].mxu1  ;;  %v1768_v4 = vsel %vm489_vm2, %v3220_v43, -inf }
0x1247   :  { %1769 = vmax.xlane.f32.xlu1 %v1768_v4  ;;  %v3221_v22 = vpop.f32.mrb[34].mxu1  ;;  %v3226_v24 = vpop.f32.mrb[32].mxu0  ;;  %v1762_v35 = vsel %vm489_vm2, %v1686_v21, -inf }
0x1248   :  { %v1689_v25 = vpop.f32.mrb[35].mxu1  ;;  %v1747_v26 = vpop.f32.mrb[33].mxu0  ;;  %v1771_v27 = vsel %vm489_vm2, %v3221_v22, -inf  ;;  %v1780_v37 = vsel %vm489_vm2, %v3226_v24, -inf }
0x1249   :  { %1772 = vmax.xlane.f32.xlu0 %v1771_v27  ;;  %v3227_v32 = vpop.f32.mrb[34].mxu0  ;;  %v1765_v45 = vsel %vm489_vm2, %v1689_v25, -inf  ;;  %v1774_v36 = vsel %vm489_vm2, %v1747_v26, -inf }
0x124a   :  { %v1750_v33 = vpop.f32.mrb[35].mxu0  ;;  %v1783_v38 = vsel %vm489_vm2, %v3227_v32, -inf }
0x124b   :  { %1763 = vmax.xlane.f32.xlu1 %v1762_v35  ;;  %v1777_v46 = vsel %vm489_vm2, %v1750_v33, -inf }
0x124d   :  { %1766 = vmax.xlane.f32.xlu0 %v1765_v45 }
0x124f   :  { %1775 = vmax.xlane.f32.xlu1 %v1774_v36 }
0x1251   :  { %1778 = vmax.xlane.f32.xlu0 %v1777_v46 }
0x1253   :  { %1781 = vmax.xlane.f32.xlu1 %v1780_v37 }
0x1255   :  { %1784 = vmax.xlane.f32.xlu0 %v1783_v38 }
0x12d4   :  { %v1770_v39 = vpop.xlane.xlu1 %1769 }
0x12d5   :  { %v1788_v44 = vsub.f32 %v3220_v43, %v1770_v39 }
0x12d6   :  { %v1773_v48 = vpop.xlane.xlu0 %1772 }
0x12d7   :  { %v1798_v49 = vmul.f32 1.442695, %v1788_v44  ;;  %v1789_v50 = vsub.f32 %v3221_v22, %v1773_v48 }
0x12d8   :  { %v1764_v52 = vpop.xlane.xlu1 %1763 }
0x12d9   :  { %3446 = vpow2.f32 %v1798_v49  ;;  %v1800_v53 = vmul.f32 1.442695, %v1789_v50  ;;  %v1786_v54 = vsub.f32 %v1686_v21, %v1764_v52 }
0x12da   :  { %v1767_v55 = vpop.xlane.xlu0 %1766 }
0x12db   :  { %3448 = vpow2.f32 %v1800_v53  ;;  %v1794_v56 = vmul.f32 1.442695, %v1786_v54  ;;  %v1787_v28 = vsub.f32 %v1689_v25, %v1767_v55 }
0x12dc   :  { %v1776_v59 = vpop.xlane.xlu1 %1775 }
0x12dd   :  { %3450 = vpow2.f32 %v1794_v56  ;;  %v1796_v31 = vmul.f32 1.442695, %v1787_v28  ;;  %v1790_v60 = vsub.f32 %v1747_v26, %v1776_v59 }
0x12de   :  { %v1779_v61 = vpop.xlane.xlu0 %1778 }
0x12df   :  { %3452 = vpow2.f32 %v1796_v31  ;;  %v1791_v63 = vsub.f32 %v1750_v33, %v1779_v61  ;;  %v1802_v2 = vmul.f32 1.442695, %v1790_v60 }
0x12e0   :  { %v1782_v62 = vpop.xlane.xlu1 %1781 }
0x12e1   :  { %v1792_v1 = vsub.f32 %v3226_v24, %v1782_v62  ;;  %v1804_v12 = vmul.f32 1.442695, %v1791_v63 }
0x12e2   :  { %v1785_v29 = vpop.xlane.xlu0 %1784 }
0x12e3   :  { %v3447_v7 = vpop.eup %3446  ;;  %v1806_v8 = vmul.f32 1.442695, %v1792_v1  ;;  %v1793_v9 = vsub.f32 %v3227_v32, %v1785_v29 }
0x12e4   :  { %v1816_v10 = vsel %vm489_vm2, %v3447_v7, 0.0 }
0x12e5   :  { %v3449_v11 = vpop.eup %3448  ;;  %3454 = vpow2.f32 %v1806_v8  ;;  %v1808_v13 = vmul.f32 1.442695, %v1793_v9  ;;  %1817 = vadd.xlane.f32.xlu1 %v1816_v10  ;;  %v3359_v8 = vld [vmem:[%s4640_s22 + $0x18] sm:$0xff]  }
0x12e6   :  { %3456 = vpow2.f32 %v1802_v2  ;;  %v1819_v15 = vsel %vm489_vm2, %v3449_v11, 0.0 }
0x12e7   :  { %v3451_v17 = vpop.eup %3450  ;;  %3458 = vpow2.f32 %v1808_v13  ;;  %1820 = vadd.xlane.f32.xlu0 %v1819_v15 }
0x12e8   :  { %v1810_v18 = vsel %vm489_vm2, %v3451_v17, 0.0  ;;  %3460 = vpow2.f32 %v1804_v12 }
0x12e9   :  { %v3453_v20 = vpop.eup %3452  ;;  %1811 = vadd.xlane.f32.xlu1 %v1810_v18 }
0x12ea   :  { %v1813_v19 = vsel %vm489_vm2, %v3453_v20, 0.0 }
0x12eb   :  { %1814 = vadd.xlane.f32.xlu0 %v1813_v19 }
0x12ef   :  { %v3455_v42 = vpop.eup %3454 }
0x12f0   :  { %v3457_v3 = vpop.eup %3456  ;;  %v1828_v43 = vsel %vm489_vm2, %v3455_v42, 0.0 }
0x12f1   :  { %v3459_v21 = vpop.eup %3458  ;;  %1829 = vadd.xlane.f32.xlu1 %v1828_v43  ;;  %v1822_v24 = vsel %vm489_vm2, %v3457_v3, 0.0 }
0x12f2   :  { %v1831_v4 = vsel %vm489_vm2, %v3459_v21, 0.0  ;;  %v3461_v22 = vpop.eup %3460 }
0x12f3   :  { %1832 = vadd.xlane.f32.xlu0 %v1831_v4  ;;  %v1825_v25 = vsel %vm489_vm2, %v3461_v22, 0.0 }
0x12f5   :  { %1823 = vadd.xlane.f32.xlu1 %v1822_v24 }
0x12f7   :  { %1826 = vadd.xlane.f32.xlu0 %v1825_v25 }
0x1306   :  { %1854 = vrot.lane.b32.xlu1 %v4335_v23, %s4636_s27 }
0x130d   :  { %1914 = vrot.lane.b32.xlu0 %v4351_v6, %s4636_s27 }
0x1372   :  { %v1818_v26 = vpop.xlane.xlu1 %1817 }
0x1374   :  { %v1821_v27 = vpop.xlane.xlu0 %1820 }
0x1376   :  { %v1812_v32 = vpop.xlane.xlu1 %1811 }
0x1377   :  { %3462 = vrcp.f32 %v1812_v32 }
0x1378   :  { %3464 = vrcp.f32 %v1821_v27  ;;  %v1815_v33 = vpop.xlane.xlu0 %1814 }
0x1379   :  { %3466 = vrcp.f32 %v1815_v33 }
0x137a   :  { %3468 = vrcp.f32 %v1818_v26 }
0x137e   :  { %v1830_v35 = vpop.xlane.xlu1 %1829 }
0x1380   :  { %v1833_v45 = vpop.xlane.xlu0 %1832 }
0x1381   :  { %v3463_v36 = vpop.eup %3462  ;;  %3470 = vrcp.f32 %v1833_v45  ;;  %v2966_v45 = vld [vmem:[#allocation7 + $0x1] ss:$0 sm:$0xff] }
0x1382   :  { %v3465_v46 = vpop.eup %3464  ;;  %v1824_v37 = vpop.xlane.xlu1 %1823  ;;  %v1842_v6 = vmul.f32 %v3463_v36, %v3451_v17 }
0x1383   :  { %v3467_v38 = vpop.eup %3466  ;;  %3472 = vrcp.f32 %v1824_v37  ;;  %v1845_v48 = vmul.f32 %v3465_v46, %v3449_v11 }
0x1384   :  { %v3469_v23 = vpop.eup %3468  ;;  %3474 = vrcp.f32 %v1830_v35  ;;  %v1827_v39 = vpop.xlane.xlu0 %1826  ;;  %v1843_v44 = vmul.f32 %v3467_v38, %v3453_v20 }
0x1385   :  { %3476 = vrcp.f32 %v1827_v39  ;;  %v1844_v52 = vmul.f32 %v3469_v23, %v3447_v7  ;;  %v3358_v7 = vld [vmem:[%s4640_s22 + $0x10] sm:$0xff]  }
0x1386   :  { %v1855_v49 = vpop.permute.xlu1 %1854  ;;  %v1850_v50 = vpack.c.bf16 %v1843_v44, %v1842_v6 }
0x1387   :  { %v1863_v53 = vsel %vm590_vm3, %v1855_v49, 0  ;;  %3316 = vmatprep.subr.msk.bf16.mxu1 %vm590_vm3, %v1855_v49  ;;  %v1851_v56 = vpack.c.bf16 %v1845_v48, %v1844_v52 }
0x1388   :  { %3229 = vmatpush3.bf16.msra.mxu1 %v1863_v53  ;;  %3230 = vmatprep.mubr.msk.bf16.mxu1 %vm489_vm2, %v1850_v50  ;;  %v1915_v54 = vpop.permute.xlu0 %1914 }
0x1389   :  { %v1923_v55 = vsel %vm590_vm3, %v1915_v54, 0  ;;  %3317 = vmatprep.subr.msk.bf16.mxu0 %vm590_vm3, %v1915_v54  ;;  %3240 = vmatprep.subr.bf16.mxu1 %v3777_v0 }
0x138a   :  { %3235 = vmatpush3.bf16.msra.mxu0 %v1923_v55 }
0x138b   :  { %3231 = vmatmul.mubr.msk.bf16.vlgmr.msra.gmra.mrb[36].mxu1 %vm489_vm2, %v1851_v56  ;;  %3248 = vmatprep.subr.bf16.mxu0 %v3777_v0  ;;  %v3471_v28 = vpop.eup %3470 }
0x138c   :  { %3244 = vmatprep.mubr.msk.bf16.mxu1 %vm3778_vm0, %v3777_v0  ;;  %v1849_v61 = vmul.f32 %v3471_v28, %v3459_v21  ;;  %3241 = vmatpush3.bf16.msra.mxu1 %v3358_v7 }
0x138d   :  { %v3473_v59 = vpop.eup %3472  ;;  %3242 = vmatprep.subr.bf16.mxu1 %v3777_v0 }
0x138e   :  { %v3475_v31 = vpop.eup %3474  ;;  %v1846_v62 = vmul.f32 %v3473_v59, %v3457_v3 }
0x138f   :  { %v3477_v60 = vpop.eup %3476  ;;  %v1848_v1 = vmul.f32 %v3475_v31, %v3455_v42 }
0x1390   :  { %v1847_v63 = vmul.f32 %v3477_v60, %v3461_v22  ;;  %3243 = vmatpush3.bf16.msra.mxu1 %v3359_v8  ;;  %v3360_v60 = vld [vmem:[#allocation8 + $0x10] sm:$0xff]  }
0x1391   :  { %v1853_v29 = vpack.c.bf16 %v1849_v61, %v1848_v1 }
0x1392   :  { %v1852_v2 = vpack.c.bf16 %v1847_v63, %v1846_v62 }
0x1394   :  { %3236 = vmatprep.mubr.msk.bf16.mxu0 %vm489_vm2, %v1852_v2 }
0x1395   :  { %3237 = vmatmul.mubr.msk.bf16.vlgmr.msra.gmra.mrb[36].mxu0 %vm489_vm2, %v1853_v29 }
0x1396   :  { %3252 = vmatprep.mubr.msk.bf16.mxu0 %vm3778_vm0, %v3777_v0  ;;  %3249 = vmatpush3.bf16.msra.mxu0 %v3360_v60 }
0x1397   :  { %3250 = vmatprep.subr.bf16.mxu0 %v3777_v0 }
0x145e   :  { %v3232_v9 = vpop.f32.mrb[36].mxu1 }
0x145f   :  { %v1899_v10 = vpop.f32.mrb[37].mxu1  ;;  %v1976_v17 = vmul.f32 %v4364_v14, %v3232_v9 }
0x1460   :  { %v3233_v11 = vpop.f32.mrb[38].mxu1  ;;  %v1974_v13 = vmul.f32 %v4340_v34, %v1899_v10  ;;  %v4446_v10 = vld [vmem:[%s4604_s17 + $0x4] sm:$0x7]  ;;  %s3780_s17 = smov 32  }
0x1461   :  { %v1902_v12 = vpop.f32.mrb[39].mxu1  ;;  %v1977_v20 = vmul.f32 %v4370_v16, %v3233_v11  ;;  %v2089_v11 = vrot.slane %v4446_v10, %v4190_v30 }
0x1462   :  { %v1975_v15 = vmul.f32 %v4346_v5, %v1902_v12 }
0x1464   :  { %v1982_v18 = vadd.f32 %v1975_v15, %v1974_v13  ;;  %v4453_v13 = vld [vmem:[%s4605_s18 + $0x4] sm:$0x7] }
0x1466   :  { %v1984_v19 = vadd.f32 %v1982_v18, %v1976_v17 }
0x1468   :  { %v1986_v42 = vadd.f32 %v1984_v19, %v1977_v20  ;;  %v3238_v3 = vpop.f32.mrb[36].mxu0  ;;  %v2095_v19 = vrot.slane %v4453_v13, %v4190_v30 }
0x1469   :  { %v1959_v43 = vpop.f32.mrb[37].mxu0  ;;  %v1980_v25 = vmul.f32 %v4364_v14, %v3238_v3 }
0x146a   :  { %v3239_v21 = vpop.f32.mrb[38].mxu0  ;;  %v1978_v22 = vmul.f32 %v4340_v34, %v1959_v43 }
0x146b   :  { %v1962_v4 = vpop.f32.mrb[39].mxu0  ;;  %v1981_v27 = vmul.f32 %v4370_v16, %v3239_v21 }
0x146c   :  { %v1979_v24 = vmul.f32 %v4346_v5, %v1962_v4 }
0x146e   :  { %v1983_v26 = vadd.f32 %v1979_v24, %v1978_v22  ;;  %v2970_v22 = vld [vmem:[#allocation10 + $0x1] ss:$0 sm:$0xff] }
0x1470   :  { %v1985_v32 = vadd.f32 %v1983_v26, %v1980_v25 }
0x1472   :  { %v1987_v33 = vadd.f32 %v1985_v32, %v1981_v27 }
0x1474   :  { %v1988_v35 = vpack.c.bf16 %v1987_v33, %v1986_v42 }
0x1476   :  { %3245 = vmatmul.mubr.msk.bf16.vlgmr.msra.gmra.mrb[40].mxu1 %vm227_vm1, %v1988_v35 }
0x1549   :  { %v2051_v36 = vpop.f32.mrb[40].mxu1 }
0x154a   :  { %v2052_v46 = vadd.f32 %v2966_v45, %v2051_v36  ;;  %v3246_v37 = vpop.f32.mrb[41].mxu1 }
0x154b   :  { %v2054_v38 = vpop.f32.mrb[42].mxu1 }
0x154c   :  { %v2055_v23 = vadd.f32 %v2966_v45, %v2054_v38  ;;  %v3247_v39 = vpop.f32.mrb[43].mxu1  ;;  %v2058_v6 = vadd.f32 %v2052_v46, %v4328_v57 }
0x154e   :  { %v2060_v44 = vsel %vm227_vm1, %v2058_v6, 0.0  ;;  %v2059_v48 = vadd.f32 %v2055_v23, %v4330_v58  ;;  %v3361_v58 = vld [vmem:[#allocation8 + $0x18] sm:$0xff]  }
0x154f   :  { %2061 = vadd.xlane.f32.xlu1 %v2060_v44  ;;  %3251 = vmatpush3.bf16.msra.mxu0 %v3361_v58 }
0x1550   :  { %v2063_v49 = vsel %vm227_vm1, %v2059_v48, 0.0 }
0x1551   :  { %2064 = vadd.xlane.f32.xlu0 %v2063_v49 }
0x15dc   :  { %v2062_v50 = vpop.xlane.xlu1 %2061 }
0x15dd   :  { %v2066_v52 = vmul.f32 0.03125, %v2062_v50 }
0x15de   :  { %v2065_v53 = vpop.xlane.xlu0 %2064 }
0x15df   :  { %v2068_v54 = vsub.f32 %v2058_v6, %v2066_v52  ;;  %v2067_v55 = vmul.f32 0.03125, %v2065_v53 }
0x15e1   :  { %v2069_v56 = vsub.f32 %v2059_v48, %v2067_v55  ;;  %v2070_v28 = vmul.f32 %v2068_v54, %v2068_v54 }
0x15e3   :  { %v2072_v59 = vsel %vm227_vm1, %v2070_v28, 0.0  ;;  %v2071_v31 = vmul.f32 %v2069_v56, %v2069_v56 }
0x15e4   :  { %2073 = vadd.xlane.f32.xlu1 %v2072_v59 }
0x15e5   :  { %v2075_v57 = vsel %vm227_vm1, %v2071_v31, 0.0 }
0x15e6   :  { %2076 = vadd.xlane.f32.xlu0 %v2075_v57 }
0x15f5   :  { %2180 = vrot.lane.b32.xlu1 %v4094_v41, %s4636_s27 }
0x15fc   :  { %2240 = vrot.lane.b32.xlu0 %v4092_v40, %s4636_s27 }
0x1671   :  { %v2074_v61 = vpop.xlane.xlu1 %2073 }
0x1672   :  { %v2078_v62 = vmul.f32 0.03125, %v2074_v61 }
0x1673   :  { %v2077_v63 = vpop.xlane.xlu0 %2076 }
0x1674   :  { %v2080_v1 = vadd.f32 1e-05, %v2078_v62  ;;  %v2079_v2 = vmul.f32 0.03125, %v2077_v63 }
0x1675   :  { %v2181_v29 = vpop.permute.xlu1 %2180 }
0x1676   :  { %3478 = vrsqrt.f32 %v2080_v1  ;;  %v2081_v7 = vadd.f32 1e-05, %v2079_v2  ;;  %v2189_v8 = vsel %vm227_vm1, %v2181_v29, 0  ;;  %3318 = vmatprep.subr.msk.bf16.mxu1 %vm227_vm1, %v2181_v29 }
0x1677   :  { %3257 = vmatpush3.bf16.xpose.msra.mxu1 %v2189_v8  ;;  %v2241_v9 = vpop.permute.xlu0 %2240 }
0x1678   :  { %3480 = vrsqrt.f32 %v2081_v7  ;;  %3319 = vmatprep.subr.msk.bf16.mxu0 %vm227_vm1, %v2241_v9  ;;  %v2249_v4 = vsel %vm227_vm1, %v2241_v9, 0 }
0x1680   :  { %v3479_v12 = vpop.eup %3478 }
0x1681   :  { %v2084_v15 = vmul.f32 %v3479_v12, %v2068_v54 }
0x1682   :  { %v3481_v17 = vpop.eup %3480 }
0x1683   :  { %v2090_v18 = vmul.f32 %v2089_v11, %v2084_v15  ;;  %v2085_v20 = vmul.f32 %v3481_v17, %v2069_v56 }
0x1685   :  { %v2091_v42 = vmul.f32 %v2089_v11, %v2085_v20  ;;  %v4457_v3 = vadd.f32 %v2095_v19, %v2090_v18 }
0x1687   :  { %v4459_v43 = vadd.f32 %v2095_v19, %v2091_v42 }
0x1689   :  { %v2098_v21 = vpack.c.bf16 %v4459_v43, %v4457_v3 }
0x168b   :  { %3253 = vmatmul.mubr.msk.bf16.vlgmr.msra.gmra.mrb[40].mxu0 %vm227_vm1, %v2098_v21 }
0x168c   :  { %3263 = vmatpush3.bf16.xpose.msra.mxu0 %v2249_v4 }
0x175e   :  { %v2161_v24 = vpop.f32.mrb[40].mxu0 }
0x175f   :  { %v2162_v25 = vadd.f32 %v2970_v22, %v2161_v24  ;;  %v3254_v26 = vpop.f32.mrb[41].mxu0 }
0x1760   :  { %v2164_v27 = vpop.f32.mrb[42].mxu0 }
0x1761   :  { %v2168_v30 = vmul.f32 %v4340_v34, %v2162_v25  ;;  %v2169_v32 = vmul.f32 %v4346_v5, %v2162_v25  ;;  %v2170_v33 = vmul.f32 %v4364_v14, %v2162_v25  ;;  %v2171_v35 = vmul.f32 %v4370_v16, %v2162_v25  ;;  %v3255_v45 = vpop.f32.mrb[43].mxu0 }
0x1762   :  { %v2165_v36 = vadd.f32 %v2970_v22, %v2164_v27 }
0x1763   :  { %v2177_v46 = vpack.c.bf16 %v2171_v35, %v2170_v33  ;;  %v2176_v37 = vpack.c.bf16 %v2169_v32, %v2168_v30 }
0x1764   :  { %v2172_v38 = vmul.f32 %v4340_v34, %v2165_v36  ;;  %v2173_v23 = vmul.f32 %v4346_v5, %v2165_v36  ;;  %v2174_v39 = vmul.f32 %v4364_v14, %v2165_v36  ;;  %v2175_v6 = vmul.f32 %v4370_v16, %v2165_v36 }
0x1765   :  { %3258 = vmatprep.mubr.msk.bf16.mxu1 %vm227_vm1, %v2176_v37 }
0x1766   :  { %v2179_v44 = vpack.c.bf16 %v2175_v6, %v2174_v39  ;;  %3259 = vmatmul.mubr.msk.bf16.vlgmr.msra.gmra.mrb[44].mxu1 %vm227_vm1, %v2177_v46  ;;  %v2178_v48 = vpack.c.bf16 %v2173_v23, %v2172_v38 }
0x1768   :  { %3264 = vmatprep.mubr.msk.bf16.mxu0 %vm227_vm1, %v2178_v48 }
0x1769   :  { %3265 = vmatmul.mubr.msk.bf16.vlgmr.msra.gmra.mrb[44].mxu0 %vm227_vm1, %v2179_v44 }
0x1839   :  { %v3260_v49 = vpop.f32.mrb[44].mxu1 }
0x183a   :  { %v2225_v50 = vpop.f32.mrb[45].mxu1  ;;  %v2306_v52 = vsel %vm1024_vm4, %v3260_v49, -inf }
0x183b   :  { %2307 = vmax.xlane.f32.xlu1 %v2306_v52  ;;  %v3261_v53 = vpop.f32.mrb[46].mxu1  ;;  %v2300_v31 = vsel %vm1024_vm4, %v2225_v50, -inf }
0x183c   :  { %v3266_v54 = vpop.f32.mrb[44].mxu0  ;;  %v2228_v55 = vpop.f32.mrb[47].mxu1  ;;  %v2309_v56 = vsel %vm1024_vm4, %v3261_v53, -inf }
0x183d   :  { %v2285_v28 = vpop.f32.mrb[45].mxu0  ;;  %2310 = vmax.xlane.f32.xlu0 %v2309_v56  ;;  %v2303_v60 = vsel %vm1024_vm4, %v2228_v55, -inf  ;;  %v2318_v62 = vsel %vm1024_vm4, %v3266_v54, -inf }
0x183e   :  { %v3267_v59 = vpop.f32.mrb[46].mxu0  ;;  %v2312_v58 = vsel %vm1024_vm4, %v2285_v28, -inf }
0x183f   :  { %v2288_v57 = vpop.f32.mrb[47].mxu0  ;;  %2301 = vmax.xlane.f32.xlu1 %v2300_v31  ;;  %v2321_v63 = vsel %vm1024_vm4, %v3267_v59, -inf }
0x1840   :  { %v2315_v61 = vsel %vm1024_vm4, %v2288_v57, -inf }
0x1841   :  { %2304 = vmax.xlane.f32.xlu0 %v2303_v60 }
0x1843   :  { %2313 = vmax.xlane.f32.xlu1 %v2312_v58 }
0x1845   :  { %2316 = vmax.xlane.f32.xlu0 %v2315_v61 }
0x1847   :  { %2319 = vmax.xlane.f32.xlu1 %v2318_v62 }
0x1849   :  { %2322 = vmax.xlane.f32.xlu0 %v2321_v63 }
0x18c8   :  { %v2308_v1 = vpop.xlane.xlu1 %2307 }
0x18c9   :  { %v2326_v2 = vsub.f32 %v3260_v49, %v2308_v1 }
0x18ca   :  { %v2311_v29 = vpop.xlane.xlu0 %2310 }
0x18cb   :  { %v2336_v7 = vmul.f32 1.442695, %v2326_v2  ;;  %v2327_v8 = vsub.f32 %v3261_v53, %v2311_v29 }
0x18cc   :  { %v2302_v9 = vpop.xlane.xlu1 %2301 }
0x18cd   :  { %3482 = vpow2.f32 %v2336_v7  ;;  %v2338_v11 = vmul.f32 1.442695, %v2327_v8  ;;  %v2324_v12 = vsub.f32 %v2225_v50, %v2302_v9 }
0x18ce   :  { %v2305_v15 = vpop.xlane.xlu0 %2304 }
0x18cf   :  { %3484 = vpow2.f32 %v2338_v11  ;;  %v2332_v17 = vmul.f32 1.442695, %v2324_v12  ;;  %v2325_v18 = vsub.f32 %v2228_v55, %v2305_v15 }
0x18d0   :  { %v2314_v20 = vpop.xlane.xlu1 %2313 }
0x18d1   :  { %3486 = vpow2.f32 %v2332_v17  ;;  %v2334_v19 = vmul.f32 1.442695, %v2325_v18  ;;  %v2328_v42 = vsub.f32 %v2285_v28, %v2314_v20 }
0x18d2   :  { %v2317_v21 = vpop.xlane.xlu0 %2316 }
0x18d3   :  { %3488 = vpow2.f32 %v2334_v19  ;;  %v2329_v22 = vsub.f32 %v2288_v57, %v2317_v21  ;;  %v2340_v25 = vmul.f32 1.442695, %v2328_v42 }
0x18d4   :  { %v2320_v4 = vpop.xlane.xlu1 %2319 }
0x18d5   :  { %v2330_v24 = vsub.f32 %v3266_v54, %v2320_v4  ;;  %v2342_v45 = vmul.f32 1.442695, %v2329_v22 }
0x18d6   :  { %v2323_v26 = vpop.xlane.xlu0 %2322 }
0x18d7   :  { %v3483_v27 = vpop.eup %3482  ;;  %v2344_v30 = vmul.f32 1.442695, %v2330_v24  ;;  %v2331_v32 = vsub.f32 %v3267_v59, %v2323_v26  ;;  %v3362_v24 = vld [vmem:[#allocation13 + $0x10] sm:$0xff]  }
0x18d8   :  { %v2354_v33 = vsel %vm1024_vm4, %v3483_v27, 0.0 }
0x18d9   :  { %v3485_v35 = vpop.eup %3484  ;;  %3490 = vpow2.f32 %v2344_v30  ;;  %v2346_v36 = vmul.f32 1.442695, %v2331_v32  ;;  %2355 = vadd.xlane.f32.xlu1 %v2354_v33 }
0x18da   :  { %3492 = vpow2.f32 %v2340_v25  ;;  %v2357_v46 = vsel %vm1024_vm4, %v3485_v35, 0.0  ;;  %v3363_v25 = vld [vmem:[#allocation13 + $0x18] sm:$0xff]  }
0x18db   :  { %v3487_v37 = vpop.eup %3486  ;;  %3494 = vpow2.f32 %v2346_v36  ;;  %2358 = vadd.xlane.f32.xlu0 %v2357_v46 }
0x18dc   :  { %v2348_v38 = vsel %vm1024_vm4, %v3487_v37, 0.0  ;;  %3496 = vpow2.f32 %v2342_v45 }
0x18dd   :  { %v3489_v23 = vpop.eup %3488  ;;  %2349 = vadd.xlane.f32.xlu1 %v2348_v38 }
0x18de   :  { %v2351_v39 = vsel %vm1024_vm4, %v3489_v23, 0.0 }
0x18df   :  { %2352 = vadd.xlane.f32.xlu0 %v2351_v39 }
0x18e3   :  { %v3491_v6 = vpop.eup %3490 }
0x18e4   :  { %v3493_v44 = vpop.eup %3492  ;;  %v2366_v48 = vsel %vm1024_vm4, %v3491_v6, 0.0 }
0x18e5   :  { %v3495_v49 = vpop.eup %3494  ;;  %2367 = vadd.xlane.f32.xlu1 %v2366_v48  ;;  %v2360_v53 = vsel %vm1024_vm4, %v3493_v44, 0.0 }
0x18e6   :  { %v2369_v50 = vsel %vm1024_vm4, %v3495_v49, 0.0  ;;  %v3497_v52 = vpop.eup %3496 }
0x18e7   :  { %2370 = vadd.xlane.f32.xlu0 %v2369_v50  ;;  %v2363_v54 = vsel %vm1024_vm4, %v3497_v52, 0.0 }
0x18e9   :  { %2361 = vadd.xlane.f32.xlu1 %v2360_v53 }
0x18eb   :  { %2364 = vadd.xlane.f32.xlu0 %v2363_v54 }
0x18fa   :  { %2392 = vrot.lane.b32.xlu1 %v4094_v41, %s3780_s17 }
0x1901   :  { %2450 = vrot.lane.b32.xlu0 %v4092_v40, %s3780_s17 }
0x1966   :  { %v2356_v55 = vpop.xlane.xlu1 %2355 }
0x1968   :  { %v2359_v56 = vpop.xlane.xlu0 %2358 }
0x196a   :  { %v2350_v28 = vpop.xlane.xlu1 %2349 }
0x196b   :  { %3498 = vrcp.f32 %v2350_v28  ;;  %v2982_v28 = vld [vmem:[#allocation14 + $0x1] ss:$0 sm:$0xff] }
0x196c   :  { %3500 = vrcp.f32 %v2359_v56  ;;  %v2353_v59 = vpop.xlane.xlu0 %2352 }
0x196d   :  { %3502 = vrcp.f32 %v2353_v59 }
0x196e   :  { %3504 = vrcp.f32 %v2356_v55 }
0x1972   :  { %v2368_v31 = vpop.xlane.xlu1 %2367 }
0x1974   :  { %v2371_v57 = vpop.xlane.xlu0 %2370 }
0x1975   :  { %v3499_v60 = vpop.eup %3498  ;;  %3506 = vrcp.f32 %v2371_v57 }
0x1976   :  { %v3501_v58 = vpop.eup %3500  ;;  %v2362_v61 = vpop.xlane.xlu1 %2361  ;;  %v2380_v40 = vmul.f32 %v3499_v60, %v3487_v37 }
0x1977   :  { %v3503_v62 = vpop.eup %3502  ;;  %3508 = vrcp.f32 %v2362_v61  ;;  %v2383_v2 = vmul.f32 %v3501_v58, %v3485_v35 }
0x1978   :  { %v3505_v63 = vpop.eup %3504  ;;  %3510 = vrcp.f32 %v2368_v31  ;;  %v2365_v41 = vpop.xlane.xlu0 %2364  ;;  %v2381_v1 = vmul.f32 %v3503_v62, %v3489_v23 }
0x1979   :  { %3512 = vrcp.f32 %v2365_v41  ;;  %v2382_v8 = vmul.f32 %v3505_v63, %v3483_v27 }
0x197a   :  { %v2393_v29 = vpop.permute.xlu1 %2392  ;;  %v2388_v7 = vpack.c.bf16 %v2381_v1, %v2380_v40 }
0x197b   :  { %3268 = vmatprep.subr.bf16.mxu1 %v2393_v29  ;;  %v2389_v11 = vpack.c.bf16 %v2383_v2, %v2382_v8 }
0x197c   :  { %3269 = vmatpush3.bf16.msra.mxu1 %v2393_v29  ;;  %3270 = vmatprep.mubr.msk.bf16.mxu1 %vm1024_vm4, %v2388_v7  ;;  %v2451_v9 = vpop.permute.xlu0 %2450 }
0x197d   :  { %3274 = vmatprep.subr.bf16.mxu0 %v2451_v9  ;;  %3280 = vmatprep.subr.bf16.mxu1 %v3777_v0 }
0x197e   :  { %3275 = vmatpush3.bf16.msra.mxu0 %v2451_v9  ;;  %v3364_v9 = vld [vmem:[#allocation16 + $0x10] sm:$0xff]  }
0x197f   :  { %3271 = vmatmul.mubr.msk.bf16.vlgmr.msra.gmra.mrb[48].mxu1 %vm1024_vm4, %v2389_v11  ;;  %3288 = vmatprep.subr.bf16.mxu0 %v3777_v0  ;;  %v3507_v12 = vpop.eup %3506  ;;  %v3366_v11 = vld [vmem:[%s4602_s15 + $0x20] sm:$0xff]  }
0x1980   :  { %3284 = vmatprep.mubr.msk.bf16.mxu1 %vm3778_vm0, %v3777_v0  ;;  %v2387_v20 = vmul.f32 %v3507_v12, %v3495_v49  ;;  %3281 = vmatpush3.bf16.msra.mxu1 %v3362_v24  ;;  %v3367_v12 = vld [vmem:[%s4602_s15 + $0x28] sm:$0xff]  }
0x1981   :  { %v3509_v15 = vpop.eup %3508  ;;  %3282 = vmatprep.subr.bf16.mxu1 %v3777_v0 }
0x1982   :  { %v3511_v17 = vpop.eup %3510  ;;  %v2384_v19 = vmul.f32 %v3509_v15, %v3493_v44 }
0x1983   :  { %v3513_v18 = vpop.eup %3512  ;;  %v2386_v21 = vmul.f32 %v3511_v17, %v3491_v6 }
0x1984   :  { %v2385_v42 = vmul.f32 %v3513_v18, %v3497_v52  ;;  %3283 = vmatpush3.bf16.msra.mxu1 %v3363_v25 }
0x1985   :  { %v2391_v22 = vpack.c.bf16 %v2387_v20, %v2386_v21  ;;  %3296 = vmatprep.subr.bf16.mxu1 %v3777_v0  ;;  %v2623_v21 = vrot.slane %v4446_v10, %v4287_v51 }
0x1986   :  { %v2390_v4 = vpack.c.bf16 %v2385_v42, %v2384_v19 }
0x1988   :  { %3276 = vmatprep.mubr.msk.bf16.mxu0 %vm1024_vm4, %v2390_v4 }
0x1989   :  { %3277 = vmatmul.mubr.msk.bf16.vlgmr.msra.gmra.mrb[48].mxu0 %vm1024_vm4, %v2391_v22 }
0x198a   :  { %3292 = vmatprep.mubr.msk.bf16.mxu0 %vm3778_vm0, %v3777_v0  ;;  %3289 = vmatpush3.bf16.msra.mxu0 %v3364_v9 }
0x198b   :  { %3290 = vmatprep.subr.bf16.mxu0 %v3777_v0 }
0x1a52   :  { %v3272_v26 = vpop.f32.mrb[48].mxu1 }
0x1a53   :  { %v2435_v27 = vpop.f32.mrb[49].mxu1  ;;  %v2510_v45 = vmul.f32 %v4364_v14, %v3272_v26 }
0x1a54   :  { %v3273_v30 = vpop.f32.mrb[50].mxu1  ;;  %v2508_v33 = vmul.f32 %v4340_v34, %v2435_v27  ;;  %v2629_v27 = vrot.slane %v4453_v13, %v4287_v51  ;;  %v2987_v51 = vld [vmem:[%s4601_s14 + $0x1] ss:$0 sm:$0xff] }
0x1a55   :  { %v2438_v32 = vpop.f32.mrb[51].mxu1  ;;  %v2511_v46 = vmul.f32 %v4370_v16, %v3273_v30 }
0x1a56   :  { %v2509_v35 = vmul.f32 %v4346_v5, %v2438_v32 }
0x1a58   :  { %v2516_v36 = vadd.f32 %v2509_v35, %v2508_v33 }
0x1a5a   :  { %v2518_v37 = vadd.f32 %v2516_v36, %v2510_v45  ;;  %v3368_v45 = vld [vmem:[%s4602_s15 + $0x30] sm:$0xff]   ;;  %v3369_v36 = vld [vmem:[%s4602_s15 + $0x38] sm:$0xff]  }
0x1a5c   :  { %v2520_v38 = vadd.f32 %v2518_v37, %v2511_v46  ;;  %v3278_v23 = vpop.f32.mrb[48].mxu0 }
0x1a5d   :  { %v2493_v39 = vpop.f32.mrb[49].mxu0  ;;  %v2514_v50 = vmul.f32 %v4364_v14, %v3278_v23 }
0x1a5e   :  { %v3279_v6 = vpop.f32.mrb[50].mxu0  ;;  %v2512_v48 = vmul.f32 %v4340_v34, %v2493_v39 }
0x1a5f   :  { %v2496_v44 = vpop.f32.mrb[51].mxu0  ;;  %v2515_v53 = vmul.f32 %v4370_v16, %v3279_v6 }
0x1a60   :  { %v2513_v49 = vmul.f32 %v4346_v5, %v2496_v44 }
0x1a62   :  { %v2517_v52 = vadd.f32 %v2513_v49, %v2512_v48 }
0x1a64   :  { %v2519_v54 = vadd.f32 %v2517_v52, %v2514_v50 }
0x1a66   :  { %v2521_v55 = vadd.f32 %v2519_v54, %v2515_v53 }
0x1a68   :  { %v2522_v56 = vpack.c.bf16 %v2521_v55, %v2520_v38 }
0x1a6a   :  { %3285 = vmatmul.mubr.msk.bf16.vlgmr.msra.gmra.mrb[52].mxu1 %vm227_vm1, %v2522_v56 }
0x1a6b   :  { %3304 = vmatprep.mubr.msk.bf16.mxu1 %vm3778_vm0, %v3777_v0  ;;  %3297 = vmatpush3.bf16.msra.mxu1 %v3366_v11  ;;  %v2827_v11 = vrot.slane %v4453_v13, %v4322_v47 }
0x1a6c   :  { %3298 = vmatprep.subr.bf16.mxu1 %v3777_v0 }
0x1a6f   :  { %3299 = vmatpush3.bf16.msra.mxu1 %v3367_v12 }
0x1a70   :  { %3300 = vmatprep.subr.bf16.mxu1 %v3777_v0 }
0x1a73   :  { %3301 = vmatpush3.bf16.msra.mxu1 %v3368_v45 }
0x1a74   :  { %3302 = vmatprep.subr.bf16.mxu1 %v3777_v0  ;;  %v3000_v0 = vld [vmem:[%s4603_s16 + $0x1] ss:$0 sm:$0xff] }
0x1a77   :  { %3303 = vmatpush3.bf16.msra.mxu1 %v3369_v36 }
0x1b3d   :  { %v2585_v59 = vpop.f32.mrb[52].mxu1 }
0x1b3e   :  { %v2586_v31 = vadd.f32 %v2982_v28, %v2585_v59  ;;  %v3286_v57 = vpop.f32.mrb[53].mxu1 }
0x1b3f   :  { %v2588_v34 = vpop.f32.mrb[54].mxu1 }
0x1b40   :  { %v2592_v5 = vadd.f32 %v2586_v31, %v4457_v3  ;;  %v2589_v60 = vadd.f32 %v2982_v28, %v2588_v34  ;;  %v3287_v14 = vpop.f32.mrb[55].mxu1 }
0x1b42   :  { %v2594_v58 = vsel %vm227_vm1, %v2592_v5, 0.0  ;;  %v2593_v16 = vadd.f32 %v2589_v60, %v4459_v43  ;;  %v3365_v43 = vld [vmem:[#allocation16 + $0x18] sm:$0xff]  }
0x1b43   :  { %2595 = vadd.xlane.f32.xlu1 %v2594_v58  ;;  %3291 = vmatpush3.bf16.msra.mxu0 %v3365_v43 }
0x1b44   :  { %v2597_v61 = vsel %vm227_vm1, %v2593_v16, 0.0 }
0x1b45   :  { %2598 = vadd.xlane.f32.xlu0 %v2597_v61 }
0x1bd0   :  { %v2596_v62 = vpop.xlane.xlu1 %2595 }
0x1bd1   :  { %v2600_v63 = vmul.f32 0.03125, %v2596_v62 }
0x1bd2   :  { %v2599_v41 = vpop.xlane.xlu0 %2598 }
0x1bd3   :  { %v2602_v40 = vsub.f32 %v2592_v5, %v2600_v63  ;;  %v2601_v1 = vmul.f32 0.03125, %v2599_v41 }
0x1bd5   :  { %v2603_v2 = vsub.f32 %v2593_v16, %v2601_v1  ;;  %v2604_v29 = vmul.f32 %v2602_v40, %v2602_v40 }
0x1bd7   :  { %v2606_v7 = vsel %vm227_vm1, %v2604_v29, 0.0  ;;  %v2605_v3 = vmul.f32 %v2603_v2, %v2603_v2 }
0x1bd8   :  { %2607 = vadd.xlane.f32.xlu1 %v2606_v7 }
0x1bd9   :  { %v2609_v8 = vsel %vm227_vm1, %v2605_v3, 0.0 }
0x1bda   :  { %2610 = vadd.xlane.f32.xlu0 %v2609_v8  ;;  %v2821_v8 = vrot.slane %v4446_v10, %v4322_v47 }
0x1c65   :  { %v2608_v15 = vpop.xlane.xlu1 %2607 }
0x1c66   :  { %v2612_v17 = vmul.f32 0.03125, %v2608_v15 }
0x1c67   :  { %v2611_v18 = vpop.xlane.xlu0 %2610 }
0x1c68   :  { %v2614_v20 = vadd.f32 1e-05, %v2612_v17  ;;  %v2613_v19 = vmul.f32 0.03125, %v2611_v18 }
0x1c6a   :  { %3514 = vrsqrt.f32 %v2614_v20  ;;  %v2615_v42 = vadd.f32 1e-05, %v2613_v19 }
0x1c6c   :  { %3516 = vrsqrt.f32 %v2615_v42 }
0x1c74   :  { %v3515_v4 = vpop.eup %3514 }
0x1c75   :  { %v2618_v22 = vmul.f32 %v3515_v4, %v2602_v40 }
0x1c76   :  { %v3517_v24 = vpop.eup %3516 }
0x1c77   :  { %v2624_v25 = vmul.f32 %v2623_v21, %v2618_v22  ;;  %v2619_v26 = vmul.f32 %v3517_v24, %v2603_v2 }
0x1c79   :  { %v2625_v30 = vmul.f32 %v2623_v21, %v2619_v26  ;;  %v2630_v32 = vadd.f32 %v2629_v27, %v2624_v25 }
0x1c7b   :  { %v2631_v33 = vadd.f32 %v2629_v27, %v2625_v30 }
0x1c7d   :  { %v2632_v35 = vpack.c.bf16 %v2631_v33, %v2630_v32 }
0x1c7f   :  { %3293 = vmatmul.mubr.msk.bf16.vlgmr.msra.gmra.mrb[52].mxu0 %vm227_vm1, %v2632_v35 }
0x1d52   :  { %v2695_v46 = vpop.f32.mrb[52].mxu0 }
0x1d53   :  { %v2696_v37 = vadd.f32 %v2987_v51, %v2695_v46  ;;  %v3294_v38 = vpop.f32.mrb[53].mxu0 }
0x1d54   :  { %v2698_v23 = vpop.f32.mrb[54].mxu0 }
0x1d55   :  { %v2699_v39 = vadd.f32 %v2987_v51, %v2698_v23  ;;  %v3295_v6 = vpop.f32.mrb[55].mxu0  ;;  %v2702_v44 = vmax.f32 %v2696_v37, 0.0  ;;  %v3006_v37 = vld [vmem:[%s4606_s19] ss:$0 sm:$0xff] }
0x1d57   :  { %v2703_v48 = vmax.f32 %v2699_v39, 0.0  ;;  %v3007_v39 = vld [vmem:[%s4607_s20] ss:$0 sm:$0xff] }
0x1d59   :  { %v2704_v49 = vpack.c.bf16 %v2703_v48, %v2702_v44 }
0x1d5b   :  { %3305 = vmatmul.mubr.msk.bf16.vlgmr.msra.gmra.mrb[56].mxu1 %vm1467_vm5, %v2704_v49 }
0x1e2e   :  { %v2783_v50 = vpop.f32.mrb[56].mxu1 }
0x1e2f   :  { %v2784_v52 = vadd.f32 %v3000_v0, %v2783_v50  ;;  %v3306_v53 = vpop.f32.mrb[57].mxu1 }
0x1e30   :  { %v2786_v54 = vpop.f32.mrb[58].mxu1 }
0x1e31   :  { %v2790_v55 = vadd.f32 %v2784_v52, %v2630_v32  ;;  %v2787_v56 = vadd.f32 %v3000_v0, %v2786_v54  ;;  %v3307_v28 = vpop.f32.mrb[59].mxu1 }
0x1e33   :  { %v2792_v59 = vsel %vm227_vm1, %v2790_v55, 0.0  ;;  %v2791_v31 = vadd.f32 %v2787_v56, %v2631_v33 }
0x1e34   :  { %2793 = vadd.xlane.f32.xlu1 %v2792_v59 }
0x1e35   :  { %v2795_v57 = vsel %vm227_vm1, %v2791_v31, 0.0 }
0x1e36   :  { %2796 = vadd.xlane.f32.xlu0 %v2795_v57 }
0x1ec1   :  { %v2794_v34 = vpop.xlane.xlu1 %2793 }
0x1ec2   :  { %v2798_v5 = vmul.f32 0.03125, %v2794_v34 }
0x1ec3   :  { %v2797_v60 = vpop.xlane.xlu0 %2796 }
0x1ec4   :  { %v2800_v14 = vsub.f32 %v2790_v55, %v2798_v5  ;;  %v2799_v58 = vmul.f32 0.03125, %v2797_v60 }
0x1ec6   :  { %v2801_v16 = vsub.f32 %v2791_v31, %v2799_v58  ;;  %v2802_v61 = vmul.f32 %v2800_v14, %v2800_v14 }
0x1ec8   :  { %v2804_v62 = vsel %vm227_vm1, %v2802_v61, 0.0  ;;  %v2803_v63 = vmul.f32 %v2801_v16, %v2801_v16 }
0x1ec9   :  { %2805 = vadd.xlane.f32.xlu1 %v2804_v62 }
0x1eca   :  { %v2807_v41 = vsel %vm227_vm1, %v2803_v63, 0.0 }
0x1ecb   :  { %2808 = vadd.xlane.f32.xlu0 %v2807_v41 }
0x1f56   :  { %v2806_v40 = vpop.xlane.xlu1 %2805 }
0x1f57   :  { %v2810_v1 = vmul.f32 0.03125, %v2806_v40 }
0x1f58   :  { %v2809_v2 = vpop.xlane.xlu0 %2808 }
0x1f59   :  { %v2812_v29 = vadd.f32 1e-05, %v2810_v1  ;;  %v2811_v7 = vmul.f32 0.03125, %v2809_v2 }
0x1f5b   :  { %3518 = vrsqrt.f32 %v2812_v29  ;;  %v2813_v3 = vadd.f32 1e-05, %v2811_v7 }
0x1f5d   :  { %3520 = vrsqrt.f32 %v2813_v3 }
0x1f65   :  { %v3519_v9 = vpop.eup %3518 }
0x1f66   :  { %v2816_v43 = vmul.f32 %v3519_v9, %v2800_v14 }
0x1f67   :  { %v3521_v12 = vpop.eup %3520 }
0x1f68   :  { %v2822_v15 = vmul.f32 %v2821_v8, %v2816_v43  ;;  %v2817_v17 = vmul.f32 %v3521_v12, %v2801_v16 }
0x1f6a   :  { %v2828_v18 = vadd.f32 %v2827_v11, %v2822_v15  ;;  %v2823_v20 = vmul.f32 %v2821_v8, %v2817_v17 }
0x1f6c   :  { %v2832_v19 = vsel %vm227_vm1, %v2828_v18, 0.0  ;;  %v2829_v42 = vadd.f32 %v2827_v11, %v2823_v20 }
0x1f6d   :  { %2833 = vadd.xlane.f32.xlu1 %v2832_v19 }
0x1f6e   :  { %v2835_v21 = vsel %vm227_vm1, %v2829_v42, 0.0 }
0x1f6f   :  { %2836 = vadd.xlane.f32.xlu0 %v2835_v21 }
0x1ffa   :  { %v2834_v4 = vpop.xlane.xlu1 %2833 }
0x1ffb   :  { %v2838_v22 = vmul.f32 0.03125, %v2834_v4 }
0x1ffc   :  { %v2837_v10 = vpop.xlane.xlu0 %2836 }
0x1ffd   :  { %v2840_v24 = vsub.f32 %v2828_v18, %v2838_v22  ;;  %v2839_v25 = vmul.f32 0.03125, %v2837_v10 }
0x1fff   :  { %v2841_v26 = vsub.f32 %v2829_v42, %v2839_v25  ;;  %v2842_v27 = vmul.f32 %v2840_v24, %v2840_v24 }
0x2001   :  { %v2844_v47 = vsel %vm227_vm1, %v2842_v27, 0.0  ;;  %v2843_v13 = vmul.f32 %v2841_v26, %v2841_v26 }
0x2002   :  { %2845 = vadd.xlane.f32.xlu1 %v2844_v47 }
0x2003   :  { %v2847_v30 = vsel %vm227_vm1, %v2843_v13, 0.0 }
0x2004   :  { %2848 = vadd.xlane.f32.xlu0 %v2847_v30 }
0x208f   :  { %v2846_v32 = vpop.xlane.xlu1 %2845 }
0x2090   :  { %v2850_v33 = vmul.f32 0.03125, %v2846_v32 }
0x2091   :  { %v2849_v35 = vpop.xlane.xlu0 %2848 }
0x2092   :  { %v2852_v45 = vadd.f32 1e-05, %v2850_v33  ;;  %v2851_v36 = vmul.f32 0.03125, %v2849_v35 }
0x2094   :  { %3522 = vrsqrt.f32 %v2852_v45  ;;  %v2853_v51 = vadd.f32 1e-05, %v2851_v36 }
0x2096   :  { %3524 = vrsqrt.f32 %v2853_v51 }
0x209e   :  { %v3523_v46 = vpop.eup %3522 }
0x209f   :  { %v2856_v38 = vmul.f32 %v3523_v46, %v2840_v24 }
0x20a0   :  { %v3525_v23 = vpop.eup %3524 }
0x20a1   :  { %v2857_v6 = vmul.f32 %v3525_v23, %v2841_v26  ;;  %v2864_v44 = vmul.f32 %v3006_v37, %v2856_v38 }
0x20a3   :  { %v2865_v48 = vmul.f32 %v3006_v37, %v2857_v6  ;;  %v2872_v49 = vadd.f32 %v3007_v39, %v2864_v44 }
0x20a5   :  { %v2873_v0 = vadd.f32 %v3007_v39, %v2865_v48  ;;  %2874 = vst.msk [vmem:[#allocation17] sm:$0xff] %vm227_vm1, %v2872_v49 }
0x20a7   :  { %2875 = vst.msk [vmem:[#allocation17 + $0x8] sm:$0xff] %vm227_vm1, %v2873_v0 }
0x20a8   :  { %3739 = shalt.err (!%p3736_p6)
}
0x20a9   :  { %s4641_s2 = sld [smem:[#allocation30_spill]] }
0x20af   :  { %s3740_s24 = scalar_lea.hbm %s4641_s2, 256 }
0x20b0   :  { %p3741_p7 = scmp.ne.s32.totalorder %s4641_s2, %s3740_s24  ;;  %p3744_p8 = scmp.lt.u32.totalorder %s3740_s24, %s4641_s2 }
0x20b2   :  { %p3746_p9 = pnand %p3744_p8, %p3741_p7 }
0x20b4   :  { %3749 = shalt.err (!%p3746_p9)
}
0x20b5   :  { %2887 = dma.vmem_to_hbm [thread:$0]  %s2882_s7, 256, %s4641_s2, [#allocation4], %s3771_s12, %s3771_s12, %s3772_s29  }
0x20b6   :  { %3760 = dma.done.wait [#allocation4], 256  }
0x20b7   :  { %3761 = vsyncadd [#allocation4], 4294967040 }
0x20b8   :  { %2891 = vsyncpa [#allocation3], 1 }
0x20b9   :  { %2892 = vsyncpa [#allocation6], 1 }
0x20ba   :  { %2893 = vsyncpa [#allocation9], 1 }
0x20bb   :  { %2894 = vsyncpa [#allocation12], 1 }
0x20bc   :  { %2895 = vsyncpa [#allocation15], 1 }
0x20bd   :  { %2896 = vsyncpa [#allocation4], 1 }

</bundles_post_ra>
